<compile_context>
chip_gen: v5e
topology: v5e:2x2
jax: 0.10.0
libtpu: 0.0.40
codegen_flags: <defaults>
</compile_context>

<pallas_src>
import functools

import jax
import jax.numpy as jnp
import numpy as np
from jax.experimental import pallas as pl
from jax.experimental.pallas import tpu as pltpu

EPS = 1e-5          # nn.InstanceNorm3d default eps
NEG_SLOPE = 0.01    # nn.LeakyReLU default negative_slope
LANE = 128


def _round_up(x, m):
    return (x + m - 1) // m * m


# ---------------------------------------------------------------------------
# One-time feature probes (tiny kernels run at import; fall back silently).
# ---------------------------------------------------------------------------
def _probe_single_buffering():
    """pipeline_mode=pl.Buffered(1) support for grid-invariant operands."""
    if not hasattr(pl, "Buffered"):
        return False

    def _copy(x_ref, o_ref):
        o_ref[...] = x_ref[...]

    try:
        fn = pl.pallas_call(
            _copy,
            out_shape=jax.ShapeDtypeStruct((8, LANE), jnp.float32),
            grid=(2,),
            in_specs=[pl.BlockSpec((8, LANE), lambda n: (0, 0),
                                   pipeline_mode=pl.Buffered(1))],
            out_specs=pl.BlockSpec((8, LANE), lambda n: (0, 0)))
        jax.block_until_ready(fn(jnp.zeros((8, LANE), jnp.float32)))
        return True
    except Exception:
        return False


def _probe_lane_strided_slice():
    """Lane-dim strided reads: ref[:, pl.ds(start, size, stride=s)]."""
    def _k(x_ref, o_ref):
        o_ref[...] = x_ref[:, pl.ds(5, 4, stride=2)]

    try:
        x = jnp.arange(8 * 256, dtype=jnp.float32).reshape(8, 256)
        y = pl.pallas_call(
            _k, out_shape=jax.ShapeDtypeStruct((8, 4), jnp.float32))(x)
        return bool(jax.block_until_ready(jnp.all(y == x[:, 5:13:2])))
    except Exception:
        return False


_SINGLE_BUFFER_OK = _probe_single_buffering()
_LANE_STRIDED_OK = _probe_lane_strided_slice()


def _const_spec(shape):
    """BlockSpec for a grid-invariant 2-D operand: whole array, constant index
    map, single-buffered when supported (no useless second VMEM buffer)."""
    assert len(shape) == 2
    if _SINGLE_BUFFER_OK:
        return pl.BlockSpec(shape, lambda n: (0, 0),
                            pipeline_mode=pl.Buffered(1))
    return pl.BlockSpec(shape, lambda n: (0, 0))


def _vmem_limit_bytes():
    """Per-generation scoped-VMEM limit with ~16 MiB headroom."""
    try:
        cap = int(pltpu.get_tpu_info().vmem_capacity_bytes)
    except Exception:
        cap = 64 * 1024 * 1024
    return int(min(max(cap - 16 * 1024 * 1024, 32 * 1024 * 1024),
                   128 * 1024 * 1024))


# ---------------------------------------------------------------------------
# In-kernel helpers
# ---------------------------------------------------------------------------
def _leaky(z):
    return jnp.where(z >= 0, z, NEG_SLOPE * z)


def _inorm(z, n_valid, valid_mask):
    """InstanceNorm3d over the lane (flattened-spatial) axis of z: (C, L).

    Single-pass sum / sum-of-squares statistics in f32; `valid_mask` ((1, L)
    bool or None) excludes lane padding from the statistics.  The activations
    entering each norm are post-norm / post-ReLU (means O(1)), so single-pass
    variance with the max(.,0) guard is numerically adequate here.
    """
    zv = z if valid_mask is None else jnp.where(valid_mask, z, 0.0)
    inv_n = 1.0 / float(n_valid)
    mean = jnp.sum(zv, axis=1, keepdims=True) * inv_n
    ex2 = jnp.sum(zv * zv, axis=1, keepdims=True) * inv_n
    var = jnp.maximum(ex2 - mean * mean, 0.0)
    return (z - mean) * jax.lax.rsqrt(var + EPS)


def _dw3x3x3(h, wd, crd, D, H, W, L):
    """Depthwise 3x3x3 (padding=1) on (C, L)-flat activations.

    The 27 taps are XLU lane rolls of the in-vreg activation combined with
    per-lane (d, h, w) boundary masks; wrapped lanes are exactly the lanes the
    mask zeroes, so results match zero-padded convolution.  f32 accumulate.
    """
    d_i = crd[0:1, :]
    h_i = crd[1:2, :]
    w_i = crd[2:3, :]
    md = [(d_i + dd >= 0) & (d_i + dd < D) for dd in (-1, 0, 1)]
    mh = [(h_i + hh >= 0) & (h_i + hh < H) for hh in (-1, 0, 1)]
    mw = [(w_i + ww >= 0) & (w_i + ww < W) for ww in (-1, 0, 1)]
    acc = None
    for kd in range(3):
        for kh in range(3):
            mdh = md[kd] & mh[kh]                          # hoisted out of kw loop
            for kw in range(3):
                off = (kd - 1) * H * W + (kh - 1) * W + (kw - 1)
                src = h if off == 0 else pltpu.roll(h, shift=(-off) % L, axis=1)
                t = kd * 9 + kh * 3 + kw
                tap = wd[:, t:t + 1]                       # (C, 1) f32
                contrib = jnp.where(mdh & mw[kw], src, 0.0) * tap
                acc = contrib if acc is None else acc + contrib
    return acc


# ---------------------------------------------------------------------------
# Fused MobileInvertedResidual x2 kernel (one batch element per grid step)
# ---------------------------------------------------------------------------
def _make_fused_kernel(*, expand, shortcut1, stride, decim_strided,
                       D, H, W, S_in, L_in, Do, Ho, Wo, S_out, L_out):
    """Ref order: x, [we1], wd1, wp1, [we2], wd2, wp2, coords_in, [coords_out],
    [sel], out, [acc_scr, dec_scr]."""
    def kernel(*refs):
        it = iter(refs)
        x_ref = next(it)
        we1_ref = next(it) if expand else None
        wd1_ref = next(it)
        wp1_ref = next(it)
        we2_ref = next(it) if expand else None
        wd2_ref = next(it)
        wp2_ref = next(it)
        c1_ref = next(it)
        c2_ref = next(it) if stride > 1 else c1_ref
        sel_ref = next(it) if (stride > 1 and not decim_strided) else None
        o_ref = next(it)
        if stride > 1 and decim_strided:
            acc_scr = next(it)
            dec_scr = next(it)

        x = x_ref[0]                                       # (Cin, L_in) f32
        crd1 = c1_ref[...]
        crd2 = crd1 if stride == 1 else c2_ref[...]
        vmask1 = None if L_in == S_in else (crd1[0:1, :] >= 0)
        vmask2 = None if L_out == S_out else (crd2[0:1, :] >= 0)

        # ---------------- MobileInvertedResidual #1 (stride=s) ----------------
        if expand:
            h = jnp.dot(we1_ref[...], x.astype(jnp.bfloat16),
                        preferred_element_type=jnp.float32)
            h = _leaky(_inorm(h, S_in, vmask1))
        else:
            h = x

        acc = _dw3x3x3(h, wd1_ref[...], crd1, D, H, W, L_in)

        if stride > 1:
            if decim_strided:
                # Do*Ho lane-strided row copies -> lane-dense (h1, L_out).
                acc_scr[...] = acc
                for dd in range(Do):
                    for hh in range(Ho):
                        src = (stride * dd) * (H * W) + (stride * hh) * W
                        dst = (dd * Ho + hh) * Wo
                        dec_scr[:, dst:dst + Wo] = \
                            acc_scr[:, pl.ds(src, Wo, stride=stride)]
                dec = dec_scr[...]
                if L_out != S_out:                  # clear (stale) lane padding
                    lane = jax.lax.broadcasted_iota(jnp.int32, (1, L_out), 1)
                    dec = jnp.where(lane < S_out, dec, 0.0)
            else:
                # Fallback: lane-dense bf16 0/1 selection matmul (small S only).
                dec = jnp.dot(acc.astype(jnp.bfloat16), sel_ref[...],
                              preferred_element_type=jnp.float32)
            g = _leaky(_inorm(dec, S_out, None))
        else:
            g = _leaky(_inorm(acc, S_in, vmask1))

        y1 = jnp.dot(wp1_ref[...], g.astype(jnp.bfloat16),
                     preferred_element_type=jnp.float32)
        y1 = _inorm(y1, S_out, vmask2)
        if shortcut1:
            y1 = y1 + x                                    # stride==1, Cin==Cout

        # ---------------- MobileInvertedResidual #2 (stride=1) ----------------
        if expand:
            h2 = jnp.dot(we2_ref[...], y1.astype(jnp.bfloat16),
                         preferred_element_type=jnp.float32)
            h2 = _leaky(_inorm(h2, S_out, vmask2))
        else:
            h2 = y1

        acc2 = _dw3x3x3(h2, wd2_ref[...], crd2, Do, Ho, Wo, L_out)
        g2 = _leaky(_inorm(acc2, S_out, vmask2))

        y2 = jnp.dot(wp2_ref[...], g2.astype(jnp.bfloat16),
                     preferred_element_type=jnp.float32)
        y2 = _inorm(y2, S_out, vmask2)
        y2 = y2 + y1                       # block 2: stride 1, in==out shortcut

        o_ref[0] = y2.astype(o_ref.dtype)  # single lane-dense full-block store

    return kernel


# ---------------------------------------------------------------------------
# Wrapper-side constant helpers (layout / index bookkeeping only)
# ---------------------------------------------------------------------------
def _lane_coords(D, H, W, L):
    s = np.arange(L)
    d = s // (H * W)
    h = (s // W) % H
    w = s % W
    d = np.where(s < D * H * W, d, -(2 ** 20))       # mark lane padding invalid
    return jnp.asarray(np.stack([d, h, w]).astype(np.int32))


def _decimation_matrix(D, H, W, s, L_in, L_out):
    """Lane-dense (L_in, L_out) 0/1 selection matrix (bf16) -- fallback path."""
    Do, Ho, Wo = (D - 1) // s + 1, (H - 1) // s + 1, (W - 1) // s + 1
    j = np.arange(Do * Ho * Wo)
    src = ((s * (j // (Ho * Wo))) * (H * W)
           + (s * ((j // Wo) % Ho)) * W
           + s * (j % Wo))
    sel = np.zeros((L_in, L_out), np.float32)
    sel[src, j] = 1.0
    return jnp.asarray(sel, dtype=jnp.bfloat16)


def mobile_feature_block(x, params, *, stride, expand_ratio):
    """x: (N, C, D, H, W) float32 (PyTorch NCDHW). Returns (N, Cout, Do, Ho, Wo)."""
    N, Cin, D, H, W = x.shape
    S_in = D * H * W
    L_in = _round_up(S_in, LANE)
    Do, Ho, Wo = ((D - 1) // stride + 1, (H - 1) // stride + 1,
                  (W - 1) // stride + 1)
    S_out = Do * Ho * Wo
    L_out = _round_up(S_out, LANE)

    p1, p2 = params["b1"], params["b2"]
    h1 = p1["w_dw"].shape[0]
    Cout = p1["w_proj"].shape[0]
    expand = expand_ratio != 1
    shortcut1 = stride == 1 and Cin == Cout
    decim_strided = _LANE_STRIDED_OK

    xf = x.reshape(N, Cin, S_in)                 # NCDHW row-major -> free reshape
    if L_in != S_in:
        xf = jnp.pad(xf, ((0, 0), (0, 0), (0, L_in - S_in)))

    bf16 = jnp.bfloat16
    inputs = [xf]
    in_specs = [pl.BlockSpec((1, Cin, L_in), lambda n: (n, 0, 0))]

    def add_const(arr):
        inputs.append(arr)
        in_specs.append(_const_spec(arr.shape))

    if expand:
        add_const(p1["w_expand"].astype(bf16))
    add_const(p1["w_dw"].astype(jnp.float32))    # VPU operand: keep f32
    add_const(p1["w_proj"].astype(bf16))
    if expand:
        add_const(p2["w_expand"].astype(bf16))
    add_const(p2["w_dw"].astype(jnp.float32))
    add_const(p2["w_proj"].astype(bf16))
    add_const(_lane_coords(D, H, W, L_in))
    if stride > 1:
        add_const(_lane_coords(Do, Ho, Wo, L_out))
        if not decim_strided:
            add_const(_decimation_matrix(D, H, W, stride, L_in, L_out))

    kernel = _make_fused_kernel(
        expand=expand, shortcut1=shortcut1, stride=stride,
        decim_strided=decim_strided, D=D, H=H, W=W, S_in=S_in, L_in=L_in,
        Do=Do, Ho=Ho, Wo=Wo, S_out=S_out, L_out=L_out)

    scratch = []
    if stride > 1 and decim_strided:
        scratch = [pltpu.VMEM((h1, L_in), jnp.float32),
                   pltpu.VMEM((h1, L_out), jnp.float32)]

    out = pl.pallas_call(
        kernel,
        out_shape=jax.ShapeDtypeStruct((N, Cout, L_out), jnp.float32),
        grid=(N,),
        in_specs=in_specs,
        out_specs=pl.BlockSpec((1, Cout, L_out), lambda n: (n, 0, 0)),
        scratch_shapes=scratch,
        compiler_params=pltpu.CompilerParams(
            dimension_semantics=("parallel",),
            vmem_limit_bytes=_vmem_limit_bytes()),
    )(*inputs)

    return out[:, :, :S_out].reshape(N, Cout, Do, Ho, Wo)


# ---------------------------------------------------------------------------
# Pure-JAX reference (same weight convention) for a numerical self-check
# ---------------------------------------------------------------------------
def _ref_block(y, p, stride, expand_ratio):
    def inorm(z):
        m = jnp.mean(z, axis=(2, 3, 4), keepdims=True)
        v = jnp.mean(jnp.square(z - m), axis=(2, 3, 4), keepdims=True)
        return (z - m) / jnp.sqrt(v + EPS)

    def lrelu(z):
        return jnp.where(z >= 0, z, NEG_SLOPE * z)

    def pw(z, w):
        return jnp.einsum("oc,ncdhw->nodhw", w, z,
                          precision=jax.lax.Precision.HIGHEST)

    def dw(z, w, s):
        Nn, C, Dd, Hh, Ww = z.shape
        Do, Ho, Wo = (Dd - 1) // s + 1, (Hh - 1) // s + 1, (Ww - 1) // s + 1
        zp = jnp.pad(z, ((0, 0), (0, 0), (1, 1), (1, 1), (1, 1)))
        out = jnp.zeros((Nn, C, Do, Ho, Wo), jnp.float32)
        for kd in range(3):
            for kh in range(3):
                for kw in range(3):
                    t = kd * 9 + kh * 3 + kw
                    xs = zp[:, :, kd:kd + (Do - 1) * s + 1:s,
                            kh:kh + (Ho - 1) * s + 1:s,
                            kw:kw + (Wo - 1) * s + 1:s]
                    out = out + xs * w[:, t][None, :, None, None, None]
        return out

    Cin, Cout = y.shape[1], p["w_proj"].shape[0]
    shortcut = stride == 1 and Cin == Cout
    h = y
    if expand_ratio != 1:
        h = lrelu(inorm(pw(h, p["w_expand"])))
    h = lrelu(inorm(dw(h, p["w_dw"], stride)))
    h = inorm(pw(h, p["w_proj"]))
    return y + h if shortcut else h


def ref_mobile_feature_block(x, params, *, stride, expand_ratio):
    y = _ref_block(x, params["b1"], stride, expand_ratio)
    y = _ref_block(y, params["b2"], 1, expand_ratio)
    return y


# ---------------------------------------------------------------------------
if __name__ == "__main__":
    key = jax.random.PRNGKey(0)
    N, Cin, D, H, W = 2, 4, 8, 8, 8
    Cout, stride, expand = 8, 2, 2
    h1, h2 = Cin * expand, Cout * expand

    ks = jax.random.split(key, 7)
    # PyTorch-convention input (NCDHW); the Pallas wrapper flattens spatial (free).
    x = jax.random.normal(ks[0], (N, Cin, D, H, W), jnp.float32)

    params = {
        "b1": {
            "w_expand": 0.3 * jax.random.normal(ks[1], (h1, Cin), jnp.float32),
            "w_dw":     0.3 * jax.random.normal(ks[2], (h1, 27), jnp.float32),
            "w_proj":   0.3 * jax.random.normal(ks[3], (Cout, h1), jnp.float32),
        },
        "b2": {
            "w_expand": 0.3 * jax.random.normal(ks[4], (h2, Cout), jnp.float32),
            "w_dw":     0.3 * jax.random.normal(ks[5], (h2, 27), jnp.float32),
            "w_proj":   0.3 * jax.random.normal(ks[6], (Cout, h2), jnp.float32),
        },
    }

    run = jax.jit(functools.partial(mobile_feature_block,
                                    stride=stride, expand_ratio=expand))
    out = jax.block_until_ready(run(x, params))

    Do = (D - 1) // stride + 1
    assert out.shape == (N, Cout, Do, Do, Do), out.shape

    ref = ref_mobile_feature_block(x, params, stride=stride, expand_ratio=expand)
    err = float(jnp.max(jnp.abs(out - ref)))
    # 5e-2 tolerance accommodates bf16 MXU matmuls in the kernel vs. the
    # HIGHEST-precision pure-JAX reference.
    assert err < 5e-2, f"max abs error {err}"

    print("KERNEL_OK")
</pallas_src>

<mosaic_0001>
module attributes {stable_mosaic.version = 11 : i64} {
  func.func @_copy(%arg0: i32, %arg1: memref<8x128xf32, #tpu.memory_space<vmem>>, %arg2: memref<8x128xf32, #tpu.memory_space<vmem>>) attributes {dimension_semantics = [#tpu.dimension_semantics<arbitrary>], iteration_bounds = array<i64: 2>, scalar_prefetch = 0 : i64, scratch_operands = 0 : i64, tpu.core_type = #tpu.core_type<tc>, window_params = [{pipeline_mode = #tpu.pipeline_mode<synchronous>, transform_indices = @transform_0, window_bounds = array<i64: 8, 128>}, {pipeline_mode = #tpu.pipeline_mode<synchronous>, transform_indices = @transform_1, window_bounds = array<i64: 8, 128>}]} {
    %c0 = arith.constant 0 : index
    %c0_0 = arith.constant 0 : index
    %0 = vector.load %arg1[%c0, %c0_0] : memref<8x128xf32, #tpu.memory_space<vmem>>, vector<8x128xf32>
    %c0_1 = arith.constant 0 : index
    %c0_2 = arith.constant 0 : index
    %1 = vector.load %arg2[%c0_1, %c0_2] : memref<8x128xf32, #tpu.memory_space<vmem>>, vector<8x128xf32>
    tpu.vector_store %arg2[%c0_1, %c0_2], %0 {strides = array<i32>} : memref<8x128xf32, #tpu.memory_space<vmem>>, vector<8x128xf32>,
    return
  }
  func.func @transform_0(%arg0: i32) -> (i32, i32) {
    %c0_i32 = arith.constant 0 : i32
    %c0_i32_0 = arith.constant 0 : i32
    %c0_i32_1 = arith.constant 0 : i32
    return %c0_i32, %c0_i32_0 : i32, i32
  }
  func.func @transform_1(%arg0: i32) -> (i32, i32) {
    %c0_i32 = arith.constant 0 : i32
    %c0_i32_0 = arith.constant 0 : i32
    %c0_i32_1 = arith.constant 0 : i32
    return %c0_i32, %c0_i32_0 : i32, i32
  }
}

module attributes {stable_mosaic.version = 11 : i64} {
  func.func @_k(%arg0: memref<8x256xf32, #tpu.memory_space<vmem>>, %arg1: memref<8x4xf32, #tpu.memory_space<vmem>>) attributes {dimension_semantics = [], scalar_prefetch = 0 : i64, scratch_operands = 0 : i64, tpu.core_type = #tpu.core_type<tc>} {
    %c0 = arith.constant 0 : index
    %c5 = arith.constant 5 : index
    %0 = tpu.strided_load %arg0[%c0, %c5] {strides = array<i32: 1, 2>} : memref<8x256xf32, #tpu.memory_space<vmem>>, vector<8x4xf32>
    %c0_0 = arith.constant 0 : index
    %c0_1 = arith.constant 0 : index
    %1 = vector.load %arg1[%c0_0, %c0_1] : memref<8x4xf32, #tpu.memory_space<vmem>>, vector<8x4xf32>
    tpu.vector_store %arg1[%c0_0, %c0_1], %0 {strides = array<i32>} : memref<8x4xf32, #tpu.memory_space<vmem>>, vector<8x4xf32>,
    return
  }
}

module attributes {stable_mosaic.version = 11 : i64} {
  func.func @kernel(%arg0: i32, %arg1: memref<1x4x512xf32, #tpu.memory_space<vmem>>, %arg2: memref<8x4xbf16, #tpu.memory_space<vmem>>, %arg3: memref<8x27xf32, #tpu.memory_space<vmem>>, %arg4: memref<8x8xbf16, #tpu.memory_space<vmem>>, %arg5: memref<16x8xbf16, #tpu.memory_space<vmem>>, %arg6: memref<16x27xf32, #tpu.memory_space<vmem>>, %arg7: memref<8x16xbf16, #tpu.memory_space<vmem>>, %arg8: memref<3x512xi32, #tpu.memory_space<vmem>>, %arg9: memref<3x128xi32, #tpu.memory_space<vmem>>, %arg10: memref<512x128xbf16, #tpu.memory_space<vmem>>, %arg11: memref<1x8x128xf32, #tpu.memory_space<vmem>>) attributes {dimension_semantics = [#tpu.dimension_semantics<parallel>], iteration_bounds = array<i64: 2>, scalar_prefetch = 0 : i64, scratch_operands = 0 : i64, tpu.core_type = #tpu.core_type<tc>, window_params = [{transform_indices = @transform_0, window_bounds = array<i64: 1, 4, 512>}, {pipeline_mode = #tpu.pipeline_mode<synchronous>, transform_indices = @transform_1, window_bounds = array<i64: 8, 4>}, {pipeline_mode = #tpu.pipeline_mode<synchronous>, transform_indices = @transform_2, window_bounds = array<i64: 8, 27>}, {pipeline_mode = #tpu.pipeline_mode<synchronous>, transform_indices = @transform_3, window_bounds = array<i64: 8, 8>}, {pipeline_mode = #tpu.pipeline_mode<synchronous>, transform_indices = @transform_4, window_bounds = array<i64: 16, 8>}, {pipeline_mode = #tpu.pipeline_mode<synchronous>, transform_indices = @transform_5, window_bounds = array<i64: 16, 27>}, {pipeline_mode = #tpu.pipeline_mode<synchronous>, transform_indices = @transform_6, window_bounds = array<i64: 8, 16>}, {pipeline_mode = #tpu.pipeline_mode<synchronous>, transform_indices = @transform_7, window_bounds = array<i64: 3, 512>}, {pipeline_mode = #tpu.pipeline_mode<synchronous>, transform_indices = @transform_8, window_bounds = array<i64: 3, 128>}, {pipeline_mode = #tpu.pipeline_mode<synchronous>, transform_indices = @transform_9, window_bounds = array<i64: 512, 128>}, {transform_indices = @transform_10, window_bounds = array<i64: 1, 8, 128>}]} {
    %c0 = arith.constant 0 : index
    %c0_0 = arith.constant 0 : index
    %c0_1 = arith.constant 0 : index
    %0 = vector.load %arg1[%c0, %c0_0, %c0_1] : memref<1x4x512xf32, #tpu.memory_space<vmem>>, vector<1x4x512xf32>
    %1 = vector.shape_cast %0 : vector<1x4x512xf32> to vector<4x512xf32>
    %c0_2 = arith.constant 0 : index
    %c0_3 = arith.constant 0 : index
    %2 = vector.load %arg8[%c0_2, %c0_3] : memref<3x512xi32, #tpu.memory_space<vmem>>, vector<3x512xi32>
    %c0_4 = arith.constant 0 : index
    %c0_5 = arith.constant 0 : index
    %3 = vector.load %arg9[%c0_4, %c0_5] : memref<3x128xi32, #tpu.memory_space<vmem>>, vector<3x128xi32>
    %4 = vector.extract_strided_slice %3 {offsets = [0, 0], sizes = [1, 128], strides = [1, 1]} : vector<3x128xi32> to vector<1x128xi32>
    %c0_i32 = arith.constant 0 : i32
    %5 = vector.broadcast %c0_i32 : i32 to vector<1x128xi32>
    %6 = arith.cmpi sge, %4, %5 : vector<1x128xi32>
    %c0_6 = arith.constant 0 : index
    %c0_7 = arith.constant 0 : index
    %7 = vector.load %arg2[%c0_6, %c0_7] : memref<8x4xbf16, #tpu.memory_space<vmem>>, vector<8x4xbf16>
    %8 = arith.truncf %1 : vector<4x512xf32> to vector<4x512xbf16>
    %cst = arith.constant dense<0.000000e+00> : vector<8x512xf32>
    %9 = tpu.matmul %7, %8, %cst {dimension_numbers = #tpu.dot_dimension_numbers<[1], [0], [0], [1], [0, 0, 1, 1], [], []>} : vector<8x4xbf16>, vector<4x512xbf16>, vector<8x512xf32> -> vector<8x512xf32>
    %cst_8 = arith.constant dense<0.000000e+00> : vector<8xf32>
    %10 = vector.multi_reduction <add>, %9, %cst_8 [1] : vector<8x512xf32> to vector<8xf32>
    %11 = vector.shape_cast %10 : vector<8xf32> to vector<8x1xf32>
    %cst_9 = arith.constant 0.001953125 : f32
    %12 = vector.broadcast %cst_9 : f32 to vector<8x1xf32>
    %13 = arith.mulf %11, %12 : vector<8x1xf32>
    %14 = arith.mulf %9, %9 : vector<8x512xf32>
    %cst_10 = arith.constant dense<0.000000e+00> : vector<8xf32>
    %15 = vector.multi_reduction <add>, %14, %cst_10 [1] : vector<8x512xf32> to vector<8xf32>
    %16 = vector.shape_cast %15 : vector<8xf32> to vector<8x1xf32>
    %cst_11 = arith.constant 0.001953125 : f32
    %17 = vector.broadcast %cst_11 : f32 to vector<8x1xf32>
    %18 = arith.mulf %16, %17 : vector<8x1xf32>
    %19 = arith.mulf %13, %13 : vector<8x1xf32>
    %20 = arith.subf %18, %19 : vector<8x1xf32>
    %cst_12 = arith.constant 0.000000e+00 : f32
    %21 = vector.broadcast %cst_12 : f32 to vector<8x1xf32>
    %22 = arith.maximumf %20, %21 : vector<8x1xf32>
    %23 = vector.broadcast %13 : vector<8x1xf32> to vector<8x512xf32>
    %24 = arith.subf %9, %23 : vector<8x512xf32>
    %cst_13 = arith.constant 9.99999974E-6 : f32
    %25 = vector.broadcast %cst_13 : f32 to vector<8x1xf32>
    %26 = arith.addf %22, %25 : vector<8x1xf32>
    %27 = math.rsqrt %26 : vector<8x1xf32>
    %28 = vector.broadcast %27 : vector<8x1xf32> to vector<8x512xf32>
    %29 = arith.mulf %24, %28 : vector<8x512xf32>
    %cst_14 = arith.constant 0.000000e+00 : f32
    %30 = vector.broadcast %cst_14 : f32 to vector<8x512xf32>
    %31 = arith.cmpf oge, %29, %30 : vector<8x512xf32>
    %cst_15 = arith.constant 0.00999999977 : f32
    %32 = vector.broadcast %cst_15 : f32 to vector<8x512xf32>
    %33 = arith.mulf %32, %29 : vector<8x512xf32>
    %34 = arith.select %31, %29, %33 : vector<8x512xi1>, vector<8x512xf32>
    %c0_16 = arith.constant 0 : index
    %c0_17 = arith.constant 0 : index
    %35 = vector.load %arg3[%c0_16, %c0_17] : memref<8x27xf32, #tpu.memory_space<vmem>>, vector<8x27xf32>
    %36 = vector.extract_strided_slice %2 {offsets = [0, 0], sizes = [1, 512], strides = [1, 1]} : vector<3x512xi32> to vector<1x512xi32>
    %37 = vector.extract_strided_slice %2 {offsets = [1, 0], sizes = [1, 512], strides = [1, 1]} : vector<3x512xi32> to vector<1x512xi32>
    %38 = vector.extract_strided_slice %2 {offsets = [2, 0], sizes = [1, 512], strides = [1, 1]} : vector<3x512xi32> to vector<1x512xi32>
    %c-1_i32 = arith.constant -1 : i32
    %39 = vector.broadcast %c-1_i32 : i32 to vector<1x512xi32>
    %40 = arith.addi %36, %39 : vector<1x512xi32>
    %c0_i32_18 = arith.constant 0 : i32
    %41 = vector.broadcast %c0_i32_18 : i32 to vector<1x512xi32>
    %42 = arith.cmpi sge, %40, %41 : vector<1x512xi32>
    %c-1_i32_19 = arith.constant -1 : i32
    %43 = vector.broadcast %c-1_i32_19 : i32 to vector<1x512xi32>
    %44 = arith.addi %36, %43 : vector<1x512xi32>
    %c8_i32 = arith.constant 8 : i32
    %45 = vector.broadcast %c8_i32 : i32 to vector<1x512xi32>
    %46 = arith.cmpi slt, %44, %45 : vector<1x512xi32>
    %47 = arith.andi %42, %46 : vector<1x512xi1>
    %c0_i32_20 = arith.constant 0 : i32
    %48 = vector.broadcast %c0_i32_20 : i32 to vector<1x512xi32>
    %49 = arith.addi %36, %48 : vector<1x512xi32>
    %c0_i32_21 = arith.constant 0 : i32
    %50 = vector.broadcast %c0_i32_21 : i32 to vector<1x512xi32>
    %51 = arith.cmpi sge, %49, %50 : vector<1x512xi32>
    %c0_i32_22 = arith.constant 0 : i32
    %52 = vector.broadcast %c0_i32_22 : i32 to vector<1x512xi32>
    %53 = arith.addi %36, %52 : vector<1x512xi32>
    %c8_i32_23 = arith.constant 8 : i32
    %54 = vector.broadcast %c8_i32_23 : i32 to vector<1x512xi32>
    %55 = arith.cmpi slt, %53, %54 : vector<1x512xi32>
    %56 = arith.andi %51, %55 : vector<1x512xi1>
    %c1_i32 = arith.constant 1 : i32
    %57 = vector.broadcast %c1_i32 : i32 to vector<1x512xi32>
    %58 = arith.addi %36, %57 : vector<1x512xi32>
    %c0_i32_24 = arith.constant 0 : i32
    %59 = vector.broadcast %c0_i32_24 : i32 to vector<1x512xi32>
    %60 = arith.cmpi sge, %58, %59 : vector<1x512xi32>
    %c1_i32_25 = arith.constant 1 : i32
    %61 = vector.broadcast %c1_i32_25 : i32 to vector<1x512xi32>
    %62 = arith.addi %36, %61 : vector<1x512xi32>
    %c8_i32_26 = arith.constant 8 : i32
    %63 = vector.broadcast %c8_i32_26 : i32 to vector<1x512xi32>
    %64 = arith.cmpi slt, %62, %63 : vector<1x512xi32>
    %65 = arith.andi %60, %64 : vector<1x512xi1>
    %c-1_i32_27 = arith.constant -1 : i32
    %66 = vector.broadcast %c-1_i32_27 : i32 to vector<1x512xi32>
    %67 = arith.addi %37, %66 : vector<1x512xi32>
    %c0_i32_28 = arith.constant 0 : i32
    %68 = vector.broadcast %c0_i32_28 : i32 to vector<1x512xi32>
    %69 = arith.cmpi sge, %67, %68 : vector<1x512xi32>
    %c-1_i32_29 = arith.constant -1 : i32
    %70 = vector.broadcast %c-1_i32_29 : i32 to vector<1x512xi32>
    %71 = arith.addi %37, %70 : vector<1x512xi32>
    %c8_i32_30 = arith.constant 8 : i32
    %72 = vector.broadcast %c8_i32_30 : i32 to vector<1x512xi32>
    %73 = arith.cmpi slt, %71, %72 : vector<1x512xi32>
    %74 = arith.andi %69, %73 : vector<1x512xi1>
    %c0_i32_31 = arith.constant 0 : i32
    %75 = vector.broadcast %c0_i32_31 : i32 to vector<1x512xi32>
    %76 = arith.addi %37, %75 : vector<1x512xi32>
    %c0_i32_32 = arith.constant 0 : i32
    %77 = vector.broadcast %c0_i32_32 : i32 to vector<1x512xi32>
    %78 = arith.cmpi sge, %76, %77 : vector<1x512xi32>
    %c0_i32_33 = arith.constant 0 : i32
    %79 = vector.broadcast %c0_i32_33 : i32 to vector<1x512xi32>
    %80 = arith.addi %37, %79 : vector<1x512xi32>
    %c8_i32_34 = arith.constant 8 : i32
    %81 = vector.broadcast %c8_i32_34 : i32 to vector<1x512xi32>
    %82 = arith.cmpi slt, %80, %81 : vector<1x512xi32>
    %83 = arith.andi %78, %82 : vector<1x512xi1>
    %c1_i32_35 = arith.constant 1 : i32
    %84 = vector.broadcast %c1_i32_35 : i32 to vector<1x512xi32>
    %85 = arith.addi %37, %84 : vector<1x512xi32>
    %c0_i32_36 = arith.constant 0 : i32
    %86 = vector.broadcast %c0_i32_36 : i32 to vector<1x512xi32>
    %87 = arith.cmpi sge, %85, %86 : vector<1x512xi32>
    %c1_i32_37 = arith.constant 1 : i32
    %88 = vector.broadcast %c1_i32_37 : i32 to vector<1x512xi32>
    %89 = arith.addi %37, %88 : vector<1x512xi32>
    %c8_i32_38 = arith.constant 8 : i32
    %90 = vector.broadcast %c8_i32_38 : i32 to vector<1x512xi32>
    %91 = arith.cmpi slt, %89, %90 : vector<1x512xi32>
    %92 = arith.andi %87, %91 : vector<1x512xi1>
    %c-1_i32_39 = arith.constant -1 : i32
    %93 = vector.broadcast %c-1_i32_39 : i32 to vector<1x512xi32>
    %94 = arith.addi %38, %93 : vector<1x512xi32>
    %c0_i32_40 = arith.constant 0 : i32
    %95 = vector.broadcast %c0_i32_40 : i32 to vector<1x512xi32>
    %96 = arith.cmpi sge, %94, %95 : vector<1x512xi32>
    %c-1_i32_41 = arith.constant -1 : i32
    %97 = vector.broadcast %c-1_i32_41 : i32 to vector<1x512xi32>
    %98 = arith.addi %38, %97 : vector<1x512xi32>
    %c8_i32_42 = arith.constant 8 : i32
    %99 = vector.broadcast %c8_i32_42 : i32 to vector<1x512xi32>
    %100 = arith.cmpi slt, %98, %99 : vector<1x512xi32>
    %101 = arith.andi %96, %100 : vector<1x512xi1>
    %c0_i32_43 = arith.constant 0 : i32
    %102 = vector.broadcast %c0_i32_43 : i32 to vector<1x512xi32>
    %103 = arith.addi %38, %102 : vector<1x512xi32>
    %c0_i32_44 = arith.constant 0 : i32
    %104 = vector.broadcast %c0_i32_44 : i32 to vector<1x512xi32>
    %105 = arith.cmpi sge, %103, %104 : vector<1x512xi32>
    %c0_i32_45 = arith.constant 0 : i32
    %106 = vector.broadcast %c0_i32_45 : i32 to vector<1x512xi32>
    %107 = arith.addi %38, %106 : vector<1x512xi32>
    %c8_i32_46 = arith.constant 8 : i32
    %108 = vector.broadcast %c8_i32_46 : i32 to vector<1x512xi32>
    %109 = arith.cmpi slt, %107, %108 : vector<1x512xi32>
    %110 = arith.andi %105, %109 : vector<1x512xi1>
    %c1_i32_47 = arith.constant 1 : i32
    %111 = vector.broadcast %c1_i32_47 : i32 to vector<1x512xi32>
    %112 = arith.addi %38, %111 : vector<1x512xi32>
    %c0_i32_48 = arith.constant 0 : i32
    %113 = vector.broadcast %c0_i32_48 : i32 to vector<1x512xi32>
    %114 = arith.cmpi sge, %112, %113 : vector<1x512xi32>
    %c1_i32_49 = arith.constant 1 : i32
    %115 = vector.broadcast %c1_i32_49 : i32 to vector<1x512xi32>
    %116 = arith.addi %38, %115 : vector<1x512xi32>
    %c8_i32_50 = arith.constant 8 : i32
    %117 = vector.broadcast %c8_i32_50 : i32 to vector<1x512xi32>
    %118 = arith.cmpi slt, %116, %117 : vector<1x512xi32>
    %119 = arith.andi %114, %118 : vector<1x512xi1>
    %120 = arith.andi %47, %74 : vector<1x512xi1>
    %c73_i32 = arith.constant 73 : i32
    %121 = tpu.dynamic_rotate %34 by %c73_i32 dim 1 : vector<8x512xf32>, i32 -> vector<8x512xf32>
    %122 = vector.extract_strided_slice %35 {offsets = [0, 0], sizes = [8, 1], strides = [1, 1]} : vector<8x27xf32> to vector<8x1xf32>
    %123 = arith.andi %120, %101 : vector<1x512xi1>
    %cst_51 = arith.constant 0.000000e+00 : f32
    %124 = vector.shape_cast %123 : vector<1x512xi1> to vector<1x512xi1>
    %125 = vector.broadcast %124 : vector<1x512xi1> to vector<8x512xi1>
    %126 = vector.broadcast %cst_51 : f32 to vector<8x512xf32>
    %127 = arith.select %125, %121, %126 : vector<8x512xi1>, vector<8x512xf32>
    %128 = vector.broadcast %122 : vector<8x1xf32> to vector<8x512xf32>
    %129 = arith.mulf %127, %128 : vector<8x512xf32>
    %c72_i32 = arith.constant 72 : i32
    %130 = tpu.dynamic_rotate %34 by %c72_i32 dim 1 : vector<8x512xf32>, i32 -> vector<8x512xf32>
    %131 = vector.extract_strided_slice %35 {offsets = [0, 1], sizes = [8, 1], strides = [1, 1]} : vector<8x27xf32> to vector<8x1xf32>
    %132 = arith.andi %120, %110 : vector<1x512xi1>
    %cst_52 = arith.constant 0.000000e+00 : f32
    %133 = vector.shape_cast %132 : vector<1x512xi1> to vector<1x512xi1>
    %134 = vector.broadcast %133 : vector<1x512xi1> to vector<8x512xi1>
    %135 = vector.broadcast %cst_52 : f32 to vector<8x512xf32>
    %136 = arith.select %134, %130, %135 : vector<8x512xi1>, vector<8x512xf32>
    %137 = vector.broadcast %131 : vector<8x1xf32> to vector<8x512xf32>
    %138 = arith.mulf %136, %137 : vector<8x512xf32>
    %139 = arith.addf %129, %138 : vector<8x512xf32>
    %c71_i32 = arith.constant 71 : i32
    %140 = tpu.dynamic_rotate %34 by %c71_i32 dim 1 : vector<8x512xf32>, i32 -> vector<8x512xf32>
    %141 = vector.extract_strided_slice %35 {offsets = [0, 2], sizes = [8, 1], strides = [1, 1]} : vector<8x27xf32> to vector<8x1xf32>
    %142 = arith.andi %120, %119 : vector<1x512xi1>
    %cst_53 = arith.constant 0.000000e+00 : f32
    %143 = vector.shape_cast %142 : vector<1x512xi1> to vector<1x512xi1>
    %144 = vector.broadcast %143 : vector<1x512xi1> to vector<8x512xi1>
    %145 = vector.broadcast %cst_53 : f32 to vector<8x512xf32>
    %146 = arith.select %144, %140, %145 : vector<8x512xi1>, vector<8x512xf32>
    %147 = vector.broadcast %141 : vector<8x1xf32> to vector<8x512xf32>
    %148 = arith.mulf %146, %147 : vector<8x512xf32>
    %149 = arith.addf %139, %148 : vector<8x512xf32>
    %150 = arith.andi %47, %83 : vector<1x512xi1>
    %c65_i32 = arith.constant 65 : i32
    %151 = tpu.dynamic_rotate %34 by %c65_i32 dim 1 : vector<8x512xf32>, i32 -> vector<8x512xf32>
    %152 = vector.extract_strided_slice %35 {offsets = [0, 3], sizes = [8, 1], strides = [1, 1]} : vector<8x27xf32> to vector<8x1xf32>
    %153 = arith.andi %150, %101 : vector<1x512xi1>
    %cst_54 = arith.constant 0.000000e+00 : f32
    %154 = vector.shape_cast %153 : vector<1x512xi1> to vector<1x512xi1>
    %155 = vector.broadcast %154 : vector<1x512xi1> to vector<8x512xi1>
    %156 = vector.broadcast %cst_54 : f32 to vector<8x512xf32>
    %157 = arith.select %155, %151, %156 : vector<8x512xi1>, vector<8x512xf32>
    %158 = vector.broadcast %152 : vector<8x1xf32> to vector<8x512xf32>
    %159 = arith.mulf %157, %158 : vector<8x512xf32>
    %160 = arith.addf %149, %159 : vector<8x512xf32>
    %c64_i32 = arith.constant 64 : i32
    %161 = tpu.dynamic_rotate %34 by %c64_i32 dim 1 : vector<8x512xf32>, i32 -> vector<8x512xf32>
    %162 = vector.extract_strided_slice %35 {offsets = [0, 4], sizes = [8, 1], strides = [1, 1]} : vector<8x27xf32> to vector<8x1xf32>
    %163 = arith.andi %150, %110 : vector<1x512xi1>
    %cst_55 = arith.constant 0.000000e+00 : f32
    %164 = vector.shape_cast %163 : vector<1x512xi1> to vector<1x512xi1>
    %165 = vector.broadcast %164 : vector<1x512xi1> to vector<8x512xi1>
    %166 = vector.broadcast %cst_55 : f32 to vector<8x512xf32>
    %167 = arith.select %165, %161, %166 : vector<8x512xi1>, vector<8x512xf32>
    %168 = vector.broadcast %162 : vector<8x1xf32> to vector<8x512xf32>
    %169 = arith.mulf %167, %168 : vector<8x512xf32>
    %170 = arith.addf %160, %169 : vector<8x512xf32>
    %c63_i32 = arith.constant 63 : i32
    %171 = tpu.dynamic_rotate %34 by %c63_i32 dim 1 : vector<8x512xf32>, i32 -> vector<8x512xf32>
    %172 = vector.extract_strided_slice %35 {offsets = [0, 5], sizes = [8, 1], strides = [1, 1]} : vector<8x27xf32> to vector<8x1xf32>
    %173 = arith.andi %150, %119 : vector<1x512xi1>
    %cst_56 = arith.constant 0.000000e+00 : f32
    %174 = vector.shape_cast %173 : vector<1x512xi1> to vector<1x512xi1>
    %175 = vector.broadcast %174 : vector<1x512xi1> to vector<8x512xi1>
    %176 = vector.broadcast %cst_56 : f32 to vector<8x512xf32>
    %177 = arith.select %175, %171, %176 : vector<8x512xi1>, vector<8x512xf32>
    %178 = vector.broadcast %172 : vector<8x1xf32> to vector<8x512xf32>
    %179 = arith.mulf %177, %178 : vector<8x512xf32>
    %180 = arith.addf %170, %179 : vector<8x512xf32>
    %181 = arith.andi %47, %92 : vector<1x512xi1>
    %c57_i32 = arith.constant 57 : i32
    %182 = tpu.dynamic_rotate %34 by %c57_i32 dim 1 : vector<8x512xf32>, i32 -> vector<8x512xf32>
    %183 = vector.extract_strided_slice %35 {offsets = [0, 6], sizes = [8, 1], strides = [1, 1]} : vector<8x27xf32> to vector<8x1xf32>
    %184 = arith.andi %181, %101 : vector<1x512xi1>
    %cst_57 = arith.constant 0.000000e+00 : f32
    %185 = vector.shape_cast %184 : vector<1x512xi1> to vector<1x512xi1>
    %186 = vector.broadcast %185 : vector<1x512xi1> to vector<8x512xi1>
    %187 = vector.broadcast %cst_57 : f32 to vector<8x512xf32>
    %188 = arith.select %186, %182, %187 : vector<8x512xi1>, vector<8x512xf32>
    %189 = vector.broadcast %183 : vector<8x1xf32> to vector<8x512xf32>
    %190 = arith.mulf %188, %189 : vector<8x512xf32>
    %191 = arith.addf %180, %190 : vector<8x512xf32>
    %c56_i32 = arith.constant 56 : i32
    %192 = tpu.dynamic_rotate %34 by %c56_i32 dim 1 : vector<8x512xf32>, i32 -> vector<8x512xf32>
    %193 = vector.extract_strided_slice %35 {offsets = [0, 7], sizes = [8, 1], strides = [1, 1]} : vector<8x27xf32> to vector<8x1xf32>
    %194 = arith.andi %181, %110 : vector<1x512xi1>
    %cst_58 = arith.constant 0.000000e+00 : f32
    %195 = vector.shape_cast %194 : vector<1x512xi1> to vector<1x512xi1>
    %196 = vector.broadcast %195 : vector<1x512xi1> to vector<8x512xi1>
    %197 = vector.broadcast %cst_58 : f32 to vector<8x512xf32>
    %198 = arith.select %196, %192, %197 : vector<8x512xi1>, vector<8x512xf32>
    %199 = vector.broadcast %193 : vector<8x1xf32> to vector<8x512xf32>
    %200 = arith.mulf %198, %199 : vector<8x512xf32>
    %201 = arith.addf %191, %200 : vector<8x512xf32>
    %c55_i32 = arith.constant 55 : i32
    %202 = tpu.dynamic_rotate %34 by %c55_i32 dim 1 : vector<8x512xf32>, i32 -> vector<8x512xf32>
    %203 = vector.extract_strided_slice %35 {offsets = [0, 8], sizes = [8, 1], strides = [1, 1]} : vector<8x27xf32> to vector<8x1xf32>
    %204 = arith.andi %181, %119 : vector<1x512xi1>
    %cst_59 = arith.constant 0.000000e+00 : f32
    %205 = vector.shape_cast %204 : vector<1x512xi1> to vector<1x512xi1>
    %206 = vector.broadcast %205 : vector<1x512xi1> to vector<8x512xi1>
    %207 = vector.broadcast %cst_59 : f32 to vector<8x512xf32>
    %208 = arith.select %206, %202, %207 : vector<8x512xi1>, vector<8x512xf32>
    %209 = vector.broadcast %203 : vector<8x1xf32> to vector<8x512xf32>
    %210 = arith.mulf %208, %209 : vector<8x512xf32>
    %211 = arith.addf %201, %210 : vector<8x512xf32>
    %212 = arith.andi %56, %74 : vector<1x512xi1>
    %c9_i32 = arith.constant 9 : i32
    %213 = tpu.dynamic_rotate %34 by %c9_i32 dim 1 : vector<8x512xf32>, i32 -> vector<8x512xf32>
    %214 = vector.extract_strided_slice %35 {offsets = [0, 9], sizes = [8, 1], strides = [1, 1]} : vector<8x27xf32> to vector<8x1xf32>
    %215 = arith.andi %212, %101 : vector<1x512xi1>
    %cst_60 = arith.constant 0.000000e+00 : f32
    %216 = vector.shape_cast %215 : vector<1x512xi1> to vector<1x512xi1>
    %217 = vector.broadcast %216 : vector<1x512xi1> to vector<8x512xi1>
    %218 = vector.broadcast %cst_60 : f32 to vector<8x512xf32>
    %219 = arith.select %217, %213, %218 : vector<8x512xi1>, vector<8x512xf32>
    %220 = vector.broadcast %214 : vector<8x1xf32> to vector<8x512xf32>
    %221 = arith.mulf %219, %220 : vector<8x512xf32>
    %222 = arith.addf %211, %221 : vector<8x512xf32>
    %c8_i32_61 = arith.constant 8 : i32
    %223 = tpu.dynamic_rotate %34 by %c8_i32_61 dim 1 : vector<8x512xf32>, i32 -> vector<8x512xf32>
    %224 = vector.extract_strided_slice %35 {offsets = [0, 10], sizes = [8, 1], strides = [1, 1]} : vector<8x27xf32> to vector<8x1xf32>
    %225 = arith.andi %212, %110 : vector<1x512xi1>
    %cst_62 = arith.constant 0.000000e+00 : f32
    %226 = vector.shape_cast %225 : vector<1x512xi1> to vector<1x512xi1>
    %227 = vector.broadcast %226 : vector<1x512xi1> to vector<8x512xi1>
    %228 = vector.broadcast %cst_62 : f32 to vector<8x512xf32>
    %229 = arith.select %227, %223, %228 : vector<8x512xi1>, vector<8x512xf32>
    %230 = vector.broadcast %224 : vector<8x1xf32> to vector<8x512xf32>
    %231 = arith.mulf %229, %230 : vector<8x512xf32>
    %232 = arith.addf %222, %231 : vector<8x512xf32>
    %c7_i32 = arith.constant 7 : i32
    %233 = tpu.dynamic_rotate %34 by %c7_i32 dim 1 : vector<8x512xf32>, i32 -> vector<8x512xf32>
    %234 = vector.extract_strided_slice %35 {offsets = [0, 11], sizes = [8, 1], strides = [1, 1]} : vector<8x27xf32> to vector<8x1xf32>
    %235 = arith.andi %212, %119 : vector<1x512xi1>
    %cst_63 = arith.constant 0.000000e+00 : f32
    %236 = vector.shape_cast %235 : vector<1x512xi1> to vector<1x512xi1>
    %237 = vector.broadcast %236 : vector<1x512xi1> to vector<8x512xi1>
    %238 = vector.broadcast %cst_63 : f32 to vector<8x512xf32>
    %239 = arith.select %237, %233, %238 : vector<8x512xi1>, vector<8x512xf32>
    %240 = vector.broadcast %234 : vector<8x1xf32> to vector<8x512xf32>
    %241 = arith.mulf %239, %240 : vector<8x512xf32>
    %242 = arith.addf %232, %241 : vector<8x512xf32>
    %243 = arith.andi %56, %83 : vector<1x512xi1>
    %c1_i32_64 = arith.constant 1 : i32
    %244 = tpu.dynamic_rotate %34 by %c1_i32_64 dim 1 : vector<8x512xf32>, i32 -> vector<8x512xf32>
    %245 = vector.extract_strided_slice %35 {offsets = [0, 12], sizes = [8, 1], strides = [1, 1]} : vector<8x27xf32> to vector<8x1xf32>
    %246 = arith.andi %243, %101 : vector<1x512xi1>
    %cst_65 = arith.constant 0.000000e+00 : f32
    %247 = vector.shape_cast %246 : vector<1x512xi1> to vector<1x512xi1>
    %248 = vector.broadcast %247 : vector<1x512xi1> to vector<8x512xi1>
    %249 = vector.broadcast %cst_65 : f32 to vector<8x512xf32>
    %250 = arith.select %248, %244, %249 : vector<8x512xi1>, vector<8x512xf32>
    %251 = vector.broadcast %245 : vector<8x1xf32> to vector<8x512xf32>
    %252 = arith.mulf %250, %251 : vector<8x512xf32>
    %253 = arith.addf %242, %252 : vector<8x512xf32>
    %254 = vector.extract_strided_slice %35 {offsets = [0, 13], sizes = [8, 1], strides = [1, 1]} : vector<8x27xf32> to vector<8x1xf32>
    %255 = arith.andi %243, %110 : vector<1x512xi1>
    %cst_66 = arith.constant 0.000000e+00 : f32
    %256 = vector.shape_cast %255 : vector<1x512xi1> to vector<1x512xi1>
    %257 = vector.broadcast %256 : vector<1x512xi1> to vector<8x512xi1>
    %258 = vector.broadcast %cst_66 : f32 to vector<8x512xf32>
    %259 = arith.select %257, %34, %258 : vector<8x512xi1>, vector<8x512xf32>
    %260 = vector.broadcast %254 : vector<8x1xf32> to vector<8x512xf32>
    %261 = arith.mulf %259, %260 : vector<8x512xf32>
    %262 = arith.addf %253, %261 : vector<8x512xf32>
    %c511_i32 = arith.constant 511 : i32
    %263 = tpu.dynamic_rotate %34 by %c511_i32 dim 1 : vector<8x512xf32>, i32 -> vector<8x512xf32>
    %264 = vector.extract_strided_slice %35 {offsets = [0, 14], sizes = [8, 1], strides = [1, 1]} : vector<8x27xf32> to vector<8x1xf32>
    %265 = arith.andi %243, %119 : vector<1x512xi1>
    %cst_67 = arith.constant 0.000000e+00 : f32
    %266 = vector.shape_cast %265 : vector<1x512xi1> to vector<1x512xi1>
    %267 = vector.broadcast %266 : vector<1x512xi1> to vector<8x512xi1>
    %268 = vector.broadcast %cst_67 : f32 to vector<8x512xf32>
    %269 = arith.select %267, %263, %268 : vector<8x512xi1>, vector<8x512xf32>
    %270 = vector.broadcast %264 : vector<8x1xf32> to vector<8x512xf32>
    %271 = arith.mulf %269, %270 : vector<8x512xf32>
    %272 = arith.addf %262, %271 : vector<8x512xf32>
    %273 = arith.andi %56, %92 : vector<1x512xi1>
    %c505_i32 = arith.constant 505 : i32
    %274 = tpu.dynamic_rotate %34 by %c505_i32 dim 1 : vector<8x512xf32>, i32 -> vector<8x512xf32>
    %275 = vector.extract_strided_slice %35 {offsets = [0, 15], sizes = [8, 1], strides = [1, 1]} : vector<8x27xf32> to vector<8x1xf32>
    %276 = arith.andi %273, %101 : vector<1x512xi1>
    %cst_68 = arith.constant 0.000000e+00 : f32
    %277 = vector.shape_cast %276 : vector<1x512xi1> to vector<1x512xi1>
    %278 = vector.broadcast %277 : vector<1x512xi1> to vector<8x512xi1>
    %279 = vector.broadcast %cst_68 : f32 to vector<8x512xf32>
    %280 = arith.select %278, %274, %279 : vector<8x512xi1>, vector<8x512xf32>
    %281 = vector.broadcast %275 : vector<8x1xf32> to vector<8x512xf32>
    %282 = arith.mulf %280, %281 : vector<8x512xf32>
    %283 = arith.addf %272, %282 : vector<8x512xf32>
    %c504_i32 = arith.constant 504 : i32
    %284 = tpu.dynamic_rotate %34 by %c504_i32 dim 1 : vector<8x512xf32>, i32 -> vector<8x512xf32>
    %285 = vector.extract_strided_slice %35 {offsets = [0, 16], sizes = [8, 1], strides = [1, 1]} : vector<8x27xf32> to vector<8x1xf32>
    %286 = arith.andi %273, %110 : vector<1x512xi1>
    %cst_69 = arith.constant 0.000000e+00 : f32
    %287 = vector.shape_cast %286 : vector<1x512xi1> to vector<1x512xi1>
    %288 = vector.broadcast %287 : vector<1x512xi1> to vector<8x512xi1>
    %289 = vector.broadcast %cst_69 : f32 to vector<8x512xf32>
    %290 = arith.select %288, %284, %289 : vector<8x512xi1>, vector<8x512xf32>
    %291 = vector.broadcast %285 : vector<8x1xf32> to vector<8x512xf32>
    %292 = arith.mulf %290, %291 : vector<8x512xf32>
    %293 = arith.addf %283, %292 : vector<8x512xf32>
    %c503_i32 = arith.constant 503 : i32
    %294 = tpu.dynamic_rotate %34 by %c503_i32 dim 1 : vector<8x512xf32>, i32 -> vector<8x512xf32>
    %295 = vector.extract_strided_slice %35 {offsets = [0, 17], sizes = [8, 1], strides = [1, 1]} : vector<8x27xf32> to vector<8x1xf32>
    %296 = arith.andi %273, %119 : vector<1x512xi1>
    %cst_70 = arith.constant 0.000000e+00 : f32
    %297 = vector.shape_cast %296 : vector<1x512xi1> to vector<1x512xi1>
    %298 = vector.broadcast %297 : vector<1x512xi1> to vector<8x512xi1>
    %299 = vector.broadcast %cst_70 : f32 to vector<8x512xf32>
    %300 = arith.select %298, %294, %299 : vector<8x512xi1>, vector<8x512xf32>
    %301 = vector.broadcast %295 : vector<8x1xf32> to vector<8x512xf32>
    %302 = arith.mulf %300, %301 : vector<8x512xf32>
    %303 = arith.addf %293, %302 : vector<8x512xf32>
    %304 = arith.andi %65, %74 : vector<1x512xi1>
    %c457_i32 = arith.constant 457 : i32
    %305 = tpu.dynamic_rotate %34 by %c457_i32 dim 1 : vector<8x512xf32>, i32 -> vector<8x512xf32>
    %306 = vector.extract_strided_slice %35 {offsets = [0, 18], sizes = [8, 1], strides = [1, 1]} : vector<8x27xf32> to vector<8x1xf32>
    %307 = arith.andi %304, %101 : vector<1x512xi1>
    %cst_71 = arith.constant 0.000000e+00 : f32
    %308 = vector.shape_cast %307 : vector<1x512xi1> to vector<1x512xi1>
    %309 = vector.broadcast %308 : vector<1x512xi1> to vector<8x512xi1>
    %310 = vector.broadcast %cst_71 : f32 to vector<8x512xf32>
    %311 = arith.select %309, %305, %310 : vector<8x512xi1>, vector<8x512xf32>
    %312 = vector.broadcast %306 : vector<8x1xf32> to vector<8x512xf32>
    %313 = arith.mulf %311, %312 : vector<8x512xf32>
    %314 = arith.addf %303, %313 : vector<8x512xf32>
    %c456_i32 = arith.constant 456 : i32
    %315 = tpu.dynamic_rotate %34 by %c456_i32 dim 1 : vector<8x512xf32>, i32 -> vector<8x512xf32>
    %316 = vector.extract_strided_slice %35 {offsets = [0, 19], sizes = [8, 1], strides = [1, 1]} : vector<8x27xf32> to vector<8x1xf32>
    %317 = arith.andi %304, %110 : vector<1x512xi1>
    %cst_72 = arith.constant 0.000000e+00 : f32
    %318 = vector.shape_cast %317 : vector<1x512xi1> to vector<1x512xi1>
    %319 = vector.broadcast %318 : vector<1x512xi1> to vector<8x512xi1>
    %320 = vector.broadcast %cst_72 : f32 to vector<8x512xf32>
    %321 = arith.select %319, %315, %320 : vector<8x512xi1>, vector<8x512xf32>
    %322 = vector.broadcast %316 : vector<8x1xf32> to vector<8x512xf32>
    %323 = arith.mulf %321, %322 : vector<8x512xf32>
    %324 = arith.addf %314, %323 : vector<8x512xf32>
    %c455_i32 = arith.constant 455 : i32
    %325 = tpu.dynamic_rotate %34 by %c455_i32 dim 1 : vector<8x512xf32>, i32 -> vector<8x512xf32>
    %326 = vector.extract_strided_slice %35 {offsets = [0, 20], sizes = [8, 1], strides = [1, 1]} : vector<8x27xf32> to vector<8x1xf32>
    %327 = arith.andi %304, %119 : vector<1x512xi1>
    %cst_73 = arith.constant 0.000000e+00 : f32
    %328 = vector.shape_cast %327 : vector<1x512xi1> to vector<1x512xi1>
    %329 = vector.broadcast %328 : vector<1x512xi1> to vector<8x512xi1>
    %330 = vector.broadcast %cst_73 : f32 to vector<8x512xf32>
    %331 = arith.select %329, %325, %330 : vector<8x512xi1>, vector<8x512xf32>
    %332 = vector.broadcast %326 : vector<8x1xf32> to vector<8x512xf32>
    %333 = arith.mulf %331, %332 : vector<8x512xf32>
    %334 = arith.addf %324, %333 : vector<8x512xf32>
    %335 = arith.andi %65, %83 : vector<1x512xi1>
    %c449_i32 = arith.constant 449 : i32
    %336 = tpu.dynamic_rotate %34 by %c449_i32 dim 1 : vector<8x512xf32>, i32 -> vector<8x512xf32>
    %337 = vector.extract_strided_slice %35 {offsets = [0, 21], sizes = [8, 1], strides = [1, 1]} : vector<8x27xf32> to vector<8x1xf32>
    %338 = arith.andi %335, %101 : vector<1x512xi1>
    %cst_74 = arith.constant 0.000000e+00 : f32
    %339 = vector.shape_cast %338 : vector<1x512xi1> to vector<1x512xi1>
    %340 = vector.broadcast %339 : vector<1x512xi1> to vector<8x512xi1>
    %341 = vector.broadcast %cst_74 : f32 to vector<8x512xf32>
    %342 = arith.select %340, %336, %341 : vector<8x512xi1>, vector<8x512xf32>
    %343 = vector.broadcast %337 : vector<8x1xf32> to vector<8x512xf32>
    %344 = arith.mulf %342, %343 : vector<8x512xf32>
    %345 = arith.addf %334, %344 : vector<8x512xf32>
    %c448_i32 = arith.constant 448 : i32
    %346 = tpu.dynamic_rotate %34 by %c448_i32 dim 1 : vector<8x512xf32>, i32 -> vector<8x512xf32>
    %347 = vector.extract_strided_slice %35 {offsets = [0, 22], sizes = [8, 1], strides = [1, 1]} : vector<8x27xf32> to vector<8x1xf32>
    %348 = arith.andi %335, %110 : vector<1x512xi1>
    %cst_75 = arith.constant 0.000000e+00 : f32
    %349 = vector.shape_cast %348 : vector<1x512xi1> to vector<1x512xi1>
    %350 = vector.broadcast %349 : vector<1x512xi1> to vector<8x512xi1>
    %351 = vector.broadcast %cst_75 : f32 to vector<8x512xf32>
    %352 = arith.select %350, %346, %351 : vector<8x512xi1>, vector<8x512xf32>
    %353 = vector.broadcast %347 : vector<8x1xf32> to vector<8x512xf32>
    %354 = arith.mulf %352, %353 : vector<8x512xf32>
    %355 = arith.addf %345, %354 : vector<8x512xf32>
    %c447_i32 = arith.constant 447 : i32
    %356 = tpu.dynamic_rotate %34 by %c447_i32 dim 1 : vector<8x512xf32>, i32 -> vector<8x512xf32>
    %357 = vector.extract_strided_slice %35 {offsets = [0, 23], sizes = [8, 1], strides = [1, 1]} : vector<8x27xf32> to vector<8x1xf32>
    %358 = arith.andi %335, %119 : vector<1x512xi1>
    %cst_76 = arith.constant 0.000000e+00 : f32
    %359 = vector.shape_cast %358 : vector<1x512xi1> to vector<1x512xi1>
    %360 = vector.broadcast %359 : vector<1x512xi1> to vector<8x512xi1>
    %361 = vector.broadcast %cst_76 : f32 to vector<8x512xf32>
    %362 = arith.select %360, %356, %361 : vector<8x512xi1>, vector<8x512xf32>
    %363 = vector.broadcast %357 : vector<8x1xf32> to vector<8x512xf32>
    %364 = arith.mulf %362, %363 : vector<8x512xf32>
    %365 = arith.addf %355, %364 : vector<8x512xf32>
    %366 = arith.andi %65, %92 : vector<1x512xi1>
    %c441_i32 = arith.constant 441 : i32
    %367 = tpu.dynamic_rotate %34 by %c441_i32 dim 1 : vector<8x512xf32>, i32 -> vector<8x512xf32>
    %368 = vector.extract_strided_slice %35 {offsets = [0, 24], sizes = [8, 1], strides = [1, 1]} : vector<8x27xf32> to vector<8x1xf32>
    %369 = arith.andi %366, %101 : vector<1x512xi1>
    %cst_77 = arith.constant 0.000000e+00 : f32
    %370 = vector.shape_cast %369 : vector<1x512xi1> to vector<1x512xi1>
    %371 = vector.broadcast %370 : vector<1x512xi1> to vector<8x512xi1>
    %372 = vector.broadcast %cst_77 : f32 to vector<8x512xf32>
    %373 = arith.select %371, %367, %372 : vector<8x512xi1>, vector<8x512xf32>
    %374 = vector.broadcast %368 : vector<8x1xf32> to vector<8x512xf32>
    %375 = arith.mulf %373, %374 : vector<8x512xf32>
    %376 = arith.addf %365, %375 : vector<8x512xf32>
    %c440_i32 = arith.constant 440 : i32
    %377 = tpu.dynamic_rotate %34 by %c440_i32 dim 1 : vector<8x512xf32>, i32 -> vector<8x512xf32>
    %378 = vector.extract_strided_slice %35 {offsets = [0, 25], sizes = [8, 1], strides = [1, 1]} : vector<8x27xf32> to vector<8x1xf32>
    %379 = arith.andi %366, %110 : vector<1x512xi1>
    %cst_78 = arith.constant 0.000000e+00 : f32
    %380 = vector.shape_cast %379 : vector<1x512xi1> to vector<1x512xi1>
    %381 = vector.broadcast %380 : vector<1x512xi1> to vector<8x512xi1>
    %382 = vector.broadcast %cst_78 : f32 to vector<8x512xf32>
    %383 = arith.select %381, %377, %382 : vector<8x512xi1>, vector<8x512xf32>
    %384 = vector.broadcast %378 : vector<8x1xf32> to vector<8x512xf32>
    %385 = arith.mulf %383, %384 : vector<8x512xf32>
    %386 = arith.addf %376, %385 : vector<8x512xf32>
    %c439_i32 = arith.constant 439 : i32
    %387 = tpu.dynamic_rotate %34 by %c439_i32 dim 1 : vector<8x512xf32>, i32 -> vector<8x512xf32>
    %388 = vector.extract_strided_slice %35 {offsets = [0, 26], sizes = [8, 1], strides = [1, 1]} : vector<8x27xf32> to vector<8x1xf32>
    %389 = arith.andi %366, %119 : vector<1x512xi1>
    %cst_79 = arith.constant 0.000000e+00 : f32
    %390 = vector.shape_cast %389 : vector<1x512xi1> to vector<1x512xi1>
    %391 = vector.broadcast %390 : vector<1x512xi1> to vector<8x512xi1>
    %392 = vector.broadcast %cst_79 : f32 to vector<8x512xf32>
    %393 = arith.select %391, %387, %392 : vector<8x512xi1>, vector<8x512xf32>
    %394 = vector.broadcast %388 : vector<8x1xf32> to vector<8x512xf32>
    %395 = arith.mulf %393, %394 : vector<8x512xf32>
    %396 = arith.addf %386, %395 : vector<8x512xf32>
    %397 = arith.truncf %396 : vector<8x512xf32> to vector<8x512xbf16>
    %c0_80 = arith.constant 0 : index
    %c0_81 = arith.constant 0 : index
    %398 = vector.load %arg10[%c0_80, %c0_81] : memref<512x128xbf16, #tpu.memory_space<vmem>>, vector<512x128xbf16>
    %cst_82 = arith.constant dense<0.000000e+00> : vector<8x128xf32>
    %399 = tpu.matmul %397, %398, %cst_82 {dimension_numbers = #tpu.dot_dimension_numbers<[1], [0], [0], [1], [0, 0, 1, 1], [], []>} : vector<8x512xbf16>, vector<512x128xbf16>, vector<8x128xf32> -> vector<8x128xf32>
    %cst_83 = arith.constant dense<0.000000e+00> : vector<8xf32>
    %400 = vector.multi_reduction <add>, %399, %cst_83 [1] : vector<8x128xf32> to vector<8xf32>
    %401 = vector.shape_cast %400 : vector<8xf32> to vector<8x1xf32>
    %cst_84 = arith.constant 1.562500e-02 : f32
    %402 = vector.broadcast %cst_84 : f32 to vector<8x1xf32>
    %403 = arith.mulf %401, %402 : vector<8x1xf32>
    %404 = arith.mulf %399, %399 : vector<8x128xf32>
    %cst_85 = arith.constant dense<0.000000e+00> : vector<8xf32>
    %405 = vector.multi_reduction <add>, %404, %cst_85 [1] : vector<8x128xf32> to vector<8xf32>
    %406 = vector.shape_cast %405 : vector<8xf32> to vector<8x1xf32>
    %cst_86 = arith.constant 1.562500e-02 : f32
    %407 = vector.broadcast %cst_86 : f32 to vector<8x1xf32>
    %408 = arith.mulf %406, %407 : vector<8x1xf32>
    %409 = arith.mulf %403, %403 : vector<8x1xf32>
    %410 = arith.subf %408, %409 : vector<8x1xf32>
    %cst_87 = arith.constant 0.000000e+00 : f32
    %411 = vector.broadcast %cst_87 : f32 to vector<8x1xf32>
    %412 = arith.maximumf %410, %411 : vector<8x1xf32>
    %413 = vector.broadcast %403 : vector<8x1xf32> to vector<8x128xf32>
    %414 = arith.subf %399, %413 : vector<8x128xf32>
    %cst_88 = arith.constant 9.99999974E-6 : f32
    %415 = vector.broadcast %cst_88 : f32 to vector<8x1xf32>
    %416 = arith.addf %412, %415 : vector<8x1xf32>
    %417 = math.rsqrt %416 : vector<8x1xf32>
    %418 = vector.broadcast %417 : vector<8x1xf32> to vector<8x128xf32>
    %419 = arith.mulf %414, %418 : vector<8x128xf32>
    %cst_89 = arith.constant 0.000000e+00 : f32
    %420 = vector.broadcast %cst_89 : f32 to vector<8x128xf32>
    %421 = arith.cmpf oge, %419, %420 : vector<8x128xf32>
    %cst_90 = arith.constant 0.00999999977 : f32
    %422 = vector.broadcast %cst_90 : f32 to vector<8x128xf32>
    %423 = arith.mulf %422, %419 : vector<8x128xf32>
    %424 = arith.select %421, %419, %423 : vector<8x128xi1>, vector<8x128xf32>
    %c0_91 = arith.constant 0 : index
    %c0_92 = arith.constant 0 : index
    %425 = vector.load %arg4[%c0_91, %c0_92] : memref<8x8xbf16, #tpu.memory_space<vmem>>, vector<8x8xbf16>
    %426 = arith.truncf %424 : vector<8x128xf32> to vector<8x128xbf16>
    %cst_93 = arith.constant dense<0.000000e+00> : vector<8x128xf32>
    %427 = tpu.matmul %425, %426, %cst_93 {dimension_numbers = #tpu.dot_dimension_numbers<[1], [0], [0], [1], [0, 0, 1, 1], [], []>} : vector<8x8xbf16>, vector<8x128xbf16>, vector<8x128xf32> -> vector<8x128xf32>
    %cst_94 = arith.constant 0.000000e+00 : f32
    %428 = vector.shape_cast %6 : vector<1x128xi1> to vector<1x128xi1>
    %429 = vector.broadcast %428 : vector<1x128xi1> to vector<8x128xi1>
    %430 = vector.broadcast %cst_94 : f32 to vector<8x128xf32>
    %431 = arith.select %429, %427, %430 : vector<8x128xi1>, vector<8x128xf32>
    %cst_95 = arith.constant dense<0.000000e+00> : vector<8xf32>
    %432 = vector.multi_reduction <add>, %431, %cst_95 [1] : vector<8x128xf32> to vector<8xf32>
    %433 = vector.shape_cast %432 : vector<8xf32> to vector<8x1xf32>
    %cst_96 = arith.constant 1.562500e-02 : f32
    %434 = vector.broadcast %cst_96 : f32 to vector<8x1xf32>
    %435 = arith.mulf %433, %434 : vector<8x1xf32>
    %436 = arith.mulf %431, %431 : vector<8x128xf32>
    %cst_97 = arith.constant dense<0.000000e+00> : vector<8xf32>
    %437 = vector.multi_reduction <add>, %436, %cst_97 [1] : vector<8x128xf32> to vector<8xf32>
    %438 = vector.shape_cast %437 : vector<8xf32> to vector<8x1xf32>
    %cst_98 = arith.constant 1.562500e-02 : f32
    %439 = vector.broadcast %cst_98 : f32 to vector<8x1xf32>
    %440 = arith.mulf %438, %439 : vector<8x1xf32>
    %441 = arith.mulf %435, %435 : vector<8x1xf32>
    %442 = arith.subf %440, %441 : vector<8x1xf32>
    %cst_99 = arith.constant 0.000000e+00 : f32
    %443 = vector.broadcast %cst_99 : f32 to vector<8x1xf32>
    %444 = arith.maximumf %442, %443 : vector<8x1xf32>
    %445 = vector.broadcast %435 : vector<8x1xf32> to vector<8x128xf32>
    %446 = arith.subf %427, %445 : vector<8x128xf32>
    %cst_100 = arith.constant 9.99999974E-6 : f32
    %447 = vector.broadcast %cst_100 : f32 to vector<8x1xf32>
    %448 = arith.addf %444, %447 : vector<8x1xf32>
    %449 = math.rsqrt %448 : vector<8x1xf32>
    %450 = vector.broadcast %449 : vector<8x1xf32> to vector<8x128xf32>
    %451 = arith.mulf %446, %450 : vector<8x128xf32>
    %c0_101 = arith.constant 0 : index
    %c0_102 = arith.constant 0 : index
    %452 = vector.load %arg5[%c0_101, %c0_102] : memref<16x8xbf16, #tpu.memory_space<vmem>>, vector<16x8xbf16>
    %453 = arith.truncf %451 : vector<8x128xf32> to vector<8x128xbf16>
    %cst_103 = arith.constant dense<0.000000e+00> : vector<16x128xf32>
    %454 = tpu.matmul %452, %453, %cst_103 {dimension_numbers = #tpu.dot_dimension_numbers<[1], [0], [0], [1], [0, 0, 1, 1], [], []>} : vector<16x8xbf16>, vector<8x128xbf16>, vector<16x128xf32> -> vector<16x128xf32>
    %cst_104 = arith.constant 0.000000e+00 : f32
    %455 = vector.shape_cast %6 : vector<1x128xi1> to vector<1x128xi1>
    %456 = vector.broadcast %455 : vector<1x128xi1> to vector<16x128xi1>
    %457 = vector.broadcast %cst_104 : f32 to vector<16x128xf32>
    %458 = arith.select %456, %454, %457 : vector<16x128xi1>, vector<16x128xf32>
    %cst_105 = arith.constant dense<0.000000e+00> : vector<16xf32>
    %459 = vector.multi_reduction <add>, %458, %cst_105 [1] : vector<16x128xf32> to vector<16xf32>
    %460 = vector.shape_cast %459 : vector<16xf32> to vector<16x1xf32>
    %cst_106 = arith.constant 1.562500e-02 : f32
    %461 = vector.broadcast %cst_106 : f32 to vector<16x1xf32>
    %462 = arith.mulf %460, %461 : vector<16x1xf32>
    %463 = arith.mulf %458, %458 : vector<16x128xf32>
    %cst_107 = arith.constant dense<0.000000e+00> : vector<16xf32>
    %464 = vector.multi_reduction <add>, %463, %cst_107 [1] : vector<16x128xf32> to vector<16xf32>
    %465 = vector.shape_cast %464 : vector<16xf32> to vector<16x1xf32>
    %cst_108 = arith.constant 1.562500e-02 : f32
    %466 = vector.broadcast %cst_108 : f32 to vector<16x1xf32>
    %467 = arith.mulf %465, %466 : vector<16x1xf32>
    %468 = arith.mulf %462, %462 : vector<16x1xf32>
    %469 = arith.subf %467, %468 : vector<16x1xf32>
    %cst_109 = arith.constant 0.000000e+00 : f32
    %470 = vector.broadcast %cst_109 : f32 to vector<16x1xf32>
    %471 = arith.maximumf %469, %470 : vector<16x1xf32>
    %472 = vector.broadcast %462 : vector<16x1xf32> to vector<16x128xf32>
    %473 = arith.subf %454, %472 : vector<16x128xf32>
    %cst_110 = arith.constant 9.99999974E-6 : f32
    %474 = vector.broadcast %cst_110 : f32 to vector<16x1xf32>
    %475 = arith.addf %471, %474 : vector<16x1xf32>
    %476 = math.rsqrt %475 : vector<16x1xf32>
    %477 = vector.broadcast %476 : vector<16x1xf32> to vector<16x128xf32>
    %478 = arith.mulf %473, %477 : vector<16x128xf32>
    %cst_111 = arith.constant 0.000000e+00 : f32
    %479 = vector.broadcast %cst_111 : f32 to vector<16x128xf32>
    %480 = arith.cmpf oge, %478, %479 : vector<16x128xf32>
    %cst_112 = arith.constant 0.00999999977 : f32
    %481 = vector.broadcast %cst_112 : f32 to vector<16x128xf32>
    %482 = arith.mulf %481, %478 : vector<16x128xf32>
    %483 = arith.select %480, %478, %482 : vector<16x128xi1>, vector<16x128xf32>
    %c0_113 = arith.constant 0 : index
    %c0_114 = arith.constant 0 : index
    %484 = vector.load %arg6[%c0_113, %c0_114] : memref<16x27xf32, #tpu.memory_space<vmem>>, vector<16x27xf32>
    %485 = vector.extract_strided_slice %3 {offsets = [0, 0], sizes = [1, 128], strides = [1, 1]} : vector<3x128xi32> to vector<1x128xi32>
    %486 = vector.extract_strided_slice %3 {offsets = [1, 0], sizes = [1, 128], strides = [1, 1]} : vector<3x128xi32> to vector<1x128xi32>
    %487 = vector.extract_strided_slice %3 {offsets = [2, 0], sizes = [1, 128], strides = [1, 1]} : vector<3x128xi32> to vector<1x128xi32>
    %c-1_i32_115 = arith.constant -1 : i32
    %488 = vector.broadcast %c-1_i32_115 : i32 to vector<1x128xi32>
    %489 = arith.addi %485, %488 : vector<1x128xi32>
    %c0_i32_116 = arith.constant 0 : i32
    %490 = vector.broadcast %c0_i32_116 : i32 to vector<1x128xi32>
    %491 = arith.cmpi sge, %489, %490 : vector<1x128xi32>
    %c-1_i32_117 = arith.constant -1 : i32
    %492 = vector.broadcast %c-1_i32_117 : i32 to vector<1x128xi32>
    %493 = arith.addi %485, %492 : vector<1x128xi32>
    %c4_i32 = arith.constant 4 : i32
    %494 = vector.broadcast %c4_i32 : i32 to vector<1x128xi32>
    %495 = arith.cmpi slt, %493, %494 : vector<1x128xi32>
    %496 = arith.andi %491, %495 : vector<1x128xi1>
    %c0_i32_118 = arith.constant 0 : i32
    %497 = vector.broadcast %c0_i32_118 : i32 to vector<1x128xi32>
    %498 = arith.addi %485, %497 : vector<1x128xi32>
    %c0_i32_119 = arith.constant 0 : i32
    %499 = vector.broadcast %c0_i32_119 : i32 to vector<1x128xi32>
    %500 = arith.cmpi sge, %498, %499 : vector<1x128xi32>
    %c0_i32_120 = arith.constant 0 : i32
    %501 = vector.broadcast %c0_i32_120 : i32 to vector<1x128xi32>
    %502 = arith.addi %485, %501 : vector<1x128xi32>
    %c4_i32_121 = arith.constant 4 : i32
    %503 = vector.broadcast %c4_i32_121 : i32 to vector<1x128xi32>
    %504 = arith.cmpi slt, %502, %503 : vector<1x128xi32>
    %505 = arith.andi %500, %504 : vector<1x128xi1>
    %c1_i32_122 = arith.constant 1 : i32
    %506 = vector.broadcast %c1_i32_122 : i32 to vector<1x128xi32>
    %507 = arith.addi %485, %506 : vector<1x128xi32>
    %c0_i32_123 = arith.constant 0 : i32
    %508 = vector.broadcast %c0_i32_123 : i32 to vector<1x128xi32>
    %509 = arith.cmpi sge, %507, %508 : vector<1x128xi32>
    %c1_i32_124 = arith.constant 1 : i32
    %510 = vector.broadcast %c1_i32_124 : i32 to vector<1x128xi32>
    %511 = arith.addi %485, %510 : vector<1x128xi32>
    %c4_i32_125 = arith.constant 4 : i32
    %512 = vector.broadcast %c4_i32_125 : i32 to vector<1x128xi32>
    %513 = arith.cmpi slt, %511, %512 : vector<1x128xi32>
    %514 = arith.andi %509, %513 : vector<1x128xi1>
    %c-1_i32_126 = arith.constant -1 : i32
    %515 = vector.broadcast %c-1_i32_126 : i32 to vector<1x128xi32>
    %516 = arith.addi %486, %515 : vector<1x128xi32>
    %c0_i32_127 = arith.constant 0 : i32
    %517 = vector.broadcast %c0_i32_127 : i32 to vector<1x128xi32>
    %518 = arith.cmpi sge, %516, %517 : vector<1x128xi32>
    %c-1_i32_128 = arith.constant -1 : i32
    %519 = vector.broadcast %c-1_i32_128 : i32 to vector<1x128xi32>
    %520 = arith.addi %486, %519 : vector<1x128xi32>
    %c4_i32_129 = arith.constant 4 : i32
    %521 = vector.broadcast %c4_i32_129 : i32 to vector<1x128xi32>
    %522 = arith.cmpi slt, %520, %521 : vector<1x128xi32>
    %523 = arith.andi %518, %522 : vector<1x128xi1>
    %c0_i32_130 = arith.constant 0 : i32
    %524 = vector.broadcast %c0_i32_130 : i32 to vector<1x128xi32>
    %525 = arith.addi %486, %524 : vector<1x128xi32>
    %c0_i32_131 = arith.constant 0 : i32
    %526 = vector.broadcast %c0_i32_131 : i32 to vector<1x128xi32>
    %527 = arith.cmpi sge, %525, %526 : vector<1x128xi32>
    %c0_i32_132 = arith.constant 0 : i32
    %528 = vector.broadcast %c0_i32_132 : i32 to vector<1x128xi32>
    %529 = arith.addi %486, %528 : vector<1x128xi32>
    %c4_i32_133 = arith.constant 4 : i32
    %530 = vector.broadcast %c4_i32_133 : i32 to vector<1x128xi32>
    %531 = arith.cmpi slt, %529, %530 : vector<1x128xi32>
    %532 = arith.andi %527, %531 : vector<1x128xi1>
    %c1_i32_134 = arith.constant 1 : i32
    %533 = vector.broadcast %c1_i32_134 : i32 to vector<1x128xi32>
    %534 = arith.addi %486, %533 : vector<1x128xi32>
    %c0_i32_135 = arith.constant 0 : i32
    %535 = vector.broadcast %c0_i32_135 : i32 to vector<1x128xi32>
    %536 = arith.cmpi sge, %534, %535 : vector<1x128xi32>
    %c1_i32_136 = arith.constant 1 : i32
    %537 = vector.broadcast %c1_i32_136 : i32 to vector<1x128xi32>
    %538 = arith.addi %486, %537 : vector<1x128xi32>
    %c4_i32_137 = arith.constant 4 : i32
    %539 = vector.broadcast %c4_i32_137 : i32 to vector<1x128xi32>
    %540 = arith.cmpi slt, %538, %539 : vector<1x128xi32>
    %541 = arith.andi %536, %540 : vector<1x128xi1>
    %c-1_i32_138 = arith.constant -1 : i32
    %542 = vector.broadcast %c-1_i32_138 : i32 to vector<1x128xi32>
    %543 = arith.addi %487, %542 : vector<1x128xi32>
    %c0_i32_139 = arith.constant 0 : i32
    %544 = vector.broadcast %c0_i32_139 : i32 to vector<1x128xi32>
    %545 = arith.cmpi sge, %543, %544 : vector<1x128xi32>
    %c-1_i32_140 = arith.constant -1 : i32
    %546 = vector.broadcast %c-1_i32_140 : i32 to vector<1x128xi32>
    %547 = arith.addi %487, %546 : vector<1x128xi32>
    %c4_i32_141 = arith.constant 4 : i32
    %548 = vector.broadcast %c4_i32_141 : i32 to vector<1x128xi32>
    %549 = arith.cmpi slt, %547, %548 : vector<1x128xi32>
    %550 = arith.andi %545, %549 : vector<1x128xi1>
    %c0_i32_142 = arith.constant 0 : i32
    %551 = vector.broadcast %c0_i32_142 : i32 to vector<1x128xi32>
    %552 = arith.addi %487, %551 : vector<1x128xi32>
    %c0_i32_143 = arith.constant 0 : i32
    %553 = vector.broadcast %c0_i32_143 : i32 to vector<1x128xi32>
    %554 = arith.cmpi sge, %552, %553 : vector<1x128xi32>
    %c0_i32_144 = arith.constant 0 : i32
    %555 = vector.broadcast %c0_i32_144 : i32 to vector<1x128xi32>
    %556 = arith.addi %487, %555 : vector<1x128xi32>
    %c4_i32_145 = arith.constant 4 : i32
    %557 = vector.broadcast %c4_i32_145 : i32 to vector<1x128xi32>
    %558 = arith.cmpi slt, %556, %557 : vector<1x128xi32>
    %559 = arith.andi %554, %558 : vector<1x128xi1>
    %c1_i32_146 = arith.constant 1 : i32
    %560 = vector.broadcast %c1_i32_146 : i32 to vector<1x128xi32>
    %561 = arith.addi %487, %560 : vector<1x128xi32>
    %c0_i32_147 = arith.constant 0 : i32
    %562 = vector.broadcast %c0_i32_147 : i32 to vector<1x128xi32>
    %563 = arith.cmpi sge, %561, %562 : vector<1x128xi32>
    %c1_i32_148 = arith.constant 1 : i32
    %564 = vector.broadcast %c1_i32_148 : i32 to vector<1x128xi32>
    %565 = arith.addi %487, %564 : vector<1x128xi32>
    %c4_i32_149 = arith.constant 4 : i32
    %566 = vector.broadcast %c4_i32_149 : i32 to vector<1x128xi32>
    %567 = arith.cmpi slt, %565, %566 : vector<1x128xi32>
    %568 = arith.andi %563, %567 : vector<1x128xi1>
    %569 = arith.andi %496, %523 : vector<1x128xi1>
    %c21_i32 = arith.constant 21 : i32
    %570 = tpu.dynamic_rotate %483 by %c21_i32 dim 1 : vector<16x128xf32>, i32 -> vector<16x128xf32>
    %571 = vector.extract_strided_slice %484 {offsets = [0, 0], sizes = [16, 1], strides = [1, 1]} : vector<16x27xf32> to vector<16x1xf32>
    %572 = arith.andi %569, %550 : vector<1x128xi1>
    %cst_150 = arith.constant 0.000000e+00 : f32
    %573 = vector.shape_cast %572 : vector<1x128xi1> to vector<1x128xi1>
    %574 = vector.broadcast %573 : vector<1x128xi1> to vector<16x128xi1>
    %575 = vector.broadcast %cst_150 : f32 to vector<16x128xf32>
    %576 = arith.select %574, %570, %575 : vector<16x128xi1>, vector<16x128xf32>
    %577 = vector.broadcast %571 : vector<16x1xf32> to vector<16x128xf32>
    %578 = arith.mulf %576, %577 : vector<16x128xf32>
    %c20_i32 = arith.constant 20 : i32
    %579 = tpu.dynamic_rotate %483 by %c20_i32 dim 1 : vector<16x128xf32>, i32 -> vector<16x128xf32>
    %580 = vector.extract_strided_slice %484 {offsets = [0, 1], sizes = [16, 1], strides = [1, 1]} : vector<16x27xf32> to vector<16x1xf32>
    %581 = arith.andi %569, %559 : vector<1x128xi1>
    %cst_151 = arith.constant 0.000000e+00 : f32
    %582 = vector.shape_cast %581 : vector<1x128xi1> to vector<1x128xi1>
    %583 = vector.broadcast %582 : vector<1x128xi1> to vector<16x128xi1>
    %584 = vector.broadcast %cst_151 : f32 to vector<16x128xf32>
    %585 = arith.select %583, %579, %584 : vector<16x128xi1>, vector<16x128xf32>
    %586 = vector.broadcast %580 : vector<16x1xf32> to vector<16x128xf32>
    %587 = arith.mulf %585, %586 : vector<16x128xf32>
    %588 = arith.addf %578, %587 : vector<16x128xf32>
    %c19_i32 = arith.constant 19 : i32
    %589 = tpu.dynamic_rotate %483 by %c19_i32 dim 1 : vector<16x128xf32>, i32 -> vector<16x128xf32>
    %590 = vector.extract_strided_slice %484 {offsets = [0, 2], sizes = [16, 1], strides = [1, 1]} : vector<16x27xf32> to vector<16x1xf32>
    %591 = arith.andi %569, %568 : vector<1x128xi1>
    %cst_152 = arith.constant 0.000000e+00 : f32
    %592 = vector.shape_cast %591 : vector<1x128xi1> to vector<1x128xi1>
    %593 = vector.broadcast %592 : vector<1x128xi1> to vector<16x128xi1>
    %594 = vector.broadcast %cst_152 : f32 to vector<16x128xf32>
    %595 = arith.select %593, %589, %594 : vector<16x128xi1>, vector<16x128xf32>
    %596 = vector.broadcast %590 : vector<16x1xf32> to vector<16x128xf32>
    %597 = arith.mulf %595, %596 : vector<16x128xf32>
    %598 = arith.addf %588, %597 : vector<16x128xf32>
    %599 = arith.andi %496, %532 : vector<1x128xi1>
    %c17_i32 = arith.constant 17 : i32
    %600 = tpu.dynamic_rotate %483 by %c17_i32 dim 1 : vector<16x128xf32>, i32 -> vector<16x128xf32>
    %601 = vector.extract_strided_slice %484 {offsets = [0, 3], sizes = [16, 1], strides = [1, 1]} : vector<16x27xf32> to vector<16x1xf32>
    %602 = arith.andi %599, %550 : vector<1x128xi1>
    %cst_153 = arith.constant 0.000000e+00 : f32
    %603 = vector.shape_cast %602 : vector<1x128xi1> to vector<1x128xi1>
    %604 = vector.broadcast %603 : vector<1x128xi1> to vector<16x128xi1>
    %605 = vector.broadcast %cst_153 : f32 to vector<16x128xf32>
    %606 = arith.select %604, %600, %605 : vector<16x128xi1>, vector<16x128xf32>
    %607 = vector.broadcast %601 : vector<16x1xf32> to vector<16x128xf32>
    %608 = arith.mulf %606, %607 : vector<16x128xf32>
    %609 = arith.addf %598, %608 : vector<16x128xf32>
    %c16_i32 = arith.constant 16 : i32
    %610 = tpu.dynamic_rotate %483 by %c16_i32 dim 1 : vector<16x128xf32>, i32 -> vector<16x128xf32>
    %611 = vector.extract_strided_slice %484 {offsets = [0, 4], sizes = [16, 1], strides = [1, 1]} : vector<16x27xf32> to vector<16x1xf32>
    %612 = arith.andi %599, %559 : vector<1x128xi1>
    %cst_154 = arith.constant 0.000000e+00 : f32
    %613 = vector.shape_cast %612 : vector<1x128xi1> to vector<1x128xi1>
    %614 = vector.broadcast %613 : vector<1x128xi1> to vector<16x128xi1>
    %615 = vector.broadcast %cst_154 : f32 to vector<16x128xf32>
    %616 = arith.select %614, %610, %615 : vector<16x128xi1>, vector<16x128xf32>
    %617 = vector.broadcast %611 : vector<16x1xf32> to vector<16x128xf32>
    %618 = arith.mulf %616, %617 : vector<16x128xf32>
    %619 = arith.addf %609, %618 : vector<16x128xf32>
    %c15_i32 = arith.constant 15 : i32
    %620 = tpu.dynamic_rotate %483 by %c15_i32 dim 1 : vector<16x128xf32>, i32 -> vector<16x128xf32>
    %621 = vector.extract_strided_slice %484 {offsets = [0, 5], sizes = [16, 1], strides = [1, 1]} : vector<16x27xf32> to vector<16x1xf32>
    %622 = arith.andi %599, %568 : vector<1x128xi1>
    %cst_155 = arith.constant 0.000000e+00 : f32
    %623 = vector.shape_cast %622 : vector<1x128xi1> to vector<1x128xi1>
    %624 = vector.broadcast %623 : vector<1x128xi1> to vector<16x128xi1>
    %625 = vector.broadcast %cst_155 : f32 to vector<16x128xf32>
    %626 = arith.select %624, %620, %625 : vector<16x128xi1>, vector<16x128xf32>
    %627 = vector.broadcast %621 : vector<16x1xf32> to vector<16x128xf32>
    %628 = arith.mulf %626, %627 : vector<16x128xf32>
    %629 = arith.addf %619, %628 : vector<16x128xf32>
    %630 = arith.andi %496, %541 : vector<1x128xi1>
    %c13_i32 = arith.constant 13 : i32
    %631 = tpu.dynamic_rotate %483 by %c13_i32 dim 1 : vector<16x128xf32>, i32 -> vector<16x128xf32>
    %632 = vector.extract_strided_slice %484 {offsets = [0, 6], sizes = [16, 1], strides = [1, 1]} : vector<16x27xf32> to vector<16x1xf32>
    %633 = arith.andi %630, %550 : vector<1x128xi1>
    %cst_156 = arith.constant 0.000000e+00 : f32
    %634 = vector.shape_cast %633 : vector<1x128xi1> to vector<1x128xi1>
    %635 = vector.broadcast %634 : vector<1x128xi1> to vector<16x128xi1>
    %636 = vector.broadcast %cst_156 : f32 to vector<16x128xf32>
    %637 = arith.select %635, %631, %636 : vector<16x128xi1>, vector<16x128xf32>
    %638 = vector.broadcast %632 : vector<16x1xf32> to vector<16x128xf32>
    %639 = arith.mulf %637, %638 : vector<16x128xf32>
    %640 = arith.addf %629, %639 : vector<16x128xf32>
    %c12_i32 = arith.constant 12 : i32
    %641 = tpu.dynamic_rotate %483 by %c12_i32 dim 1 : vector<16x128xf32>, i32 -> vector<16x128xf32>
    %642 = vector.extract_strided_slice %484 {offsets = [0, 7], sizes = [16, 1], strides = [1, 1]} : vector<16x27xf32> to vector<16x1xf32>
    %643 = arith.andi %630, %559 : vector<1x128xi1>
    %cst_157 = arith.constant 0.000000e+00 : f32
    %644 = vector.shape_cast %643 : vector<1x128xi1> to vector<1x128xi1>
    %645 = vector.broadcast %644 : vector<1x128xi1> to vector<16x128xi1>
    %646 = vector.broadcast %cst_157 : f32 to vector<16x128xf32>
    %647 = arith.select %645, %641, %646 : vector<16x128xi1>, vector<16x128xf32>
    %648 = vector.broadcast %642 : vector<16x1xf32> to vector<16x128xf32>
    %649 = arith.mulf %647, %648 : vector<16x128xf32>
    %650 = arith.addf %640, %649 : vector<16x128xf32>
    %c11_i32 = arith.constant 11 : i32
    %651 = tpu.dynamic_rotate %483 by %c11_i32 dim 1 : vector<16x128xf32>, i32 -> vector<16x128xf32>
    %652 = vector.extract_strided_slice %484 {offsets = [0, 8], sizes = [16, 1], strides = [1, 1]} : vector<16x27xf32> to vector<16x1xf32>
    %653 = arith.andi %630, %568 : vector<1x128xi1>
    %cst_158 = arith.constant 0.000000e+00 : f32
    %654 = vector.shape_cast %653 : vector<1x128xi1> to vector<1x128xi1>
    %655 = vector.broadcast %654 : vector<1x128xi1> to vector<16x128xi1>
    %656 = vector.broadcast %cst_158 : f32 to vector<16x128xf32>
    %657 = arith.select %655, %651, %656 : vector<16x128xi1>, vector<16x128xf32>
    %658 = vector.broadcast %652 : vector<16x1xf32> to vector<16x128xf32>
    %659 = arith.mulf %657, %658 : vector<16x128xf32>
    %660 = arith.addf %650, %659 : vector<16x128xf32>
    %661 = arith.andi %505, %523 : vector<1x128xi1>
    %c5_i32 = arith.constant 5 : i32
    %662 = tpu.dynamic_rotate %483 by %c5_i32 dim 1 : vector<16x128xf32>, i32 -> vector<16x128xf32>
    %663 = vector.extract_strided_slice %484 {offsets = [0, 9], sizes = [16, 1], strides = [1, 1]} : vector<16x27xf32> to vector<16x1xf32>
    %664 = arith.andi %661, %550 : vector<1x128xi1>
    %cst_159 = arith.constant 0.000000e+00 : f32
    %665 = vector.shape_cast %664 : vector<1x128xi1> to vector<1x128xi1>
    %666 = vector.broadcast %665 : vector<1x128xi1> to vector<16x128xi1>
    %667 = vector.broadcast %cst_159 : f32 to vector<16x128xf32>
    %668 = arith.select %666, %662, %667 : vector<16x128xi1>, vector<16x128xf32>
    %669 = vector.broadcast %663 : vector<16x1xf32> to vector<16x128xf32>
    %670 = arith.mulf %668, %669 : vector<16x128xf32>
    %671 = arith.addf %660, %670 : vector<16x128xf32>
    %c4_i32_160 = arith.constant 4 : i32
    %672 = tpu.dynamic_rotate %483 by %c4_i32_160 dim 1 : vector<16x128xf32>, i32 -> vector<16x128xf32>
    %673 = vector.extract_strided_slice %484 {offsets = [0, 10], sizes = [16, 1], strides = [1, 1]} : vector<16x27xf32> to vector<16x1xf32>
    %674 = arith.andi %661, %559 : vector<1x128xi1>
    %cst_161 = arith.constant 0.000000e+00 : f32
    %675 = vector.shape_cast %674 : vector<1x128xi1> to vector<1x128xi1>
    %676 = vector.broadcast %675 : vector<1x128xi1> to vector<16x128xi1>
    %677 = vector.broadcast %cst_161 : f32 to vector<16x128xf32>
    %678 = arith.select %676, %672, %677 : vector<16x128xi1>, vector<16x128xf32>
    %679 = vector.broadcast %673 : vector<16x1xf32> to vector<16x128xf32>
    %680 = arith.mulf %678, %679 : vector<16x128xf32>
    %681 = arith.addf %671, %680 : vector<16x128xf32>
    %c3_i32 = arith.constant 3 : i32
    %682 = tpu.dynamic_rotate %483 by %c3_i32 dim 1 : vector<16x128xf32>, i32 -> vector<16x128xf32>
    %683 = vector.extract_strided_slice %484 {offsets = [0, 11], sizes = [16, 1], strides = [1, 1]} : vector<16x27xf32> to vector<16x1xf32>
    %684 = arith.andi %661, %568 : vector<1x128xi1>
    %cst_162 = arith.constant 0.000000e+00 : f32
    %685 = vector.shape_cast %684 : vector<1x128xi1> to vector<1x128xi1>
    %686 = vector.broadcast %685 : vector<1x128xi1> to vector<16x128xi1>
    %687 = vector.broadcast %cst_162 : f32 to vector<16x128xf32>
    %688 = arith.select %686, %682, %687 : vector<16x128xi1>, vector<16x128xf32>
    %689 = vector.broadcast %683 : vector<16x1xf32> to vector<16x128xf32>
    %690 = arith.mulf %688, %689 : vector<16x128xf32>
    %691 = arith.addf %681, %690 : vector<16x128xf32>
    %692 = arith.andi %505, %532 : vector<1x128xi1>
    %c1_i32_163 = arith.constant 1 : i32
    %693 = tpu.dynamic_rotate %483 by %c1_i32_163 dim 1 : vector<16x128xf32>, i32 -> vector<16x128xf32>
    %694 = vector.extract_strided_slice %484 {offsets = [0, 12], sizes = [16, 1], strides = [1, 1]} : vector<16x27xf32> to vector<16x1xf32>
    %695 = arith.andi %692, %550 : vector<1x128xi1>
    %cst_164 = arith.constant 0.000000e+00 : f32
    %696 = vector.shape_cast %695 : vector<1x128xi1> to vector<1x128xi1>
    %697 = vector.broadcast %696 : vector<1x128xi1> to vector<16x128xi1>
    %698 = vector.broadcast %cst_164 : f32 to vector<16x128xf32>
    %699 = arith.select %697, %693, %698 : vector<16x128xi1>, vector<16x128xf32>
    %700 = vector.broadcast %694 : vector<16x1xf32> to vector<16x128xf32>
    %701 = arith.mulf %699, %700 : vector<16x128xf32>
    %702 = arith.addf %691, %701 : vector<16x128xf32>
    %703 = vector.extract_strided_slice %484 {offsets = [0, 13], sizes = [16, 1], strides = [1, 1]} : vector<16x27xf32> to vector<16x1xf32>
    %704 = arith.andi %692, %559 : vector<1x128xi1>
    %cst_165 = arith.constant 0.000000e+00 : f32
    %705 = vector.shape_cast %704 : vector<1x128xi1> to vector<1x128xi1>
    %706 = vector.broadcast %705 : vector<1x128xi1> to vector<16x128xi1>
    %707 = vector.broadcast %cst_165 : f32 to vector<16x128xf32>
    %708 = arith.select %706, %483, %707 : vector<16x128xi1>, vector<16x128xf32>
    %709 = vector.broadcast %703 : vector<16x1xf32> to vector<16x128xf32>
    %710 = arith.mulf %708, %709 : vector<16x128xf32>
    %711 = arith.addf %702, %710 : vector<16x128xf32>
    %c127_i32 = arith.constant 127 : i32
    %712 = tpu.dynamic_rotate %483 by %c127_i32 dim 1 : vector<16x128xf32>, i32 -> vector<16x128xf32>
    %713 = vector.extract_strided_slice %484 {offsets = [0, 14], sizes = [16, 1], strides = [1, 1]} : vector<16x27xf32> to vector<16x1xf32>
    %714 = arith.andi %692, %568 : vector<1x128xi1>
    %cst_166 = arith.constant 0.000000e+00 : f32
    %715 = vector.shape_cast %714 : vector<1x128xi1> to vector<1x128xi1>
    %716 = vector.broadcast %715 : vector<1x128xi1> to vector<16x128xi1>
    %717 = vector.broadcast %cst_166 : f32 to vector<16x128xf32>
    %718 = arith.select %716, %712, %717 : vector<16x128xi1>, vector<16x128xf32>
    %719 = vector.broadcast %713 : vector<16x1xf32> to vector<16x128xf32>
    %720 = arith.mulf %718, %719 : vector<16x128xf32>
    %721 = arith.addf %711, %720 : vector<16x128xf32>
    %722 = arith.andi %505, %541 : vector<1x128xi1>
    %c125_i32 = arith.constant 125 : i32
    %723 = tpu.dynamic_rotate %483 by %c125_i32 dim 1 : vector<16x128xf32>, i32 -> vector<16x128xf32>
    %724 = vector.extract_strided_slice %484 {offsets = [0, 15], sizes = [16, 1], strides = [1, 1]} : vector<16x27xf32> to vector<16x1xf32>
    %725 = arith.andi %722, %550 : vector<1x128xi1>
    %cst_167 = arith.constant 0.000000e+00 : f32
    %726 = vector.shape_cast %725 : vector<1x128xi1> to vector<1x128xi1>
    %727 = vector.broadcast %726 : vector<1x128xi1> to vector<16x128xi1>
    %728 = vector.broadcast %cst_167 : f32 to vector<16x128xf32>
    %729 = arith.select %727, %723, %728 : vector<16x128xi1>, vector<16x128xf32>
    %730 = vector.broadcast %724 : vector<16x1xf32> to vector<16x128xf32>
    %731 = arith.mulf %729, %730 : vector<16x128xf32>
    %732 = arith.addf %721, %731 : vector<16x128xf32>
    %c124_i32 = arith.constant 124 : i32
    %733 = tpu.dynamic_rotate %483 by %c124_i32 dim 1 : vector<16x128xf32>, i32 -> vector<16x128xf32>
    %734 = vector.extract_strided_slice %484 {offsets = [0, 16], sizes = [16, 1], strides = [1, 1]} : vector<16x27xf32> to vector<16x1xf32>
    %735 = arith.andi %722, %559 : vector<1x128xi1>
    %cst_168 = arith.constant 0.000000e+00 : f32
    %736 = vector.shape_cast %735 : vector<1x128xi1> to vector<1x128xi1>
    %737 = vector.broadcast %736 : vector<1x128xi1> to vector<16x128xi1>
    %738 = vector.broadcast %cst_168 : f32 to vector<16x128xf32>
    %739 = arith.select %737, %733, %738 : vector<16x128xi1>, vector<16x128xf32>
    %740 = vector.broadcast %734 : vector<16x1xf32> to vector<16x128xf32>
    %741 = arith.mulf %739, %740 : vector<16x128xf32>
    %742 = arith.addf %732, %741 : vector<16x128xf32>
    %c123_i32 = arith.constant 123 : i32
    %743 = tpu.dynamic_rotate %483 by %c123_i32 dim 1 : vector<16x128xf32>, i32 -> vector<16x128xf32>
    %744 = vector.extract_strided_slice %484 {offsets = [0, 17], sizes = [16, 1], strides = [1, 1]} : vector<16x27xf32> to vector<16x1xf32>
    %745 = arith.andi %722, %568 : vector<1x128xi1>
    %cst_169 = arith.constant 0.000000e+00 : f32
    %746 = vector.shape_cast %745 : vector<1x128xi1> to vector<1x128xi1>
    %747 = vector.broadcast %746 : vector<1x128xi1> to vector<16x128xi1>
    %748 = vector.broadcast %cst_169 : f32 to vector<16x128xf32>
    %749 = arith.select %747, %743, %748 : vector<16x128xi1>, vector<16x128xf32>
    %750 = vector.broadcast %744 : vector<16x1xf32> to vector<16x128xf32>
    %751 = arith.mulf %749, %750 : vector<16x128xf32>
    %752 = arith.addf %742, %751 : vector<16x128xf32>
    %753 = arith.andi %514, %523 : vector<1x128xi1>
    %c117_i32 = arith.constant 117 : i32
    %754 = tpu.dynamic_rotate %483 by %c117_i32 dim 1 : vector<16x128xf32>, i32 -> vector<16x128xf32>
    %755 = vector.extract_strided_slice %484 {offsets = [0, 18], sizes = [16, 1], strides = [1, 1]} : vector<16x27xf32> to vector<16x1xf32>
    %756 = arith.andi %753, %550 : vector<1x128xi1>
    %cst_170 = arith.constant 0.000000e+00 : f32
    %757 = vector.shape_cast %756 : vector<1x128xi1> to vector<1x128xi1>
    %758 = vector.broadcast %757 : vector<1x128xi1> to vector<16x128xi1>
    %759 = vector.broadcast %cst_170 : f32 to vector<16x128xf32>
    %760 = arith.select %758, %754, %759 : vector<16x128xi1>, vector<16x128xf32>
    %761 = vector.broadcast %755 : vector<16x1xf32> to vector<16x128xf32>
    %762 = arith.mulf %760, %761 : vector<16x128xf32>
    %763 = arith.addf %752, %762 : vector<16x128xf32>
    %c116_i32 = arith.constant 116 : i32
    %764 = tpu.dynamic_rotate %483 by %c116_i32 dim 1 : vector<16x128xf32>, i32 -> vector<16x128xf32>
    %765 = vector.extract_strided_slice %484 {offsets = [0, 19], sizes = [16, 1], strides = [1, 1]} : vector<16x27xf32> to vector<16x1xf32>
    %766 = arith.andi %753, %559 : vector<1x128xi1>
    %cst_171 = arith.constant 0.000000e+00 : f32
    %767 = vector.shape_cast %766 : vector<1x128xi1> to vector<1x128xi1>
    %768 = vector.broadcast %767 : vector<1x128xi1> to vector<16x128xi1>
    %769 = vector.broadcast %cst_171 : f32 to vector<16x128xf32>
    %770 = arith.select %768, %764, %769 : vector<16x128xi1>, vector<16x128xf32>
    %771 = vector.broadcast %765 : vector<16x1xf32> to vector<16x128xf32>
    %772 = arith.mulf %770, %771 : vector<16x128xf32>
    %773 = arith.addf %763, %772 : vector<16x128xf32>
    %c115_i32 = arith.constant 115 : i32
    %774 = tpu.dynamic_rotate %483 by %c115_i32 dim 1 : vector<16x128xf32>, i32 -> vector<16x128xf32>
    %775 = vector.extract_strided_slice %484 {offsets = [0, 20], sizes = [16, 1], strides = [1, 1]} : vector<16x27xf32> to vector<16x1xf32>
    %776 = arith.andi %753, %568 : vector<1x128xi1>
    %cst_172 = arith.constant 0.000000e+00 : f32
    %777 = vector.shape_cast %776 : vector<1x128xi1> to vector<1x128xi1>
    %778 = vector.broadcast %777 : vector<1x128xi1> to vector<16x128xi1>
    %779 = vector.broadcast %cst_172 : f32 to vector<16x128xf32>
    %780 = arith.select %778, %774, %779 : vector<16x128xi1>, vector<16x128xf32>
    %781 = vector.broadcast %775 : vector<16x1xf32> to vector<16x128xf32>
    %782 = arith.mulf %780, %781 : vector<16x128xf32>
    %783 = arith.addf %773, %782 : vector<16x128xf32>
    %784 = arith.andi %514, %532 : vector<1x128xi1>
    %c113_i32 = arith.constant 113 : i32
    %785 = tpu.dynamic_rotate %483 by %c113_i32 dim 1 : vector<16x128xf32>, i32 -> vector<16x128xf32>
    %786 = vector.extract_strided_slice %484 {offsets = [0, 21], sizes = [16, 1], strides = [1, 1]} : vector<16x27xf32> to vector<16x1xf32>
    %787 = arith.andi %784, %550 : vector<1x128xi1>
    %cst_173 = arith.constant 0.000000e+00 : f32
    %788 = vector.shape_cast %787 : vector<1x128xi1> to vector<1x128xi1>
    %789 = vector.broadcast %788 : vector<1x128xi1> to vector<16x128xi1>
    %790 = vector.broadcast %cst_173 : f32 to vector<16x128xf32>
    %791 = arith.select %789, %785, %790 : vector<16x128xi1>, vector<16x128xf32>
    %792 = vector.broadcast %786 : vector<16x1xf32> to vector<16x128xf32>
    %793 = arith.mulf %791, %792 : vector<16x128xf32>
    %794 = arith.addf %783, %793 : vector<16x128xf32>
    %c112_i32 = arith.constant 112 : i32
    %795 = tpu.dynamic_rotate %483 by %c112_i32 dim 1 : vector<16x128xf32>, i32 -> vector<16x128xf32>
    %796 = vector.extract_strided_slice %484 {offsets = [0, 22], sizes = [16, 1], strides = [1, 1]} : vector<16x27xf32> to vector<16x1xf32>
    %797 = arith.andi %784, %559 : vector<1x128xi1>
    %cst_174 = arith.constant 0.000000e+00 : f32
    %798 = vector.shape_cast %797 : vector<1x128xi1> to vector<1x128xi1>
    %799 = vector.broadcast %798 : vector<1x128xi1> to vector<16x128xi1>
    %800 = vector.broadcast %cst_174 : f32 to vector<16x128xf32>
    %801 = arith.select %799, %795, %800 : vector<16x128xi1>, vector<16x128xf32>
    %802 = vector.broadcast %796 : vector<16x1xf32> to vector<16x128xf32>
    %803 = arith.mulf %801, %802 : vector<16x128xf32>
    %804 = arith.addf %794, %803 : vector<16x128xf32>
    %c111_i32 = arith.constant 111 : i32
    %805 = tpu.dynamic_rotate %483 by %c111_i32 dim 1 : vector<16x128xf32>, i32 -> vector<16x128xf32>
    %806 = vector.extract_strided_slice %484 {offsets = [0, 23], sizes = [16, 1], strides = [1, 1]} : vector<16x27xf32> to vector<16x1xf32>
    %807 = arith.andi %784, %568 : vector<1x128xi1>
    %cst_175 = arith.constant 0.000000e+00 : f32
    %808 = vector.shape_cast %807 : vector<1x128xi1> to vector<1x128xi1>
    %809 = vector.broadcast %808 : vector<1x128xi1> to vector<16x128xi1>
    %810 = vector.broadcast %cst_175 : f32 to vector<16x128xf32>
    %811 = arith.select %809, %805, %810 : vector<16x128xi1>, vector<16x128xf32>
    %812 = vector.broadcast %806 : vector<16x1xf32> to vector<16x128xf32>
    %813 = arith.mulf %811, %812 : vector<16x128xf32>
    %814 = arith.addf %804, %813 : vector<16x128xf32>
    %815 = arith.andi %514, %541 : vector<1x128xi1>
    %c109_i32 = arith.constant 109 : i32
    %816 = tpu.dynamic_rotate %483 by %c109_i32 dim 1 : vector<16x128xf32>, i32 -> vector<16x128xf32>
    %817 = vector.extract_strided_slice %484 {offsets = [0, 24], sizes = [16, 1], strides = [1, 1]} : vector<16x27xf32> to vector<16x1xf32>
    %818 = arith.andi %815, %550 : vector<1x128xi1>
    %cst_176 = arith.constant 0.000000e+00 : f32
    %819 = vector.shape_cast %818 : vector<1x128xi1> to vector<1x128xi1>
    %820 = vector.broadcast %819 : vector<1x128xi1> to vector<16x128xi1>
    %821 = vector.broadcast %cst_176 : f32 to vector<16x128xf32>
    %822 = arith.select %820, %816, %821 : vector<16x128xi1>, vector<16x128xf32>
    %823 = vector.broadcast %817 : vector<16x1xf32> to vector<16x128xf32>
    %824 = arith.mulf %822, %823 : vector<16x128xf32>
    %825 = arith.addf %814, %824 : vector<16x128xf32>
    %c108_i32 = arith.constant 108 : i32
    %826 = tpu.dynamic_rotate %483 by %c108_i32 dim 1 : vector<16x128xf32>, i32 -> vector<16x128xf32>
    %827 = vector.extract_strided_slice %484 {offsets = [0, 25], sizes = [16, 1], strides = [1, 1]} : vector<16x27xf32> to vector<16x1xf32>
    %828 = arith.andi %815, %559 : vector<1x128xi1>
    %cst_177 = arith.constant 0.000000e+00 : f32
    %829 = vector.shape_cast %828 : vector<1x128xi1> to vector<1x128xi1>
    %830 = vector.broadcast %829 : vector<1x128xi1> to vector<16x128xi1>
    %831 = vector.broadcast %cst_177 : f32 to vector<16x128xf32>
    %832 = arith.select %830, %826, %831 : vector<16x128xi1>, vector<16x128xf32>
    %833 = vector.broadcast %827 : vector<16x1xf32> to vector<16x128xf32>
    %834 = arith.mulf %832, %833 : vector<16x128xf32>
    %835 = arith.addf %825, %834 : vector<16x128xf32>
    %c107_i32 = arith.constant 107 : i32
    %836 = tpu.dynamic_rotate %483 by %c107_i32 dim 1 : vector<16x128xf32>, i32 -> vector<16x128xf32>
    %837 = vector.extract_strided_slice %484 {offsets = [0, 26], sizes = [16, 1], strides = [1, 1]} : vector<16x27xf32> to vector<16x1xf32>
    %838 = arith.andi %815, %568 : vector<1x128xi1>
    %cst_178 = arith.constant 0.000000e+00 : f32
    %839 = vector.shape_cast %838 : vector<1x128xi1> to vector<1x128xi1>
    %840 = vector.broadcast %839 : vector<1x128xi1> to vector<16x128xi1>
    %841 = vector.broadcast %cst_178 : f32 to vector<16x128xf32>
    %842 = arith.select %840, %836, %841 : vector<16x128xi1>, vector<16x128xf32>
    %843 = vector.broadcast %837 : vector<16x1xf32> to vector<16x128xf32>
    %844 = arith.mulf %842, %843 : vector<16x128xf32>
    %845 = arith.addf %835, %844 : vector<16x128xf32>
    %cst_179 = arith.constant 0.000000e+00 : f32
    %846 = vector.shape_cast %6 : vector<1x128xi1> to vector<1x128xi1>
    %847 = vector.broadcast %846 : vector<1x128xi1> to vector<16x128xi1>
    %848 = vector.broadcast %cst_179 : f32 to vector<16x128xf32>
    %849 = arith.select %847, %845, %848 : vector<16x128xi1>, vector<16x128xf32>
    %cst_180 = arith.constant dense<0.000000e+00> : vector<16xf32>
    %850 = vector.multi_reduction <add>, %849, %cst_180 [1] : vector<16x128xf32> to vector<16xf32>
    %851 = vector.shape_cast %850 : vector<16xf32> to vector<16x1xf32>
    %cst_181 = arith.constant 1.562500e-02 : f32
    %852 = vector.broadcast %cst_181 : f32 to vector<16x1xf32>
    %853 = arith.mulf %851, %852 : vector<16x1xf32>
    %854 = arith.mulf %849, %849 : vector<16x128xf32>
    %cst_182 = arith.constant dense<0.000000e+00> : vector<16xf32>
    %855 = vector.multi_reduction <add>, %854, %cst_182 [1] : vector<16x128xf32> to vector<16xf32>
    %856 = vector.shape_cast %855 : vector<16xf32> to vector<16x1xf32>
    %cst_183 = arith.constant 1.562500e-02 : f32
    %857 = vector.broadcast %cst_183 : f32 to vector<16x1xf32>
    %858 = arith.mulf %856, %857 : vector<16x1xf32>
    %859 = arith.mulf %853, %853 : vector<16x1xf32>
    %860 = arith.subf %858, %859 : vector<16x1xf32>
    %cst_184 = arith.constant 0.000000e+00 : f32
    %861 = vector.broadcast %cst_184 : f32 to vector<16x1xf32>
    %862 = arith.maximumf %860, %861 : vector<16x1xf32>
    %863 = vector.broadcast %853 : vector<16x1xf32> to vector<16x128xf32>
    %864 = arith.subf %845, %863 : vector<16x128xf32>
    %cst_185 = arith.constant 9.99999974E-6 : f32
    %865 = vector.broadcast %cst_185 : f32 to vector<16x1xf32>
    %866 = arith.addf %862, %865 : vector<16x1xf32>
    %867 = math.rsqrt %866 : vector<16x1xf32>
    %868 = vector.broadcast %867 : vector<16x1xf32> to vector<16x128xf32>
    %869 = arith.mulf %864, %868 : vector<16x128xf32>
    %cst_186 = arith.constant 0.000000e+00 : f32
    %870 = vector.broadcast %cst_186 : f32 to vector<16x128xf32>
    %871 = arith.cmpf oge, %869, %870 : vector<16x128xf32>
    %cst_187 = arith.constant 0.00999999977 : f32
    %872 = vector.broadcast %cst_187 : f32 to vector<16x128xf32>
    %873 = arith.mulf %872, %869 : vector<16x128xf32>
    %874 = arith.select %871, %869, %873 : vector<16x128xi1>, vector<16x128xf32>
    %c0_188 = arith.constant 0 : index
    %c0_189 = arith.constant 0 : index
    %875 = vector.load %arg7[%c0_188, %c0_189] : memref<8x16xbf16, #tpu.memory_space<vmem>>, vector<8x16xbf16>
    %876 = arith.truncf %874 : vector<16x128xf32> to vector<16x128xbf16>
    %cst_190 = arith.constant dense<0.000000e+00> : vector<8x128xf32>
    %877 = tpu.matmul %875, %876, %cst_190 {dimension_numbers = #tpu.dot_dimension_numbers<[1], [0], [0], [1], [0, 0, 1, 1], [], []>} : vector<8x16xbf16>, vector<16x128xbf16>, vector<8x128xf32> -> vector<8x128xf32>
    %cst_191 = arith.constant 0.000000e+00 : f32
    %878 = vector.shape_cast %6 : vector<1x128xi1> to vector<1x128xi1>
    %879 = vector.broadcast %878 : vector<1x128xi1> to vector<8x128xi1>
    %880 = vector.broadcast %cst_191 : f32 to vector<8x128xf32>
    %881 = arith.select %879, %877, %880 : vector<8x128xi1>, vector<8x128xf32>
    %cst_192 = arith.constant dense<0.000000e+00> : vector<8xf32>
    %882 = vector.multi_reduction <add>, %881, %cst_192 [1] : vector<8x128xf32> to vector<8xf32>
    %883 = vector.shape_cast %882 : vector<8xf32> to vector<8x1xf32>
    %cst_193 = arith.constant 1.562500e-02 : f32
    %884 = vector.broadcast %cst_193 : f32 to vector<8x1xf32>
    %885 = arith.mulf %883, %884 : vector<8x1xf32>
    %886 = arith.mulf %881, %881 : vector<8x128xf32>
    %cst_194 = arith.constant dense<0.000000e+00> : vector<8xf32>
    %887 = vector.multi_reduction <add>, %886, %cst_194 [1] : vector<8x128xf32> to vector<8xf32>
    %888 = vector.shape_cast %887 : vector<8xf32> to vector<8x1xf32>
    %cst_195 = arith.constant 1.562500e-02 : f32
    %889 = vector.broadcast %cst_195 : f32 to vector<8x1xf32>
    %890 = arith.mulf %888, %889 : vector<8x1xf32>
    %891 = arith.mulf %885, %885 : vector<8x1xf32>
    %892 = arith.subf %890, %891 : vector<8x1xf32>
    %cst_196 = arith.constant 0.000000e+00 : f32
    %893 = vector.broadcast %cst_196 : f32 to vector<8x1xf32>
    %894 = arith.maximumf %892, %893 : vector<8x1xf32>
    %895 = vector.broadcast %885 : vector<8x1xf32> to vector<8x128xf32>
    %896 = arith.subf %877, %895 : vector<8x128xf32>
    %cst_197 = arith.constant 9.99999974E-6 : f32
    %897 = vector.broadcast %cst_197 : f32 to vector<8x1xf32>
    %898 = arith.addf %894, %897 : vector<8x1xf32>
    %899 = math.rsqrt %898 : vector<8x1xf32>
    %900 = vector.broadcast %899 : vector<8x1xf32> to vector<8x128xf32>
    %901 = arith.mulf %896, %900 : vector<8x128xf32>
    %902 = arith.addf %901, %451 : vector<8x128xf32>
    %c0_198 = arith.constant 0 : index
    %c0_199 = arith.constant 0 : index
    %c0_200 = arith.constant 0 : index
    %903 = vector.load %arg11[%c0_198, %c0_199, %c0_200] : memref<1x8x128xf32, #tpu.memory_space<vmem>>, vector<1x8x128xf32>
    %904 = vector.shape_cast %903 : vector<1x8x128xf32> to vector<8x128xf32>
    %905 = vector.shape_cast %902 : vector<8x128xf32> to vector<1x8x128xf32>
    tpu.vector_store %arg11[%c0_198, %c0_199, %c0_200], %905 {strides = array<i32>} : memref<1x8x128xf32, #tpu.memory_space<vmem>>, vector<1x8x128xf32>,
    return
  }
  func.func @transform_0(%arg0: i32) -> (i32, i32, i32) {
    %c0_i32 = arith.constant 0 : i32
    %c0_i32_0 = arith.constant 0 : i32
    %c0_i32_1 = arith.constant 0 : i32
    return %arg0, %c0_i32, %c0_i32_0 : i32, i32, i32
  }
  func.func @transform_1(%arg0: i32) -> (i32, i32) {
    %c0_i32 = arith.constant 0 : i32
    %c0_i32_0 = arith.constant 0 : i32
    %c0_i32_1 = arith.constant 0 : i32
    return %c0_i32, %c0_i32_0 : i32, i32
  }
  func.func @transform_2(%arg0: i32) -> (i32, i32) {
    %c0_i32 = arith.constant 0 : i32
    %c0_i32_0 = arith.constant 0 : i32
    %c0_i32_1 = arith.constant 0 : i32
    return %c0_i32, %c0_i32_0 : i32, i32
  }
  func.func @transform_3(%arg0: i32) -> (i32, i32) {
    %c0_i32 = arith.constant 0 : i32
    %c0_i32_0 = arith.constant 0 : i32
    %c0_i32_1 = arith.constant 0 : i32
    return %c0_i32, %c0_i32_0 : i32, i32
  }
  func.func @transform_4(%arg0: i32) -> (i32, i32) {
    %c0_i32 = arith.constant 0 : i32
    %c0_i32_0 = arith.constant 0 : i32
    %c0_i32_1 = arith.constant 0 : i32
    return %c0_i32, %c0_i32_0 : i32, i32
  }
  func.func @transform_5(%arg0: i32) -> (i32, i32) {
    %c0_i32 = arith.constant 0 : i32
    %c0_i32_0 = arith.constant 0 : i32
    %c0_i32_1 = arith.constant 0 : i32
    return %c0_i32, %c0_i32_0 : i32, i32
  }
  func.func @transform_6(%arg0: i32) -> (i32, i32) {
    %c0_i32 = arith.constant 0 : i32
    %c0_i32_0 = arith.constant 0 : i32
    %c0_i32_1 = arith.constant 0 : i32
    return %c0_i32, %c0_i32_0 : i32, i32
  }
  func.func @transform_7(%arg0: i32) -> (i32, i32) {
    %c0_i32 = arith.constant 0 : i32
    %c0_i32_0 = arith.constant 0 : i32
    %c0_i32_1 = arith.constant 0 : i32
    return %c0_i32, %c0_i32_0 : i32, i32
  }
  func.func @transform_8(%arg0: i32) -> (i32, i32) {
    %c0_i32 = arith.constant 0 : i32
    %c0_i32_0 = arith.constant 0 : i32
    %c0_i32_1 = arith.constant 0 : i32
    return %c0_i32, %c0_i32_0 : i32, i32
  }
  func.func @transform_9(%arg0: i32) -> (i32, i32) {
    %c0_i32 = arith.constant 0 : i32
    %c0_i32_0 = arith.constant 0 : i32
    %c0_i32_1 = arith.constant 0 : i32
    return %c0_i32, %c0_i32_0 : i32, i32
  }
  func.func @transform_10(%arg0: i32) -> (i32, i32, i32) {
    %c0_i32 = arith.constant 0 : i32
    %c0_i32_0 = arith.constant 0 : i32
    %c0_i32_1 = arith.constant 0 : i32
    return %arg0, %c0_i32, %c0_i32_0 : i32, i32, i32
  }
}

</mosaic_0001>

<bundles_post_ra>
// kernel: tpu_custom_call.1
= control target key start
LH: loop header
LB: loop body
LE: loop exit
PB: predicated region body
PF: predicated region fallthrough
CT: control target
= control target key end

     0   :  { %6 = vsyncpa [#allocation3], 0  ;;  %s286_s0 = inlined_call_operand.hbm [shape: f32[8,128], index: 0, kind: input, shape index: {}]   ;;  %s287_s1 = inlined_call_operand.hbm [shape: f32[8,128], index: 1, kind: output, shape index: {}]  }
   0x1   :  { %7 = vsyncpa [#allocation4], 0  ;;  %s269_s6 = smov 0  }
   0x2 LB: > { %s148_s7 = sadd.s32 4294967295, %s255_s6   ;;  %p149_p0 = scmp.ge.s32.totalorder %s255_s6, 1  ;;  %s255_s6 = sphi %s269_s6, %s13_s6  }
   0x3   : > { %p60_p1 = scmp.lt.s32.totalorder %s255_s6, 3  ;;  %s72_s10 = sshll.u32 %s286_s0, 4  ;;  %s73_s10 = int_to_ptr.hbm [resolvable:$true] %s72_s10 }
   0x4   : > { %p169_p3 = scmp.eq.s32.totalorder %s148_s7, 0  ;;  %s257_s11 = smov [#allocation2]  }
   0x5   : > { %p61_p2 = pnand %p149_p0, %p60_p1  ;;  %s74_s12 = sshll.u32 %s257_s11, 4  ;;  %s75_s12 = int_to_ptr.vmem [resolvable:$true] %s74_s12 }
   0x7   : > { %p165_p4 = pneg %p61_p2  ;;  %87 = sbr.rel (%p61_p2) target bundleno = 19 (0x13), region = 24 }
   0x9   : > { %p166_p5 = pnand %p169_p3, %p165_p4 }
   0xb   : > { %168 = dma.hbm_to_vmem [thread:$0]  (!%p166_p5), %s73_s10, 128, %s75_s12, [#allocation3]  }
   0xc   : > { %246 = dma.done.wait (%p169_p3), [#allocation3], 128  }
   0xd   : > { %248 = vsyncadd (%p169_p3), [#allocation3], 4294967168  ;;  %s258_s13 = smov [#allocation5]   ;;  %s108_s17 = sshll.u32 %s287_s1, 4  ;;  %v98_v0 = vld [vmem:[#allocation2] sm:$0xff]  ;;  %s109_s17 = int_to_ptr.hbm [resolvable:$true] %s108_s17 }
   0xe   : > { %s106_s14 = sshll.u32 %s258_s13, 4  ;;  %p171_p6 = scmp.eq.s32.totalorder %s148_s7, 1  ;;  %99 = vst [vmem:[#allocation5] sm:$0xff] %v98_v0  ;;  %s107_s14 = int_to_ptr.vmem [resolvable:$true] %s106_s14 }
  0x10   : > { %162 = dma.vmem_to_hbm [thread:$0]  (%p171_p6), %s107_s14, 128, %s109_s17, [#allocation4]  }
  0x11   : > { %250 = dma.done.wait (%p171_p6), [#allocation4], 128  }
  0x12   : > { %252 = vsyncadd (%p171_p6), [#allocation4], 4294967168 }
  0x13 PF: > { %s13_s6 = sadd.s32 1, %s255_s6  }
  0x14   : > { %p10_p7 = scmp.ge.s32.totalorder %s13_s6, 4  }
  0x16   :  { %12 = sbr.rel (!%p10_p7) target bundleno = 2 (0x2), region = 53 }
  0x1b   :  { %122 = vsyncpa [#allocation3], 1 }
  0x1c   :  { %124 = vsyncpa [#allocation3 + $0x1], 1 }
  0x1d   :  { %125 = vsyncpa [#allocation4], 1 }
  0x1e   :  { %127 = vsyncpa [#allocation4 + $0x1], 1 }

// kernel: mobile_feature_block.1
= control target key start
LH: loop header
LB: loop body
LE: loop exit
PB: predicated region body
PF: predicated region fallthrough
CT: control target
= control target key end

     0   :  { %s3417_s13 = smov 0   ;;  %s6569_s0 = inlined_call_operand.vmem [shape: f32[2,4,512], index: 0, kind: input, shape index: {}]   ;;  %s6570_s1 = inlined_call_operand.vmem [shape: bf16[8,4], index: 1, kind: input, shape index: {}]   ;;  %s6571_s2 = inlined_call_operand.vmem [shape: f32[8,27], index: 2, kind: input, shape index: {}]   ;;  %s6572_s3 = inlined_call_operand.vmem [shape: bf16[8,8], index: 3, kind: input, shape index: {}]   ;;  %s6573_s4 = inlined_call_operand.vmem [shape: bf16[16,8], index: 4, kind: input, shape index: {}]   ;;  %s6574_s5 = inlined_call_operand.vmem [shape: f32[16,27], index: 5, kind: input, shape index: {}]   ;;  %s6575_s6 = inlined_call_operand.vmem [shape: bf16[8,16], index: 6, kind: input, shape index: {}]   ;;  %s6576_s7 = inlined_call_operand.vmem [shape: s32[3,512], index: 7, kind: input, shape index: {}]   ;;  %s6577_s8 = inlined_call_operand.vmem [shape: s32[3,128], index: 8, kind: input, shape index: {}]   ;;  %s6578_s9 = inlined_call_operand.vmem [shape: bf16[512,128], index: 9, kind: input, shape index: {}]   ;;  %s6579_s10 = inlined_call_operand.vmem [shape: f32[2,8,128], index: 10, kind: output, shape index: {}]  }
   0x1 LB: > { %s2917_s14 = sadd.s32 4294967295, %s3292_s13   ;;  %p2921_p0 = scmp.ge.s32.totalorder %s3292_s13, 1  ;;  %s3292_s13 = sphi %s3417_s13, %s20_s13  }
   0x2   : > { %p312_p1 = scmp.lt.s32.totalorder %s3292_s13, 3 }
   0x4   : > { %p313_p2 = pnand %p2921_p0, %p312_p1 }
   0x6   : > { %316 = sbr.rel (%p313_p2) target bundleno = 2318 (0x90e), region = 60 }
   0xb   : > { %p349_p3 = scmp.lt.s32.totalorder %s2917_s14, 1  ;;  %v6614_v0 = vmov 4   ;;  %v3429_v1 = vld [vmem:[%s6571_s2] sm:$0xff]  ;;  %v6616_v4 = vmov 5   ;;  %vm387_vm0 = vcmask 1041408   ;;  %vm383_vm1 = vcmask 31744  }
   0xc   : > { %3192 = vset.pattern.permute.xlu0 %v6614_v0  ;;  %v365_v17 = vld [vmem:[%s6570_s1] sm:$0xf]  ;;  %v6610_v18 = vmov 6   ;;  %v6612_v19 = vmov 7   ;;  %v6606_v20 = vmov 8   ;;  %v6608_v21 = vmov 9  }
   0xd   : > { %s7392_s14 = smov (!%p349_p3, %s2917_s14), 1  ;;  %778 = vperm.xlu0 %3192, %v3429_v1   ;;  %v6604_v22 = vmov 10   ;;  %v6596_v23 = vmov 11   ;;  %v6602_v24 = vmov 12   ;;  %v6620_v25 = vmov 2   ;;  %s3311_s23 = smov 72  }
   0xe   : > { %s3078_s17 = sshll.u32 %s7392_s14, 4  ;;  %3190 = vset.pattern.permute.xlu2 %v6620_v25  ;;  %v6600_v31 = vmov 13   ;;  %v6631_v52 = vmov 0   ;;  %v6626_v54 = vmov 1   ;;  %v6598_v56 = vmov 15   ;;  %s3312_s24 = smov 73  }
   0xf   : > { %s353_s20 = scalar_lea.vmem %s6569_s0, %s3078_s17  ;;  %680 = vperm.xlu2 %3190, %v3429_v1   ;;  %3188 = vset.pattern.permute.xlu1 %v6631_v52  ;;  %v6622_v57 = vmov 3   ;;  %v6594_v59 = vmov 14   ;;  %v6592_v60 = vmov 16   ;;  %s3315_s25 = smov 71   ;;  %v6825_v25 = vmov 0 }
  0x10   : > { %v359_v2 = vld [vmem:[%s353_s20] sm:$0xff]  ;;  %v360_v3 = vld [vmem:[%s353_s20 + $0x8] sm:$0xff]  ;;  %578 = vperm.xlu1 %3188, %v3429_v1   ;;  %s3316_s26 = smov 65   ;;  %s3318_s27 = smov 64  }
  0x11   : > { %368 = vst [vmem:[#allocation1] ss:$2 sm:$0xff] %v359_v2  ;;  %s6755_s28 = smov 127   ;;  %s3321_s29 = smov 63  }
  0x12   : > { %370 = vst [vmem:[#allocation1 + $0x10] ss:$2 sm:$0xff] %v360_v3  ;;  %s3322_s30 = smov 121   ;;  %s3324_s11 = smov 57  }
  0x13   : > { %s3326_s12 = smov 56   ;;  %s3327_s15 = smov 55  }
  0x14   : > { %s3328_s16 = smov 9   ;;  %s3329_s17 = smov 8  }
  0x15   : > { %3193 = vset.pattern.permute.xlu0 %v6616_v4  ;;  %s3330_s18 = smov 7   ;;  %s3338_s21 = smov 20  }
  0x16   : > { %823 = vperm.xlu0 %3193, %v3429_v1   ;;  %s3339_s22 = smov 21   ;;  %s6754_s19 = smov 117  }
  0x17   : > { %3201 = vset.pattern.permute.xlu2 %v6600_v31  ;;  %v6803_v31 = vmov 0  ;;  %s3353_s20 = smov 123  }
  0x18   : > { %v371_v5 = vld.sshfl [vmem:[#allocation1] sm:$0xff pattern:$0x75316420]  ;;  %v372_v6 = vld.sshfl [vmem:[#allocation1 + $0x8] sm:$0xff pattern:$0x75316420]  ;;  %1182 = vperm.xlu2 %3201, %v3429_v1   ;;  %3189 = vset.pattern.permute.xlu1 %v6626_v54 }
  0x19   : > { %v379_v7 = vpack.c.bf16 %v371_v5, %v371_v5  ;;  %v380_v8 = vpack.c.bf16 %v372_v6, %v372_v6  ;;  %v373_v9 = vld.sshfl [vmem:[#allocation1 + $0x10] sm:$0xff pattern:$0x75316420]  ;;  %v374_v10 = vld.sshfl [vmem:[#allocation1 + $0x18] sm:$0xff pattern:$0x75316420]  ;;  %627 = vperm.xlu1 %3189, %v3429_v1  }
  0x1a   : > { %v381_v11 = vpack.c.bf16 %v373_v9, %v373_v9  ;;  %v382_v12 = vpack.c.bf16 %v374_v10, %v374_v10  ;;  %v6828_v54 = vmov 0 }
  0x1b   : > { %v389_v13 = vsel %vm387_vm0, %v379_v7, 0  ;;  %v392_v14 = vsel %vm387_vm0, %v380_v8, 0 }
  0x1c   : > { %407 = vmatpush.bf16.msra.mxu0 %v389_v13  ;;  %420 = vmatpush.bf16.msra.mxu1 %v392_v14  ;;  %v395_v15 = vsel %vm387_vm0, %v381_v11, 0  ;;  %v398_v16 = vsel %vm387_vm0, %v382_v12, 0 }
  0x1d   : > { %433 = vmatpush.bf16.msra.mxu2 %v395_v15  ;;  %446 = vmatpush.bf16.msra.mxu3 %v398_v16 }
  0x1e   : > { %3194 = vset.pattern.permute.xlu0 %v6610_v18  ;;  %v6821_v18 = vmov 0 }
  0x1f   : > { %2925 = vmatmul.msk.bf16.vlgmr.msra.gmra.mxu0 %vm383_vm1, %v365_v17  ;;  %2926 = vmatmul.msk.bf16.vlgmr.msra.gmra.mxu1 %vm383_vm1, %v365_v17 }
  0x20   : > { %2927 = vmatmul.msk.bf16.vlgmr.msra.gmra.mxu2 %vm383_vm1, %v365_v17  ;;  %2928 = vmatmul.msk.bf16.vlgmr.msra.gmra.mxu3 %vm383_vm1, %v365_v17 }
  0x21   : > { %876 = vperm.xlu0 %3194, %v3429_v1   ;;  %3191 = vset.pattern.permute.xlu1 %v6622_v57 }
  0x22   : > { %733 = vperm.xlu1 %3191, %v3429_v1  }
  0x29   : > { %3195 = vset.pattern.permute.xlu0 %v6612_v19 }
  0x2a   : > { %921 = vperm.xlu0 %3195, %v3429_v1   ;;  %3202 = vset.pattern.permute.xlu1 %v6594_v59 }
  0x2b   : > { %1227 = vperm.xlu1 %3202, %v3429_v1  }
  0x32   : > { %3196 = vset.pattern.permute.xlu0 %v6606_v20 }
  0x33   : > { %966 = vperm.xlu0 %3196, %v3429_v1  }
  0x3b   : > { %3197 = vset.pattern.permute.xlu0 %v6608_v21  ;;  %v6819_v21 = vmov 0 }
  0x3c   : > { %1013 = vperm.xlu0 %3197, %v3429_v1  }
  0x44   : > { %3198 = vset.pattern.permute.xlu0 %v6604_v22 }
  0x45   : > { %1058 = vperm.xlu0 %3198, %v3429_v1  }
  0x4d   : > { %3199 = vset.pattern.permute.xlu0 %v6596_v23 }
  0x4e   : > { %1103 = vperm.xlu0 %3199, %v3429_v1  }
  0x56   : > { %3200 = vset.pattern.permute.xlu0 %v6602_v24  ;;  %v6812_v24 = vmov 0 }
  0x57   : > { %1150 = vperm.xlu0 %3200, %v3429_v1  }
  0x5f   : > { %3203 = vset.pattern.permute.xlu0 %v6598_v56 }
  0x7f   : > { %v3481_v45 = vpop.permute.xlu0 %778 }
  0x80   : > { %6774 = vst [vmem:[#allocation2_spill] sm:$0xff] %v3481_v45 }
  0x88   : > { %v3483_v46 = vpop.permute.xlu0 %823 }
  0x89   : > { %6775 = vst [vmem:[#allocation3_spill] sm:$0xff] %v3483_v46 }
  0x93   : > { %v3485_v47 = vpop.permute.xlu0 %876 }
  0x94   : > { %6776 = vst [vmem:[#allocation4_spill] sm:$0xff] %v3485_v47 }
  0x9c   : > { %v3459_v26 = vpop.f32.mrf.mxu0  ;;  %v3461_v27 = vpop.f32.mrf.mxu1 }
  0x9d   : > { %v452_v28 = vadd.f32 %v3461_v27, %v3459_v26  ;;  %v458_v29 = vmul.f32 %v3459_v26, %v3459_v26  ;;  %v459_v30 = vmul.f32 %v3461_v27, %v3461_v27  ;;  %v3487_v48 = vpop.permute.xlu0 %921 }
  0x9e   : > { %6777 = vst [vmem:[#allocation5_spill] sm:$0xff] %v3487_v48 }
  0x9f   : > { %v462_v39 = vadd.f32 %v459_v30, %v458_v29 }
  0xa3   : > { %v3470_v32 = vpop.f32.mrf.mxu2  ;;  %v3472_v33 = vpop.f32.mrf.mxu3 }
  0xa4   : > { %v411_v34 = vpop.f32.mrf.mxu0  ;;  %v424_v35 = vpop.f32.mrf.mxu1  ;;  %v453_v36 = vadd.f32 %v452_v28, %v3470_v32  ;;  %v460_v37 = vmul.f32 %v3470_v32, %v3470_v32  ;;  %v461_v40 = vmul.f32 %v3472_v33, %v3472_v33 }
  0xa5   : > { %v3489_v49 = vpop.permute.xlu0 %966 }
  0xa6   : > { %v454_v38 = vadd.f32 %v453_v36, %v3472_v33  ;;  %v463_v41 = vadd.f32 %v462_v39, %v460_v37  ;;  %6778 = vst [vmem:[#allocation6_spill] sm:$0xff] %v3489_v49 }
  0xa8   : > { %455 = vadd.xlane.f32.xlu0 %v454_v38  ;;  %v464_v44 = vadd.f32 %v463_v41, %v461_v40  ;;  %v6588_v41 = vmov 18  }
  0xa9   : > { %3206 = vset.pattern.permute.xlu2 %v6588_v41 }
  0xab   : > { %v437_v42 = vpop.f32.mrf.mxu2  ;;  %v450_v43 = vpop.f32.mrf.mxu3 }
  0xac   : > { %v6582_v42 = vmov 21   ;;  %v6584_v43 = vmov 20  }
  0xae   : > { %v3491_v50 = vpop.permute.xlu0 %1013 }
  0xaf   : > { %6779 = vst [vmem:[#allocation7_spill] sm:$0xff] %v3491_v50 }
  0xb0   : > { %465 = vadd.xlane.f32.xlu0 %v464_v44  ;;  %v3557_v44 = vpop.permute.xlu2 %680 }
  0xb7   : > { %v3493_v51 = vpop.permute.xlu0 %1058 }
  0xb8   : > { %6780 = vst [vmem:[#allocation8_spill] sm:$0xff] %v3493_v51 }
  0xc0   : > { %v3497_v53 = vpop.permute.xlu0 %1103 }
  0xc1   : > { %6781 = vst [vmem:[#allocation9_spill] sm:$0xff] %v3497_v53 }
  0xc4   : > { %1274 = vperm.xlu0 %3203, %v3429_v1  }
  0xc9   : > { %v3501_v55 = vpop.permute.xlu0 %1150 }
  0xca   : > { %6782 = vst [vmem:[#allocation10_spill] sm:$0xff] %v3501_v55 }
  0xcc   : > { %3204 = vset.pattern.permute.xlu0 %v6592_v60 }
  0xcd   : > { %1319 = vperm.xlu0 %3204, %v3429_v1  }
 0x11b   : > { %v456_v58 = vpop.xlane.xlu0 %455 }
 0x11c   : > { %v457_v61 = vmul.f32 0.001953125, %v456_v58  ;;  %v3561_v58 = vpop.permute.xlu1 %578 }
 0x11e   : > { %v468_v63 = vmul.f32 %v457_v61, %v457_v61  ;;  %v472_v13 = vsub.f32 %v3461_v27, %v457_v61  ;;  %v474_v14 = vsub.f32 %v3472_v33, %v457_v61  ;;  %v473_v28 = vsub.f32 %v3470_v32, %v457_v61 }
 0x11f   : > { %v471_v30 = vsub.f32 %v3459_v26, %v457_v61  ;;  %v6586_v32 = vmov 19   ;;  %v6590_v26 = vmov 17   ;;  %v6580_v61 = vmov 26  }
 0x120   : > { %3207 = vset.pattern.permute.xlu1 %v6586_v32  ;;  %3205 = vset.pattern.permute.xlu0 %v6590_v26  ;;  %v6799_v26 = vmov 0 }
 0x123   : > { %v466_v62 = vpop.xlane.xlu0 %465 }
 0x124   : > { %v467_v2 = vmul.f32 0.001953125, %v466_v62  ;;  %v3567_v62 = vpop.permute.xlu2 %1182 }
 0x126   : > { %v469_v3 = vsub.f32 %v467_v2, %v468_v63  ;;  %v3569_v63 = vpop.permute.xlu1 %627 }
 0x128   : > { %v470_v5 = vmax.f32 %v469_v3, 0.0 }
 0x12a   : > { %v475_v6 = vadd.f32 1e-05, %v470_v5 }
 0x12c   : > { %3269 = vrsqrt.f32 %v475_v6  ;;  %vm482_vm3 = vweird.f32 %v475_v6 }
 0x12e   : > { %v3576_v3 = vpop.permute.xlu1 %733 }
 0x12f   : > { %6783 = vst [vmem:[#allocation11_spill] sm:$0xff] %v3576_v3 }
 0x132   : > { %v3270_v7 = vpop.eup %3269 }
 0x133   : > { %v477_v8 = vmul.f32 %v3270_v7, %v475_v6  ;;  %vm483_vm2 = vweird.f32 %v3270_v7 }
 0x134   : > { %vm484_vm4 = vmor %vm482_vm3, %vm483_vm2 }
 0x135   : > { %v478_v9 = vmul.f32 %v3270_v7, %v477_v8 }
 0x136   : > { %v3583_v5 = vpop.permute.xlu1 %1227 }
 0x137   : > { %v479_v10 = vmul.f32 0.5, %v478_v9  ;;  %6784 = vst [vmem:[#allocation12_spill] sm:$0xff] %v3583_v5 }
 0x139   : > { %v480_v11 = vsub.f32 1.5, %v479_v10 }
 0x13b   : > { %v481_v12 = vmul.f32 %v3270_v7, %v480_v11 }
 0x13d   : > { %v485_v15 = vsel %vm484_vm4, %v3270_v7, %v481_v12 }
 0x13e   : > { %v487_v16 = vmul.f32 %v485_v15, %v472_v13  ;;  %v489_v17 = vmul.f32 %v485_v15, %v474_v14  ;;  %v488_v35 = vmul.f32 %v485_v15, %v473_v28  ;;  %v486_v37 = vmul.f32 %v485_v15, %v471_v30  ;;  %v362_v30 = vld [vmem:[%s6576_s7 + $0x8] sm:$0x77] }
 0x13f   : > { %vm512_vm12 = vcmp.ge.s32.totalorder %v362_v30, 0  ;;  %vm514_vm13 = vcmp.lt.s32.totalorder %v362_v30, 8  ;;  %v518_v19 = vadd.s32 1, %v362_v30 }
 0x140   : > { %vm491_vm5 = vcmp.ge.f32.partialorder %v487_v16, 0.0  ;;  %vm493_vm6 = vcmp.ge.f32.partialorder %v489_v17, 0.0  ;;  %v495_v29 = vmul.f32 0.01, %v487_v16  ;;  %v497_v34 = vmul.f32 0.01, %v489_v17  ;;  %vm3649_vm14 = vmand %vm512_vm12, %vm514_vm13 }
 0x141   : > { %v496_v27 = vmul.f32 0.01, %v488_v35  ;;  %vm492_vm7 = vcmp.ge.f32.partialorder %v488_v35, 0.0  ;;  %v494_v33 = vmul.f32 0.01, %v486_v37  ;;  %vm490_vm8 = vcmp.ge.f32.partialorder %v486_v37, 0.0 }
 0x142   : > { %v3515_v36 = vsel %vm491_vm5, %v487_v16, %v495_v29  ;;  %v3517_v38 = vsel %vm493_vm6, %v489_v17, %v497_v34  ;;  %v361_v17 = vld [vmem:[%s6576_s7] sm:$0x77]  ;;  %v6790_v34 = vmov 0  ;;  %v599_v41 = vsel %vm3649_vm14, 1, %v6631_v52 }
 0x143   : > { %587 = vrot.lane.b32.xlu2 %v3515_v36, %s3311_s23  ;;  %537 = vrot.lane.b32.xlu1 %v3515_v36, %s3312_s24  ;;  %v3524_v39 = vsel %vm492_vm7, %v488_v35, %v496_v27  ;;  %v3526_v40 = vsel %vm490_vm8, %v486_v37, %v494_v33  ;;  %vm511_vm9 = vcmp.ge.s32.totalorder %v361_v17, 0  ;;  %vm513_vm10 = vcmp.lt.s32.totalorder %v361_v17, 8  ;;  %v3647_v33 = vpop.permute.xlu0 %1274 }
 0x144   : > { %541 = vrot.lane.b32.xlu0 %v3517_v38, %s3312_s24  ;;  %vm3632_vm11 = vmand %vm511_vm9, %vm513_vm10  ;;  %6795 = vst [vmem:[#allocation21_spill] sm:$0xff] %v3647_v33  ;;  %v503_v32 = vadd.s32 4294967295, %v361_v17  ;;  %v2938_v56 = vrot.slane %v599_v41, 9 }
 0x145   : > { %v6791_v34 = vsel %vm3632_vm11, 4294967295, %v6790_v34  ;;  %v598_v37 = vsel %vm3632_vm11, 1, %v6631_v52 }
 0x146   : > { %6792 = vst [vmem:[#allocation18_spill] sm:$0xff] %v6791_v34  ;;  %v2933_v59 = vrot.slane %v598_v37, 10  ;;  %vm505_vm2 = vcmp.ge.s32.totalorder %v503_v32, 0  ;;  %vm507_vm3 = vcmp.lt.s32.totalorder %v503_v32, 8  ;;  %vm3690_vm8 = vcmp.ne.s32.totalorder %v2938_v56, 0 }
 0x147   : > { %vm3684_vm7 = vmand %vm505_vm2, %vm507_vm3  ;;  %vm520_vm2 = vcmp.ge.s32.totalorder %v518_v19, 0  ;;  %vm522_vm3 = vcmp.lt.s32.totalorder %v518_v19, 8 }
 0x148   : > { %vm3680_vm6 = vcmp.ne.s32.totalorder %v2933_v59, 0  ;;  %v6813_v24 = vsel %vm3684_vm7, 4294967295, %v6812_v24  ;;  %v525_v56 = vsel %vm3684_vm7, 1, %v6631_v52  ;;  %vm3718_vm12 = vmand %vm3649_vm14, %vm3690_vm8 }
 0x149   : > { %6814 = vst [vmem:[#allocation28_spill] sm:$0xff] %v6813_v24  ;;  %v6822_v18 = vsel %vm3718_vm12, 4294967295, %v6821_v18  ;;  %v2929_v4 = vrot.slane %v525_v56, 9  ;;  %v2931_v50 = vrot.slane %v525_v56, 10  ;;  %v6845_v56 = vmov 0 }
 0x14a   : > { %6823 = vst [vmem:[#allocation31_spill] sm:$0xff] %v6822_v18 }
 0x14b   : > { %589 = vrot.lane.b32.xlu2 %v3524_v39, %s3311_s23  ;;  %539 = vrot.lane.b32.xlu1 %v3524_v39, %s3312_s24  ;;  %v3688_v32 = vpop.permute.xlu0 %1319 }
 0x14c   : > { %585 = vrot.lane.b32.xlu0 %v3526_v40, %s3311_s23  ;;  %6815 = vst [vmem:[#allocation29_spill] sm:$0xff] %v3688_v32  ;;  %v6831_v32 = vmov 0 }
 0x153   : > { %591 = vrot.lane.b32.xlu2 %v3517_v38, %s3311_s23  ;;  %642 = vrot.lane.b32.xlu1 %v3524_v39, %s3315_s25  ;;  %s3331_s23 = smov 1  }
 0x154   : > { %701 = vrot.lane.b32.xlu0 %v3515_v36, %s3316_s26 }
 0x15b   : > { %640 = vrot.lane.b32.xlu2 %v3515_v36, %s3315_s25  ;;  %644 = vrot.lane.b32.xlu1 %v3517_v38, %s3315_s25 }
 0x15c   : > { %705 = vrot.lane.b32.xlu0 %v3517_v38, %s3316_s26 }
 0x163   : > { %703 = vrot.lane.b32.xlu1 %v3524_v39, %s3316_s26  ;;  %535 = vrot.lane.b32.xlu2 %v3526_v40, %s3312_s24  ;;  %s3332_s24 = smov 120  }
 0x164   : > { %748 = vrot.lane.b32.xlu0 %v3524_v39, %s3318_s27 }
 0x16b   : > { %1430 = vperm.xlu1 %3207, %v3429_v1   ;;  %638 = vrot.lane.b32.xlu2 %v3526_v40, %s3315_s25  ;;  %s3334_s25 = smov 119  }
 0x16c   : > { %1364 = vperm.xlu0 %3205, %v3429_v1  }
 0x173   : > { %699 = vrot.lane.b32.xlu1 %v3526_v40, %s3316_s26  ;;  %746 = vrot.lane.b32.xlu2 %v3515_v36, %s3318_s27  ;;  %s3342_s26 = smov 16  }
 0x174   : > { %1193 = vrot.lane.b32.xlu0 %v3526_v40, %s6755_s28 }
 0x175   : > { %3209 = vset.pattern.permute.xlu0 %v6582_v42  ;;  %v2937_v42 = vrot.slane %v598_v37, 9  ;;  %v2934_v37 = vrot.slane %v599_v41, 10  ;;  %v517_v41 = vadd.s32 1, %v361_v17 }
 0x177   : > { %vm3660_vm15 = vcmp.ne.s32.totalorder %v2937_v42, 0  ;;  %v6806_v42 = vmov 0  ;;  %vm3710_vm10 = vcmp.ne.s32.totalorder %v2934_v37, 0 }
 0x178   : > { %v6800_v26 = vsel %vm3660_vm15, 4294967295, %v6799_v26  ;;  %vm3672_vm4 = vmand %vm3632_vm11, %vm3660_vm15  ;;  %v6820_v21 = vsel %vm3710_vm10, 4294967295, %v6819_v21 }
 0x179   : > { %v6804_v31 = vsel %vm3672_vm4, 4294967295, %v6803_v31  ;;  %vm1161_vm9 = vmand %vm3672_vm4, %vm3680_vm6 }
 0x17a   : > { %6805 = vst [vmem:[#allocation25_spill] sm:$0xff] %v6804_v31  ;;  %vm1162_vm13 = vmand %vm3718_vm12, %vm3710_vm10  ;;  %v1163_v37 = vsel %vm1161_vm9, 1, %v6631_v52  ;;  %vm3740_vm12 = vcmp.ne.s32.totalorder %v2929_v4, 0 }
 0x17b   : > { %791 = vrot.lane.b32.xlu1 %v3515_v36, %s3321_s29  ;;  %1398 = vperm.xlu2 %3206, %v3429_v1   ;;  %v1165_v57 = vperm.slane %v1163_v37, 0  ;;  %v6832_v32 = vsel %vm3740_vm12, 4294967295, %v6831_v32  ;;  %vm3748_vm9 = vmand %vm520_vm2, %vm522_vm3 }
 0x17c   : > { %1246 = vrot.lane.b32.xlu0 %v3517_v38, %s3322_s30  ;;  %6833 = vst [vmem:[#allocation35_spill] sm:$0xff] %v6832_v32 }
 0x183   : > { %744 = vrot.lane.b32.xlu1 %v3526_v40, %s3318_s27  ;;  %3208 = vset.pattern.permute.xlu2 %v6584_v43  ;;  %v504_v43 = vadd.s32 4294967295, %v362_v30  ;;  %v1164_v30 = vsel %vm1162_vm13, 1, %v6631_v52 }
 0x184   : > { %1496 = vperm.xlu0 %3209, %v3429_v1   ;;  %1462 = vperm.xlu2 %3208, %v3429_v1   ;;  %v1167_v5 = vperm.slane %v1164_v30, 0  ;;  %v1168_v55 = vperm.slane %v1164_v30, 4 }
 0x185   : > { %vm506_vm0 = vcmp.ge.s32.totalorder %v504_v43, 0  ;;  %vm508_vm1 = vcmp.lt.s32.totalorder %v504_v43, 8  ;;  %v6809_v43 = vmov 0 }
 0x186   : > { %vm3676_vm5 = vmand %vm506_vm0, %vm508_vm1  ;;  %v6810_v43 = vsel %vm3680_vm6, 4294967295, %v6809_v43  ;;  %vm519_vm0 = vcmp.ge.s32.totalorder %v517_v41, 0  ;;  %vm521_vm1 = vcmp.lt.s32.totalorder %v517_v41, 8 }
 0x187   : > { %v6807_v42 = vsel %vm3676_vm5, 4294967295, %v6806_v42  ;;  %6811 = vst [vmem:[#allocation27_spill] sm:$0xff] %v6810_v43  ;;  %v526_v59 = vsel %vm3676_vm5, 1, %v6631_v52  ;;  %vm3736_vm11 = vmand %vm519_vm0, %vm521_vm1 }
 0x188   : > { %6808 = vst [vmem:[#allocation26_spill] sm:$0xff] %v6807_v42  ;;  %v2930_v0 = vrot.slane %v526_v59, 9  ;;  %v6829_v54 = vsel %vm3736_vm11, 4294967295, %v6828_v54  ;;  %vm3768_vm0 = vmand %vm3736_vm11, %vm3740_vm12  ;;  %v2932_v51 = vrot.slane %v526_v59, 10  ;;  %v1172_v59 = vperm.slane %v1168_v55, 0 }
 0x189   : > { %6830 = vst [vmem:[#allocation34_spill] sm:$0xff] %v6829_v54  ;;  %vm1409_vm3 = vmand %vm3768_vm0, %vm3680_vm6  ;;  %v6850_v55 = vmov 0  }
 0x18a   : > { %vm3729_vm4 = vcmp.ne.s32.totalorder %v2930_v0, 0  ;;  %v6834_v0 = vmov 0  ;;  %vm3794_vm15 = vcmp.ne.s32.totalorder %v2932_v51, 0  ;;  %v3806_v18 = vsel %vm1409_vm3, 1, %v6850_v55 }
 0x18b   : > { %844 = vrot.lane.b32.xlu1 %v3515_v36, %s3324_s11  ;;  %v6826_v25 = vsel %vm3729_vm4, 4294967295, %v6825_v25  ;;  %v6835_v0 = vsel %vm3748_vm9, 4294967295, %v6834_v0  ;;  %vm3758_vm13 = vmand %vm3676_vm5, %vm3729_vm4  ;;  %v6846_v56 = vsel %vm3794_vm15, 4294967295, %v6845_v56  ;;  %vm3800_vm5 = vcmp.ne.s32.totalorder %v2931_v50, 0 }
 0x18c   : > { %750 = vrot.lane.b32.xlu2 %v3517_v38, %s3318_s27  ;;  %3214 = vset.pattern.permute.xlu0 %v6580_v61  ;;  %v6796_v61 = vmov 0  ;;  %6827 = vst [vmem:[#allocation33_spill] sm:$0xff] %v6826_v25  ;;  %vm3776_vm1 = vmand %vm3748_vm9, %vm3729_vm4  ;;  %v3811_v49 = vsel %vm3736_vm11, 1, %v6850_v55  ;;  %v3837_v32 = vsel %vm3748_vm9, 1, %v6850_v55  ;;  %s3343_s27 = smov 15  }
 0x18d   : > { %1658 = vperm.xlu0 %3214, %v3429_v1   ;;  %v6797_v61 = vsel %vm3649_vm14, 4294967295, %v6796_v61  ;;  %6836 = vst [vmem:[#allocation36_spill] sm:$0xff] %v6835_v0  ;;  %vm607_vm2 = vmand %vm3758_vm13, %vm3710_vm10 }
 0x18e   : > { %6798 = vst [vmem:[#allocation22_spill] sm:$0xff] %v6797_v61  ;;  %vm1410_vm14 = vmand %vm3776_vm1, %vm3710_vm10  ;;  %v543_v61 = vlaneseq }
 0x18f   : > { %6847 = vst [vmem:[#allocation39_spill] sm:$0xff] %v6846_v56  ;;  %v3816_v48 = vsel %vm1410_vm14, 1, %v6850_v55  ;;  %vm3822_vm10 = vmand %vm3684_vm7, %vm3740_vm12  ;;  %vm6860_vm7 = vcmp.eq.s32.totalorder %v1172_v59, 1 }
 0x190   : > { %6851 = vst [vmem:[#allocation40_spill] sm:$0xff] %v3811_v49  ;;  %vm557_vm14 = vmand %vm3758_vm13, %vm3794_vm15 }
 0x191   : > { %6856 = vst [vmem:[#allocation43_spill] sm:$0xff] %v3837_v32  ;;  %v559_v46 = vsel %vm557_vm14, 1, %v6850_v55  ;;  %vm1378_vm3 = vmand %vm3776_vm1, %vm3794_vm15 }
 0x192   : > { %vm606_vm14 = vmand %vm3822_vm10, %vm3680_vm6  ;;  %vm6878_vm6 = vnez %v6800_v26 }
 0x193   : > { %789 = vrot.lane.b32.xlu1 %v3526_v40, %s3321_s29 }
 0x194   : > { %793 = vrot.lane.b32.xlu2 %v3524_v39, %s3321_s29 }
 0x195   : > { %3215 = vset.pattern.permute.xlu0 %v6631_v52  ;;  %v1166_v52 = vperm.slane %v1163_v37, 4  ;;  %v1169_v37 = vperm.slane %v1165_v57, 0  ;;  %v1171_v57 = vperm.slane %v1167_v5, 0  ;;  %v609_v5 = vsel %vm607_vm2, 1, %v6850_v55  ;;  %vm556_vm2 = vmand %vm3822_vm10, %vm3800_vm5 }
 0x196   : > { %v558_v59 = vsel %vm556_vm2, 1, %v6850_v55 }
 0x197   : > { %v1170_v30 = vperm.slane %v1166_v52, 0  ;;  %v6848_v52 = vmov 0  ;;  %vm6857_vm4 = vcmp.eq.s32.totalorder %v1169_v37, 1  ;;  %vm6859_vm12 = vcmp.eq.s32.totalorder %v1171_v57, 1 }
 0x198   : > { %v6849_v52 = vsel %vm3800_vm5, 4294967295, %v6848_v52  ;;  %v1177_v25 = vsel %vm6857_vm4, %v3526_v40, 0.0  ;;  %v560_v45 = vperm.slane %v558_v59, 0 }
 0x199   : > { %vm6858_vm4 = vcmp.eq.s32.totalorder %v1170_v30, 1  ;;  %v3867_v30 = vand.u32 127, %v543_v61 }
 0x19a   : > { %v1178_v37 = vsel %vm6858_vm4, %v3515_v36, 0.0  ;;  %v3944_v3 = vperm.slane %v560_v45, 0 }
 0x19b   : > { %889 = vrot.lane.b32.xlu1 %v3515_v36, %s3326_s12  ;;  %vm6693_vm4 = vcmp.lt.s32.totalorder %v3867_v30, 72 }
 0x19c   : > { %795 = vrot.lane.b32.xlu2 %v3517_v38, %s3321_s29  ;;  %s3344_s29 = smov 13  }
 0x19d   : > { %v3574_v2 = vpop.permute.xlu2 %587 }
 0x1a3   : > { %842 = vrot.lane.b32.xlu1 %v3526_v40, %s3324_s11 }
 0x1a4   : > { %846 = vrot.lane.b32.xlu2 %v3524_v39, %s3324_s11 }
 0x1a5   : > { %v3580_v1 = vpop.permute.xlu2 %589 }
 0x1a6   : > { %v595_v45 = vsel %vm6693_vm4, %v3574_v2, %v3580_v1 }
 0x1ab   : > { %934 = vrot.lane.b32.xlu1 %v3515_v36, %s3327_s15 }
 0x1ac   : > { %848 = vrot.lane.b32.xlu2 %v3517_v38, %s3324_s11  ;;  %s3346_s11 = smov 11  }
 0x1ad   : > { %v3586_v6 = vpop.permute.xlu2 %591 }
 0x1b3   : > { %887 = vrot.lane.b32.xlu1 %v3526_v40, %s3326_s12 }
 0x1b4   : > { %891 = vrot.lane.b32.xlu2 %v3524_v39, %s3326_s12 }
 0x1b5   : > { %v3590_v7 = vpop.permute.xlu2 %640  ;;  %v3592_v8 = vpop.permute.xlu1 %537 }
 0x1b6   : > { %v3744_v41 = vpop.permute.xlu0 %541 }
 0x1bb   : > { %981 = vrot.lane.b32.xlu1 %v3515_v36, %s3328_s16 }
 0x1bc   : > { %893 = vrot.lane.b32.xlu2 %v3517_v38, %s3326_s12  ;;  %s3347_s12 = smov 5  }
 0x1bd   : > { %v3596_v9 = vpop.permute.xlu1 %539  ;;  %v3598_v10 = vpop.permute.xlu2 %535 }
 0x1be   : > { %v3826_v34 = vpop.permute.xlu0 %585 }
 0x1c3   : > { %932 = vrot.lane.b32.xlu1 %v3526_v40, %s3327_s15 }
 0x1c4   : > { %936 = vrot.lane.b32.xlu2 %v3524_v39, %s3327_s15 }
 0x1c5   : > { %v3602_v11 = vpop.permute.xlu1 %642  ;;  %v3604_v12 = vpop.permute.xlu2 %638 }
 0x1cb   : > { %1026 = vrot.lane.b32.xlu1 %v3515_v36, %s3329_s17 }
 0x1cc   : > { %938 = vrot.lane.b32.xlu2 %v3517_v38, %s3327_s15  ;;  %s3348_s15 = smov 4  }
 0x1cd   : > { %v3609_v13 = vpop.permute.xlu1 %644  ;;  %v3611_v14 = vpop.permute.xlu2 %746 }
 0x1ce   : > { %6785 = vst [vmem:[#allocation13_spill] sm:$0xff] %v3611_v14 }
 0x1d3   : > { %979 = vrot.lane.b32.xlu1 %v3526_v40, %s3328_s16 }
 0x1d4   : > { %983 = vrot.lane.b32.xlu2 %v3524_v39, %s3328_s16 }
 0x1d5   : > { %v3615_v15 = vpop.permute.xlu1 %703  ;;  %v3617_v16 = vpop.permute.xlu2 %1398 }
 0x1d6   : > { %6786 = vst [vmem:[#allocation14_spill] sm:$0xff] %v3615_v15 }
 0x1d7   : > { %6787 = vst [vmem:[#allocation15_spill] sm:$0xff] %v3617_v16  ;;  %v561_v16 = vperm.slane %v558_v59, 4 }
 0x1d9   : > { %v3946_v14 = vperm.slane %v561_v16, 0  ;;  %v1416_v16 = vperm.slane %v3816_v48, 4 }
 0x1db   : > { %1071 = vrot.lane.b32.xlu1 %v3515_v36, %s3330_s18 }
 0x1dc   : > { %985 = vrot.lane.b32.xlu2 %v3517_v38, %s3328_s16  ;;  %s3349_s16 = smov 3  }
 0x1dd   : > { %v3625_v28 = vpop.permute.xlu1 %1430 }
 0x1de   : > { %6788 = vst [vmem:[#allocation16_spill] sm:$0xff] %v3625_v28  ;;  %v3627_v29 = vpop.permute.xlu2 %1462  ;;  %v563_v28 = vperm.slane %v559_v46, 4 }
 0x1df   : > { %6789 = vst [vmem:[#allocation17_spill] sm:$0xff] %v3627_v29 }
 0x1e3   : > { %1024 = vrot.lane.b32.xlu1 %v3526_v40, %s3329_s17 }
 0x1e4   : > { %1028 = vrot.lane.b32.xlu2 %v3524_v39, %s3329_s17 }
 0x1e5   : > { %v3640_v35 = vpop.permute.xlu1 %699 }
 0x1e6   : > { %6793 = vst [vmem:[#allocation19_spill] sm:$0xff] %v3640_v35  ;;  %v3645_v27 = vpop.permute.xlu2 %750 }
 0x1e7   : > { %6794 = vst [vmem:[#allocation20_spill] sm:$0xff] %v3645_v27 }
 0x1eb   : > { %1118 = vrot.lane.b32.xlu1 %v3515_v36, %s3331_s23 }
 0x1ec   : > { %1030 = vrot.lane.b32.xlu2 %v3517_v38, %s3329_s17  ;;  %s6753_s17 = smov 124  }
 0x1ed   : > { %v3664_v60 = vpop.permute.xlu1 %791 }
 0x1ee   : > { %6801 = vst [vmem:[#allocation23_spill] sm:$0xff] %v3664_v60  ;;  %v3666_v23 = vpop.permute.xlu2 %793  ;;  %v1180_v60 = vsel %vm6860_vm7, %v3517_v38, 0.0 }
 0x1ef   : > { %6802 = vst [vmem:[#allocation24_spill] sm:$0xff] %v3666_v23  ;;  %v3865_v23 = vmul.f32 %v3567_v62, %v1177_v25 }
 0x1f1   : > { %6861 = vst [vmem:[#allocation44_spill] sm:$0xff] %v3865_v23  ;;  %v562_v23 = vperm.slane %v559_v46, 0 }
 0x1f3   : > { %1069 = vrot.lane.b32.xlu1 %v3526_v40, %s3330_s18 }
 0x1f4   : > { %1073 = vrot.lane.b32.xlu2 %v3524_v39, %s3330_s18 }
 0x1f5   : > { %v3708_v20 = vpop.permute.xlu1 %744 }
 0x1f6   : > { %6818 = vst [vmem:[#allocation30_spill] sm:$0xff] %v3708_v20  ;;  %v3722_v17 = vpop.permute.xlu2 %795  ;;  %v2936_v20 = vrot.slane %v3837_v32, 10 }
 0x1f7   : > { %6824 = vst [vmem:[#allocation32_spill] sm:$0xff] %v3722_v17  ;;  %v1415_v17 = vperm.slane %v3816_v48, 0 }
 0x1f8   : > { %vm3905_vm2 = vcmp.ne.s32.totalorder %v2936_v20, 0  ;;  %v3922_v20 = vmul.f32 %v3567_v62, %v1180_v60 }
 0x1f9   : > { %v3888_v61 = vperm.slane %v1415_v17, 0  ;;  %v608_v17 = vsel %vm606_vm14, 1, %v6850_v55  ;;  %vm660_vm14 = vmand %vm3758_vm13, %vm3905_vm2 }
 0x1fa   : > { %6871 = vst [vmem:[#allocation49_spill] sm:$0xff] %v3922_v20  ;;  %v610_v60 = vperm.slane %v608_v17, 0  ;;  %v3941_v20 = vperm.slane %v563_v28, 0 }
 0x1fb   : > { %1116 = vrot.lane.b32.xlu1 %v3526_v40, %s3331_s23 }
 0x1fc   : > { %1075 = vrot.lane.b32.xlu2 %v3517_v38, %s3330_s18  ;;  %s3351_s18 = smov 125  }
 0x1fd   : > { %v3752_v19 = vpop.permute.xlu1 %844 }
 0x1fe   : > { %6837 = vst [vmem:[#allocation37_spill] sm:$0xff] %v3752_v19  ;;  %v3762_v33 = vpop.permute.xlu2 %846  ;;  %v1414_v19 = vperm.slane %v3806_v18, 4 }
 0x1ff   : > { %6840 = vst [vmem:[#allocation38_spill] sm:$0xff] %v3762_v33  ;;  %v613_v33 = vperm.slane %v609_v5, 4 }
 0x200   : > { %v3877_v57 = vperm.slane %v1414_v19, 0 }
 0x201   : > { %v3886_v25 = vperm.slane %v613_v33, 0  ;;  %v1380_v33 = vsel %vm1378_vm3, 1, %v6850_v55 }
 0x202   : > { %v1383_v59 = vperm.slane %v1380_v33, 0  ;;  %vm6885_vm4 = vcmp.eq.s32.totalorder %v3877_v57, 1 }
 0x203   : > { %1197 = vrot.lane.b32.xlu1 %v3524_v39, %s6755_s28  ;;  %v4031_v22 = vsel %vm6885_vm4, %v595_v45, 0.0 }
 0x204   : > { %1120 = vrot.lane.b32.xlu2 %v3524_v39, %s3331_s23  ;;  %v3977_v48 = vperm.slane %v1383_v59, 0  ;;  %6886 = vst [vmem:[#allocation53_spill] sm:$0xff] %v4031_v22 }
 0x205   : > { %v3813_v51 = vpop.permute.xlu1 %789 }
 0x206   : > { %6852 = vst [vmem:[#allocation41_spill] sm:$0xff] %v3813_v51  ;;  %v3828_v47 = vpop.permute.xlu2 %848  ;;  %v612_v51 = vperm.slane %v609_v5, 0  ;;  %v1179_v5 = vsel %vm6859_vm12, %v3524_v39, 0.0  ;;  %vm6865_vm12 = vmand %vm3768_vm0, %vm3800_vm5 }
 0x207   : > { %6855 = vst [vmem:[#allocation42_spill] sm:$0xff] %v3828_v47  ;;  %v2935_v47 = vrot.slane %v3811_v49, 10  ;;  %vm6888_vm5 = vmand %vm3776_vm1, %vm3905_vm2  ;;  %vm6904_vm1 = vnez %v6810_v43 }
 0x208   : > { %v3875_v27 = vperm.slane %v612_v51, 0  ;;  %v3912_v51 = vmul.f32 %v3567_v62, %v1178_v37  ;;  %v3931_v37 = vpop.permute.xlu0 %701 }
 0x209   : > { %vm3880_vm7 = vcmp.ne.s32.totalorder %v2935_v47, 0  ;;  %v1379_v47 = vsel %vm6865_vm12, 1, %v6850_v55  ;;  %6872 = vst [vmem:[#allocation50_spill] sm:$0xff] %v3931_v37  ;;  %vm4003_vm12 = vmand %vm3736_vm11, %vm6878_vm6  ;;  %vm6909_vm11 = vcmp.lt.s32.totalorder %v3867_v30, 72 }
 0x20a   : > { %6869 = vst [vmem:[#allocation47_spill] sm:$0xff] %v3912_v51  ;;  %vm1441_vm3 = vmand %vm3768_vm0, %vm3880_vm7  ;;  %v1381_v51 = vperm.slane %v1379_v47, 0  ;;  %vm6893_vm0 = vcmp.eq.s32.totalorder %v3886_v25, 1 }
 0x20b   : > { %1195 = vrot.lane.b32.xlu1 %v3515_v36, %s6755_s28  ;;  %vm6873_vm13 = vmand %vm3822_vm10, %vm3880_vm7  ;;  %vm6874_vm10 = vnez %v6807_v42 }
 0x20c   : > { %1122 = vrot.lane.b32.xlu2 %v3517_v38, %s3331_s23  ;;  %v661_v53 = vsel %vm6873_vm13, 1, %v6850_v55  ;;  %v3979_v4 = vperm.slane %v1381_v51, 0  ;;  %vm4015_vm13 = vmand %vm3748_vm9, %vm3690_vm8  ;;  %vm6892_vm9 = vnez %v6820_v21 }
 0x20d   : > { %v3890_v35 = vpop.permute.xlu1 %889  ;;  %v663_v37 = vperm.slane %v661_v53, 0  ;;  %vm6897_vm4 = vmand %vm4015_vm13, %vm3794_vm15 }
 0x20e   : > { %6864 = vst [vmem:[#allocation45_spill] sm:$0xff] %v3890_v35  ;;  %v3909_v19 = vpop.permute.xlu2 %891  ;;  %v3915_v35 = vmul.f32 %v3567_v62, %v1179_v5  ;;  %v1382_v5 = vperm.slane %v1379_v47, 4  ;;  %v3939_v62 = vperm.slane %v562_v23, 0  ;;  %v1413_v47 = vperm.slane %v3806_v18, 0 }
 0x20f   : > { %6868 = vst [vmem:[#allocation46_spill] sm:$0xff] %v3909_v19  ;;  %v611_v19 = vperm.slane %v608_v17, 4  ;;  %v1443_v23 = vsel %vm1441_vm3, 1, %v6850_v55  ;;  %v662_v18 = vsel %vm660_vm14, 1, %v6850_v55  ;;  %vm3987_vm3 = vmand %vm6874_vm10, %vm3690_vm8  ;;  %vm6882_vm14 = vcmp.eq.s32.totalorder %v3875_v27, 1 }
 0x210   : > { %6870 = vst [vmem:[#allocation48_spill] sm:$0xff] %v3915_v35  ;;  %v1384_v35 = vperm.slane %v1380_v33, 4  ;;  %v3975_v28 = vperm.slane %v1382_v5, 0  ;;  %v3981_v33 = vperm.slane %v610_v60, 0  ;;  %v1446_v59 = vperm.slane %v1443_v23, 4  ;;  %v4057_v31 = vpop.permute.xlu0 %705 }
 0x211   : > { %v3997_v51 = vperm.slane %v611_v19, 0  ;;  %v1445_v60 = vperm.slane %v1443_v23, 0  ;;  %v665_v32 = vperm.slane %v662_v18, 0  ;;  %v4021_v23 = vperm.slane %v1413_v47, 0  ;;  %6890 = vst [vmem:[#allocation54_spill] sm:$0xff] %v4057_v31  ;;  %v4517_v19 = vld [vmem:[%s6571_s2] sm:$0xff] }
 0x212   : > { %v3995_v5 = vperm.slane %v1384_v35, 0  ;;  %v664_v35 = vperm.slane %v661_v53, 4  ;;  %v666_v27 = vperm.slane %v662_v18, 4  ;;  %vm6887_vm8 = vcmp.lt.s32.totalorder %v3867_v30, 72 }
 0x213   : > { %1289 = vrot.lane.b32.xlu1 %v3524_v39, %s3332_s24  ;;  %v594_v53 = vsel %vm6887_vm8, %v3580_v1, %v3586_v6  ;;  %v1444_v47 = vsel %vm6888_vm5, 1, %v6850_v55  ;;  %v4053_v1 = vperm.slane %v1446_v59, 0  ;;  %vm6891_vm8 = vmand %vm3987_vm3, %vm3794_vm15  ;;  %vm6914_vm10 = vcmp.eq.s32.totalorder %v3944_v3, 1 }
 0x214   : > { %1199 = vrot.lane.b32.xlu2 %v3517_v38, %s6755_s28  ;;  %v4067_v18 = vperm.slane %v664_v35, 0  ;;  %v715_v59 = vsel %vm6891_vm8, 1, %v6850_v55  ;;  %v1448_v0 = vperm.slane %v1444_v47, 4 }
 0x215   : > { %v3991_v17 = vpop.permute.xlu1 %842  ;;  %v719_v56 = vperm.slane %v715_v59, 4 }
 0x216   : > { %6877 = vst [vmem:[#allocation51_spill] sm:$0xff] %v3991_v17  ;;  %v4007_v49 = vpop.permute.xlu2 %893  ;;  %v624_v17 = vsel %vm6882_vm14, %v595_v45, 0.0  ;;  %vm6889_vm14 = vnez %v6849_v52  ;;  %v4055_v45 = vperm.slane %v1445_v60, 0  ;;  %v1447_v60 = vperm.slane %v1444_v47, 0 }
 0x217   : > { %6881 = vst [vmem:[#allocation52_spill] sm:$0xff] %v4007_v49  ;;  %v4023_v49 = vperm.slane %v1416_v16, 0  ;;  %v4049_v57 = vmul.f32 %v3569_v63, %v624_v17  ;;  %v4065_v16 = vperm.slane %v665_v32, 0  ;;  %v4069_v17 = vperm.slane %v663_v37, 0  ;;  %vm6894_vm8 = vmand %vm4003_vm12, %vm6889_vm14 }
 0x218   : > { %v625_v32 = vsel %vm6893_vm0, %v594_v53, 0.0  ;;  %v4087_v37 = vperm.slane %v666_v27, 0  ;;  %v4095_v35 = vsel %vm6894_vm8, 1, %v6850_v55  ;;  %vm6895_vm0 = vcmp.eq.s32.totalorder %v3888_v61, 1 }
 0x219   : > { %v4101_v25 = vsel %vm6895_vm0, %v594_v53, 0.0  ;;  %v4109_v27 = vsel %vm6897_vm4, 1, %v6850_v55  ;;  %vm6899_vm8 = vcmp.lt.s32.totalorder %v3867_v30, 73  ;;  %v718_v53 = vperm.slane %v715_v59, 0  ;;  %vm6901_vm4 = vmand %vm3987_vm3, %vm6892_vm9 }
 0x21a   : > { %6896 = vst [vmem:[#allocation55_spill] sm:$0xff] %v4101_v25  ;;  %v546_v54 = vsel %vm6899_vm8, %v3596_v9, %v3744_v41  ;;  %vm6900_vm0 = vmmov %vm6899_vm8  ;;  %v4129_v47 = vsel %vm6901_vm4, 1, %v6850_v55  ;;  %v6704_v25 = vmov 22   ;;  %v1480_v31 = vperm.slane %v4095_v35, 4 }
 0x21b   : > { %1242 = vrot.lane.b32.xlu1 %v3515_v36, %s3322_s30  ;;  %v547_v61 = vsel %vm6900_vm0, %v3592_v8, %v3596_v9  ;;  %6902 = vst [vmem:[#allocation57_spill] sm:$0xff] %v4129_v47  ;;  %v633_v9 = vmul.f32 %v3569_v63, %v625_v32  ;;  %vm1507_vm4 = vmand %vm4003_vm12, %vm6904_vm1  ;;  %v1481_v59 = vperm.slane %v4109_v27, 0  ;;  %vm6908_vm8 = vcmp.eq.s32.totalorder %v3941_v20, 1 }
 0x21c   : > { %1244 = vrot.lane.b32.xlu2 %v3524_v39, %s3322_s30  ;;  %3210 = vset.pattern.permute.xlu1 %v6704_v25  ;;  %vm6905_vm5 = vmmov %vm6900_vm0  ;;  %v4150_v25 = vperm.slane %v1447_v60, 0  ;;  %v575_v15 = vsel %vm6908_vm8, %v546_v54, 0.0  ;;  %v4169_v20 = vperm.slane %v1448_v0, 0  ;;  %v4174_v60 = vsel %vm1507_vm4, 1, %v6850_v55 }
 0x21d   : > { %v4111_v22 = vpop.permute.xlu1 %934  ;;  %vm6906_vm15 = vmmov %vm6900_vm0  ;;  %vm6907_vm0 = vcmp.eq.s32.totalorder %v3939_v62, 1  ;;  %v4171_v62 = vperm.slane %v718_v53, 0  ;;  %v4190_v0 = vperm.slane %v719_v56, 0  ;;  %v4192_v53 = vperm.slane %v1480_v31, 0 }
 0x21e   : > { %6898 = vst [vmem:[#allocation56_spill] sm:$0xff] %v4111_v22  ;;  %v4131_v22 = vpop.permute.xlu2 %936  ;;  %v549_v32 = vsel %vm6906_vm15, %v3744_v41, %v3598_v10  ;;  %v574_v43 = vsel %vm6907_vm0, %v547_v61, 0.0  ;;  %vm6910_vm15 = vmmov %vm6909_vm11  ;;  %v584_v3 = vmul.f32 %v3561_v58, %v575_v15  ;;  %vm6918_vm4 = vcmp.eq.s32.totalorder %v3997_v51, 1 }
 0x21f   : > { %6903 = vst [vmem:[#allocation58_spill] sm:$0xff] %v4131_v22  ;;  %v548_v22 = vsel %vm6905_vm5, %v3598_v10, %v3592_v8  ;;  %v597_v8 = vsel %vm6909_vm11, %v3586_v6, %v3826_v34  ;;  %v763_v10 = vperm.slane %v4129_v47, 0  ;;  %v596_v41 = vsel %vm6910_vm15, %v3826_v34, %v3574_v2  ;;  %v4202_v47 = vpop.permute.xlu0 %748  ;;  %vm1508_vm0 = vmand %vm4015_vm13, %vm6892_vm9 }
 0x220   : > { %vm6911_vm11 = vnez %v6813_v24  ;;  %v572_v2 = vsel %vm6914_vm10, %v549_v32, 0.0  ;;  %vm6915_vm15 = vcmp.eq.s32.totalorder %v3946_v14, 1  ;;  %v583_v26 = vmul.f32 %v3561_v58, %v574_v43 }
 0x221   : > { %vm4180_vm8 = vmand %vm6911_vm11, %vm6878_vm6  ;;  %v573_v34 = vsel %vm6915_vm15, %v548_v22, 0.0  ;;  %vm6916_vm6 = vcmp.eq.s32.totalorder %v3981_v33, 1  ;;  %v4200_v24 = vperm.slane %v1481_v59, 0  ;;  %vm6917_vm10 = vcmp.eq.s32.totalorder %v3975_v28, 1 }
 0x222   : > { %v622_v14 = vsel %vm6916_vm6, %v597_v8, 0.0  ;;  %v4208_v56 = vsel %vm6917_vm10, %v547_v61, 0.0  ;;  %v4212_v43 = vperm.slane %v763_v10, 0  ;;  %v1512_v15 = vperm.slane %v4174_v60, 4  ;;  %vm712_vm15 = vmand %vm4180_vm8, %vm6889_vm14 }
 0x223   : > { %1334 = vrot.lane.b32.xlu1 %v3524_v39, %s3334_s25  ;;  %v623_v39 = vsel %vm6918_vm4, %v596_v41, 0.0  ;;  %vm6920_vm6 = vcmp.eq.s32.totalorder %v3977_v48, 1  ;;  %v581_v28 = vmul.f32 %v3561_v58, %v572_v2  ;;  %v582_v51 = vmul.f32 %v3561_v58, %v573_v34  ;;  %vm6980_vm11 = vmand %vm4015_vm13, %vm3905_vm2 }
 0x224   : > { %1240 = vrot.lane.b32.xlu2 %v3526_v40, %s3322_s30  ;;  %v4223_v31 = vsel %vm6920_vm6, %v546_v54, 0.0  ;;  %vm6921_vm10 = vcmp.eq.s32.totalorder %v3979_v4, 1  ;;  %vm6923_vm5 = vcmp.eq.s32.totalorder %v3995_v5, 1  ;;  %v630_v48 = vmul.f32 %v3569_v63, %v622_v14  ;;  %v6937_v14 = vld [vmem:[#allocation14_spill] sm:$0xff]  ;;  %s3345_s30 = smov 12  }
 0x225   : > { %v4219_v33 = vpop.permute.xlu1 %887  ;;  %v4229_v61 = vsel %vm6921_vm10, %v548_v22, 0.0  ;;  %v4236_v10 = vsel %vm6923_vm5, %v549_v32, 0.0  ;;  %vm6924_vm6 = vcmp.lt.s32.totalorder %v3867_v30, 71  ;;  %v636_v4 = vadd.f32 %v4049_v57, %v583_v26 }
 0x226   : > { %6919 = vst [vmem:[#allocation59_spill] sm:$0xff] %v4219_v33  ;;  %v4232_v59 = vpop.permute.xlu2 %938  ;;  %v648_v54 = vsel %vm6924_vm6, %v3590_v7, %v3602_v11  ;;  %vm6925_vm10 = vmmov %vm6924_vm6  ;;  %v4248_v22 = vadd.f32 %v633_v9, %v584_v3  ;;  %v631_v5 = vmul.f32 %v3569_v63, %v623_v39  ;;  %v714_v32 = vsel %vm712_vm15, 1, %v6850_v55  ;;  %v6938_v39 = vld [vmem:[#allocation50_spill] sm:$0xff] }
 0x227   : > { %6922 = vst [vmem:[#allocation60_spill] sm:$0xff] %v4232_v59  ;;  %v649_v58 = vsel %vm6925_vm10, %v3604_v12, %v3590_v7  ;;  %vm6926_vm6 = vcmp.eq.s32.totalorder %v4021_v23, 1  ;;  %vm6927_vm10 = vcmp.eq.s32.totalorder %v4023_v49, 1  ;;  %vm1455_vm4 = vcmp.eq.s32.totalorder %v4150_v25, 1 }
 0x228   : > { %v4260_v2 = vsel %vm6926_vm6, %v596_v41, 0.0  ;;  %v4264_v7 = vsel %vm6927_vm10, %v597_v8, 0.0  ;;  %v4268_v63 = vperm.slane %v1512_v15, 0  ;;  %v1479_v57 = vperm.slane %v4095_v35, 0 }
 0x229   : > { %vm6928_vm5 = vcmp.eq.s32.totalorder %v4065_v16, 1  ;;  %vm6929_vm15 = vcmp.eq.s32.totalorder %v4067_v18, 1  ;;  %vm6930_vm10 = vcmp.lt.s32.totalorder %v3867_v30, 71  ;;  %v1482_v8 = vperm.slane %v4109_v27, 4 }
 0x22a   : > { %v677_v9 = vsel %vm6928_vm5, %v648_v54, 0.0  ;;  %v676_v23 = vsel %vm6929_vm15, %v649_v58, 0.0  ;;  %v650_v49 = vsel %vm6930_vm10, %v3609_v13, %v3604_v12  ;;  %v634_v35 = vadd.f32 %v630_v48, %v581_v28  ;;  %vm6931_vm5 = vmmov %vm6930_vm10  ;;  %v4333_v28 = vpop.permute.xlu0 %1364  ;;  %v6941_v48 = vld [vmem:[#allocation57_spill] sm:$0xff] }
 0x22b   : > { %v647_v16 = vsel %vm6931_vm5, %v3602_v11, %v3609_v13  ;;  %v716_v18 = vperm.slane %v714_v32, 0  ;;  %1287 = vrot.lane.b32.xlu1 %v3515_v36, %s3332_s24  ;;  %v635_v12 = vadd.f32 %v631_v5, %v582_v51  ;;  %vm6932_vm10 = vcmp.eq.s32.totalorder %v4053_v1, 1  ;;  %vm803_vm5 = vmand %vm3987_vm3, %vm3905_vm2  ;;  %6940 = vst [vmem:[#allocation14_spill] sm:$0xff] %v4333_v28 }
 0x22c   : > { %v4294_v27 = vsel %vm6932_vm10, %v648_v54, 0.0  ;;  %vm6933_vm6 = vcmp.eq.s32.totalorder %v4055_v45, 1  ;;  %v717_v34 = vperm.slane %v714_v32, 4  ;;  %1291 = vrot.lane.b32.xlu2 %v3517_v38, %s3332_s24  ;;  %v685_v11 = vmul.f32 %v3557_v44, %v677_v9  ;;  %v6943_v9 = vld [vmem:[#allocation43_spill] sm:$0xff]  ;;  %vm757_vm3 = vmand %vm4180_vm8, %vm6904_vm1 }
 0x22d   : > { %v4298_v41 = vsel %vm6933_vm6, %v649_v58, 0.0  ;;  %v684_v13 = vmul.f32 %v3557_v44, %v676_v23  ;;  %vm6934_vm10 = vcmp.eq.s32.totalorder %v4069_v17, 1  ;;  %v4317_v45 = vsel %vm1508_vm0, 1, %v6850_v55  ;;  %vm1539_vm6 = vmand %vm4003_vm12, %vm3880_vm7  ;;  %v4323_v26 = vpop.permute.xlu1 %981 }
 0x22e   : > { %v675_v1 = vsel %vm6934_vm10, %v650_v49, 0.0  ;;  %6935 = vst [vmem:[#allocation61_spill] sm:$0xff] %v4323_v26  ;;  %v6712_v3 = vmov 23   ;;  %vm6936_vm10 = vcmp.eq.s32.totalorder %v4087_v37, 1  ;;  %vm6939_vm0 = vcmp.lt.s32.totalorder %v3867_v30, 65  ;;  %v4338_v58 = vpop.permute.xlu2 %983 }
 0x22f   : > { %3211 = vset.pattern.permute.xlu2 %v6712_v3  ;;  %v678_v17 = vsel %vm6936_vm10, %v647_v16, 0.0  ;;  %v709_v15 = vsel %vm6939_vm0, %v6938_v39, %v6937_v14  ;;  %v4335_v51 = vperm.slane %v1479_v57, 0  ;;  %v764_v54 = vperm.slane %v6941_v48, 4  ;;  %6942 = vst [vmem:[#allocation50_spill] sm:$0xff] %v4338_v58  ;;  %v6948_v3 = vld [vmem:[#allocation40_spill] sm:$0xff] }
 0x230   : > { %v4340_v5 = vperm.slane %v716_v18, 0  ;;  %v4342_v32 = vperm.slane %v1482_v8, 0  ;;  %v4350_v37 = vsel %vm803_vm5, 1, %v6850_v55  ;;  %v2940_v23 = vrot.slane %v6943_v9, 9  ;;  %v6945_v9 = vld [vmem:[#allocation54_spill] sm:$0xff]  ;;  %vm6946_vm5 = vmmov %vm6939_vm0  ;;  %v6949_v8 = vld [vmem:[#allocation13_spill] sm:$0xff] }
 0x231   : > { %v683_v57 = vmul.f32 %v3557_v44, %v675_v1  ;;  %v4355_v48 = vperm.slane %v717_v34, 0  ;;  %v1513_v18 = vperm.slane %v4317_v45, 0  ;;  %v4364_v50 = vsel %vm1539_vm6, 1, %v6850_v55 }
 0x232   : > { %v686_v1 = vmul.f32 %v3557_v44, %v678_v17  ;;  %v708_v34 = vsel %vm6946_vm5, %v6937_v14, %v6945_v9  ;;  %vm6947_vm0 = vcmp.eq.s32.totalorder %v4171_v62, 1  ;;  %v2939_v28 = vrot.slane %v6948_v3, 9 }
 0x233   : > { %v730_v42 = vsel %vm6947_vm0, %v709_v15, 0.0  ;;  %v689_v26 = vadd.f32 %v685_v11, %v636_v4  ;;  %v4378_v58 = vadd.f32 %v684_v13, %v635_v12  ;;  %v4380_v59 = vperm.slane %v764_v54, 0  ;;  %1332 = vrot.lane.b32.xlu1 %v3515_v36, %s3334_s25  ;;  %v6955_v11 = vld [vmem:[#allocation11_spill] sm:$0xff] }
 0x234   : > { %v808_v33 = vperm.slane %v4350_v37, 0  ;;  %vm6950_vm12 = vcmp.lt.s32.totalorder %v3867_v30, 64  ;;  %v1544_v17 = vperm.slane %v4364_v50, 4  ;;  %v759_v62 = vsel %vm757_vm3, 1, %v6850_v55  ;;  %1285 = vrot.lane.b32.xlu2 %v3526_v40, %s3332_s24  ;;  %s3340_s24 = smov 17  }
 0x235   : > { %v754_v44 = vsel %vm6950_vm12, %v6949_v8, %v4202_v47  ;;  %vm4390_vm5 = vcmp.ne.s32.totalorder %v2940_v23, 0  ;;  %v6951_v3 = vmov 0  ;;  %v4398_v4 = vsel %vm1455_vm4, %v647_v16, 0.0 }
 0x236   : > { %v6952_v3 = vsel %vm4390_vm5, 4294967295, %v6951_v3  ;;  %vm6954_vm0 = vcmp.eq.s32.totalorder %v4190_v0, 1  ;;  %v738_v13 = vmul.f32 %v6955_v11, %v730_v42  ;;  %v4403_v14 = vperm.slane %v1513_v18, 0  ;;  %v4419_v0 = vpop.permute.xlu1 %932 }
 0x237   : > { %6953 = vst [vmem:[#allocation57_spill] sm:$0xff] %v6952_v3  ;;  %v731_v12 = vsel %vm6954_vm0, %v708_v34, 0.0  ;;  %v4407_v54 = vadd.f32 %v683_v57, %v634_v35  ;;  %v690_v23 = vadd.f32 %v686_v1, %v4248_v22  ;;  %vm6956_vm3 = vcmp.eq.s32.totalorder %v4169_v20, 1  ;;  %v6961_v20 = vld [vmem:[#allocation26_spill] sm:$0xff] }
 0x238   : > { %v4412_v36 = vsel %vm6956_vm3, %v650_v49, 0.0  ;;  %vm4415_vm12 = vcmp.ne.s32.totalorder %v2939_v28, 0  ;;  %v6957_v25 = vmov 0  ;;  %vm6960_vm0 = vcmp.eq.s32.totalorder %v4212_v43, 1  ;;  %v4433_v49 = vpop.permute.xlu2 %985 }
 0x239   : > { %v6958_v25 = vsel %vm4415_vm12, 4294967295, %v6957_v25  ;;  %v775_v16 = vsel %vm6960_vm0, %v754_v44, 0.0  ;;  %v4423_v18 = vperm.slane %v808_v33, 0  ;;  %v761_v35 = vperm.slane %v759_v62, 0 }
 0x23a   : > { %6959 = vst [vmem:[#allocation43_spill] sm:$0xff] %v6958_v25  ;;  %v762_v57 = vperm.slane %v759_v62, 4  ;;  %vm6962_vm3 = vnez %v6961_v20  ;;  %v739_v28 = vmul.f32 %v6955_v11, %v731_v12  ;;  %v4439_v43 = vperm.slane %v1544_v17, 0  ;;  %v6966_v12 = vld [vmem:[#allocation15_spill] sm:$0xff] }
 0x23b   : > { %vm4429_vm6 = vmand %vm6962_vm3, %vm4390_vm5  ;;  %v1511_v33 = vperm.slane %v4174_v60, 0  ;;  %v1514_v1 = vperm.slane %v4317_v45, 4  ;;  %v742_v42 = vadd.f32 %v738_v13, %v689_v26  ;;  %vm6965_vm15 = vcmp.eq.s32.totalorder %v4192_v53, 1  ;;  %v4459_v60 = vpop.permute.xlu0 %1193  ;;  %v6970_v45 = vld [vmem:[#allocation34_spill] sm:$0xff]  ;;  %1528 = vperm.xlu1 %3210, %v4517_v19  }
 0x23c   : > { %v4449_v62 = vsel %vm6965_vm15, %v709_v15, 0.0  ;;  %v4453_v20 = vmul.f32 %v6966_v12, %v4229_v61  ;;  %v4457_v17 = vmul.f32 %v6966_v12, %v4208_v56  ;;  %6969 = vst [vmem:[#allocation13_spill] sm:$0xff] %v4459_v60  ;;  %vm6971_vm0 = vnez %v6970_v45  ;;  %v6977_v15 = vld [vmem:[#allocation2_spill] sm:$0xff]  ;;  %v6978_v45 = vld [vmem:[#allocation39_spill] sm:$0xff]  ;;  %1336 = vrot.lane.b32.xlu2 %v3517_v38, %s3334_s25 }
 0x23d   : > { %vm4466_vm4 = vmand %vm6971_vm0, %vm4415_vm12  ;;  %vm6974_vm15 = vcmp.eq.s32.totalorder %v4200_v24, 1  ;;  %v4476_v56 = vmul.f32 %v6966_v12, %v4223_v31  ;;  %v4480_v26 = vmul.f32 %v6966_v12, %v4236_v10  ;;  %v783_v13 = vmul.f32 %v6977_v15, %v775_v16  ;;  %v7060_v53 = vld [vmem:[#allocation22_spill] sm:$0xff] }
 0x23e   : > { %6967 = vst [vmem:[#allocation54_spill] sm:$0xff] %v4453_v20  ;;  %v4472_v61 = vsel %vm6974_vm15, %v708_v34, 0.0  ;;  %vm6979_vm0 = vnez %v6978_v45  ;;  %v4489_v24 = vperm.slane %v761_v35, 0  ;;  %v4491_v34 = vperm.slane %v762_v57, 0  ;;  %v6983_v35 = vld [vmem:[#allocation19_spill] sm:$0xff]  ;;  %v4554_v38 = vpop.permute.xlu1 %1026 }
 0x23f   : > { %6968 = vst [vmem:[#allocation40_spill] sm:$0xff] %v4457_v17  ;;  %vm856_vm3 = vmand %vm4429_vm6, %vm6979_vm0  ;;  %v809_v31 = vperm.slane %v4350_v37, 4  ;;  %v4500_v10 = vsel %vm6980_vm11, 1, %v6850_v55  ;;  %v4502_v16 = vadd.f32 %v739_v28, %v690_v23  ;;  %vm6981_vm10 = vcmp.eq.s32.totalorder %v4268_v63, 1  ;;  %v6985_v63 = vld [vmem:[#allocation16_spill] sm:$0xff] }
 0x240   : > { %6975 = vst [vmem:[#allocation11_spill] sm:$0xff] %v4476_v56  ;;  %v4506_v12 = vsel %vm6981_vm10, %v754_v44, 0.0  ;;  %vm6984_vm15 = vcmp.lt.s32.totalorder %v3867_v30, 65  ;;  %v4512_v37 = vperm.slane %v1511_v33, 0  ;;  %v4520_v23 = vadd.f32 %v783_v13, %v742_v42  ;;  %v6989_v42 = vld [vmem:[#allocation55_spill] sm:$0xff]  ;;  %v7004_v17 = vld [vmem:[#allocation20_spill] sm:$0xff] }
 0x241   : > { %6976 = vst [vmem:[#allocation26_spill] sm:$0xff] %v4480_v26  ;;  %v711_v57 = vsel %vm6984_vm15, %v6945_v9, %v6983_v35  ;;  %v4524_v44 = vmul.f32 %v6985_v63, %v4260_v2  ;;  %v4526_v28 = vperm.slane %v1514_v1, 0  ;;  %v6987_v9 = vld [vmem:[#allocation53_spill] sm:$0xff]  ;;  %v4543_v2 = vmul.f32 %v6985_v63, %v6989_v42  ;;  %vm6991_vm11 = vmmov %vm6984_vm15 }
 0x242   : > { %6982 = vst [vmem:[#allocation15_spill] sm:$0xff] %v4506_v12  ;;  %v4529_v12 = vsel %vm856_vm3, 1, %v6850_v55  ;;  %v4539_v33 = vmul.f32 %v6985_v63, %v6987_v9  ;;  %v710_v1 = vsel %vm6991_vm11, %v6983_v35, %v6938_v39  ;;  %v1545_v13 = vperm.slane %v4500_v10, 0  ;;  %v6993_v42 = vld [vmem:[#allocation17_spill] sm:$0xff]  ;;  %vm7006_vm15 = vmand %vm4180_vm8, %vm3880_vm7 }
 0x243   : > { %6986 = vst [vmem:[#allocation34_spill] sm:$0xff] %v4524_v44  ;;  %v4558_v9 = vmul.f32 %v6985_v63, %v4264_v7  ;;  %vm6995_vm3 = vcmp.eq.s32.totalorder %v4340_v5, 1  ;;  %v4568_v35 = vperm.slane %v809_v31, 0  ;;  %v6996_v44 = vld [vmem:[#allocation36_spill] sm:$0xff]  ;;  %v6998_v7 = vmov 0  ;;  %v4578_v63 = vpop.permute.xlu2 %1028 }
 0x244   : > { %6988 = vst [vmem:[#allocation2_spill] sm:$0xff] %v4539_v33  ;;  %v4562_v33 = vmul.f32 %v6993_v42, %v4298_v41  ;;  %v728_v39 = vsel %vm6995_vm3, %v711_v57, 0.0  ;;  %vm6997_vm13 = vnez %v6996_v44  ;;  %v4582_v41 = vmul.f32 %v6993_v42, %v4294_v27  ;;  %1330 = vrot.lane.b32.xlu2 %v3526_v40, %s3334_s25  ;;  %v7024_v40 = vld [vmem:[#allocation30_spill] sm:$0xff]  ;;  %s3341_s25 = smov 19  }
 0x245   : > { %6990 = vst [vmem:[#allocation39_spill] sm:$0xff] %v4543_v2  ;;  %vm4574_vm10 = vmand %vm6997_vm13, %vm4390_vm5  ;;  %v4586_v5 = vmul.f32 %v6993_v42, %v4398_v4  ;;  %v4590_v31 = vmul.f32 %v6993_v42, %v4412_v36  ;;  %v861_v44 = vperm.slane %v4529_v12, 0  ;;  %vm7003_vm13 = vcmp.eq.s32.totalorder %v4355_v48, 1  ;;  %v4630_v42 = vpop.permute.xlu0 %1246 }
 0x246   : > { %6992 = vst [vmem:[#allocation19_spill] sm:$0xff] %v4558_v9  ;;  %v6999_v7 = vsel %vm4574_vm10, 4294967295, %v6998_v7  ;;  %vm7005_vm3 = vcmp.lt.s32.totalorder %v3867_v30, 64  ;;  %v804_v27 = vsel %vm7006_vm15, 1, %v6850_v55  ;;  %v736_v4 = vmul.f32 %v6955_v11, %v728_v39  ;;  %v7011_v39 = vld [vmem:[#allocation24_spill] sm:$0xff] }
 0x247   : > { %6994 = vst [vmem:[#allocation16_spill] sm:$0xff] %v4562_v33  ;;  %v729_v33 = vsel %vm7003_vm13, %v710_v1, 0.0  ;;  %v753_v20 = vsel %vm7005_vm3, %v4202_v47, %v7004_v17  ;;  %v4607_v36 = vperm.slane %v1545_v13, 0  ;;  %vm7007_vm13 = vmand %vm4466_vm4, %vm6889_vm14  ;;  %v1543_v48 = vperm.slane %v4364_v50, 0  ;;  %v7019_v9 = vld [vmem:[#allocation28_spill] sm:$0xff] }
 0x248   : > { %7000 = vst [vmem:[#allocation53_spill] sm:$0xff] %v4582_v41  ;;  %v4615_v47 = vsel %vm7007_vm13, 1, %v6850_v55  ;;  %vm7008_vm15 = vcmp.eq.s32.totalorder %v4335_v51, 1  ;;  %vm7009_vm3 = vcmp.eq.s32.totalorder %v4342_v32, 1  ;;  %v7012_v41 = vld [vmem:[#allocation23_spill] sm:$0xff]  ;;  %vm7013_vm13 = vcmp.lt.s32.totalorder %v3867_v30, 63 }
 0x249   : > { %7001 = vst [vmem:[#allocation55_spill] sm:$0xff] %v4586_v5  ;;  %v4624_v6 = vsel %vm7008_vm15, %v710_v1, 0.0  ;;  %v4628_v13 = vsel %vm7009_vm3, %v711_v57, 0.0  ;;  %v799_v50 = vsel %vm7013_vm13, %v7012_v41, %v7011_v39  ;;  %vm901_vm15 = vmand %vm4429_vm6, %vm6892_vm9  ;;  %v737_v51 = vmul.f32 %v6955_v11, %v729_v33 }
 0x24a   : > { %7002 = vst [vmem:[#allocation17_spill] sm:$0xff] %v4590_v31  ;;  %v1546_v31 = vperm.slane %v4500_v10, 4  ;;  %vm7014_vm3 = vcmp.eq.s32.totalorder %v4380_v59, 1  ;;  %v806_v57 = vperm.slane %v804_v27, 0  ;;  %v807_v1 = vperm.slane %v804_v27, 4  ;;  %vm1605_vm13 = vmand %vm4466_vm4, %vm6904_vm1 }
 0x24b   : > { %7010 = vst [vmem:[#allocation36_spill] sm:$0xff] %v4630_v42  ;;  %v776_v32 = vsel %vm7014_vm3, %v753_v20, 0.0  ;;  %v6720_v10 = vmov 24   ;;  %vm7016_vm11 = vcmp.eq.s32.totalorder %v4403_v14, 1  ;;  %v4656_v59 = vperm.slane %v861_v44, 0  ;;  %vm7018_vm3 = vmand %vm4574_vm10, %vm6979_vm0 }
 0x24c   : > { %3212 = vset.pattern.permute.xlu1 %v6720_v10  ;;  %v4654_v11 = vsel %vm7016_vm11, %v753_v20, 0.0  ;;  %v1578_v33 = vperm.slane %v4615_v47, 4  ;;  %v4665_v27 = vsel %vm7018_vm3, 1, %v6850_v55  ;;  %vm7020_vm5 = vnez %v7019_v9  ;;  %1560 = vperm.xlu2 %3211, %v4517_v19  }
 0x24d   : > { %7017 = vst [vmem:[#allocation20_spill] sm:$0xff] %v4654_v11  ;;  %vm4671_vm8 = vmand %vm7020_vm5, %vm4415_vm12  ;;  %1594 = vperm.xlu1 %3212, %v4517_v19   ;;  %v740_v20 = vadd.f32 %v736_v4, %v4407_v54  ;;  %vm7023_vm11 = vcmp.eq.s32.totalorder %v4423_v18, 1  ;;  %v862_v10 = vperm.slane %v4529_v12, 4  ;;  %v4688_v9 = vsel %vm901_vm15, 1, %v6850_v55  ;;  %v4690_v11 = vpop.permute.xlu1 %979  ;;  %v4709_v4 = vpop.permute.xlu2 %1030 }
 0x24e   : > { %v820_v44 = vsel %vm7023_vm11, %v799_v50, 0.0  ;;  %v784_v2 = vmul.f32 %v6977_v15, %v776_v32  ;;  %vm7025_vm5 = vcmp.lt.s32.totalorder %v3867_v30, 64  ;;  %v4707_v12 = vsel %vm1605_vm13, 1, %v6850_v55  ;;  %7028 = vst [vmem:[#allocation23_spill] sm:$0xff] %v4709_v4  ;;  %vm855_vm13 = vmand %vm4671_vm8, %vm6889_vm14  ;;  %v7032_v4 = vld [vmem:[#allocation32_spill] sm:$0xff] }
 0x24f   : > { %v755_v54 = vsel %vm7025_vm5, %v7024_v40, %v6949_v8  ;;  %vm7026_vm3 = vmmov %vm7025_vm5  ;;  %7027 = vst [vmem:[#allocation24_spill] sm:$0xff] %v4707_v12  ;;  %v741_v32 = vadd.f32 %v737_v51, %v4378_v58  ;;  %v4714_v8 = vperm.slane %v806_v57, 0  ;;  %v4716_v26 = vperm.slane %v807_v1, 0 }
 0x250   : > { %v756_v18 = vsel %vm7026_vm3, %v7004_v17, %v7024_v40  ;;  %v1579_v17 = vperm.slane %v4665_v27, 0  ;;  %v7029_v40 = vld [vmem:[#allocation3_spill] sm:$0xff]  ;;  %v4724_v42 = vperm.slane %v1578_v33, 0  ;;  %v4726_v58 = vperm.slane %v1543_v48, 0 }
 0x251   : > { %v828_v56 = vmul.f32 %v7029_v40, %v820_v44  ;;  %v906_v51 = vperm.slane %v4688_v9, 0  ;;  %vm7030_vm5 = vcmp.eq.s32.totalorder %v4489_v24, 1  ;;  %vm7031_vm3 = vcmp.eq.s32.totalorder %v4491_v34, 1 }
 0x252   : > { %v773_v57 = vsel %vm7030_vm5, %v756_v18, 0.0  ;;  %v774_v1 = vsel %vm7031_vm3, %v755_v54, 0.0  ;;  %v4733_v60 = vperm.slane %v862_v10, 0  ;;  %v1610_v25 = vperm.slane %v4707_v12, 4  ;;  %v1497_v10 = vpop.permute.xlu0 %1496 }
 0x253   : > { %v788_v3 = vadd.f32 %v784_v2, %v4502_v16  ;;  %vm7033_vm11 = vcmp.lt.s32.totalorder %v3867_v30, 63  ;;  %vm869_vm15 = vcmp.eq.s32.totalorder %v4656_v59, 1  ;;  %v4742_v33 = vperm.slane %v1546_v31, 0 }
 0x254   : > { %v798_v48 = vsel %vm7033_vm11, %v7011_v39, %v7032_v4  ;;  %v857_v24 = vsel %vm855_vm13, 1, %v6850_v55  ;;  %vm7034_vm5 = vcmp.eq.s32.totalorder %v4439_v43, 1  ;;  %v4751_v16 = vperm.slane %v1579_v17, 0  ;;  %vm1606_vm11 = vmand %vm4574_vm10, %vm6892_vm9 }
 0x255   : > { %v4747_v34 = vsel %vm7034_vm5, %v799_v50, 0.0  ;;  %v4754_v2 = vadd.f32 %v828_v56, %v4520_v23  ;;  %v781_v39 = vmul.f32 %v6977_v15, %v773_v57  ;;  %v782_v31 = vmul.f32 %v6977_v15, %v774_v1  ;;  %v4773_v15 = vpop.permute.xlu1 %1071  ;;  %vm946_vm5 = vmand %vm4429_vm6, %vm3905_vm2 }
 0x256   : > { %7035 = vst [vmem:[#allocation27_spill] sm:$0xff] %v4747_v34  ;;  %v4759_v44 = vperm.slane %v906_v51, 0  ;;  %v7036_v43 = vmov 1   ;;  %vm7037_vm13 = vcmp.eq.s32.totalorder %v4568_v35, 1  ;;  %v4766_v56 = vperm.slane %v1610_v25, 0  ;;  %vm900_vm6 = vmand %vm4671_vm8, %vm6904_vm1 }
 0x257   : > { %3217 = vset.pattern.permute.xlu1 %v7036_v43  ;;  %v821_v50 = vsel %vm7037_vm13, %v798_v48, 0.0  ;;  %v859_v23 = vperm.slane %v857_v24, 0  ;;  %v1577_v17 = vperm.slane %v4615_v47, 0  ;;  %vm7038_vm12 = vcmp.eq.s32.totalorder %v4512_v37, 1  ;;  %v4788_v47 = vpop.permute.xlu2 %1073 }
 0x258   : > { %v4777_v51 = vsel %vm7038_vm12, %v755_v54, 0.0  ;;  %vm7040_vm13 = vcmp.eq.s32.totalorder %v4526_v28, 1  ;;  %v860_v25 = vperm.slane %v857_v24, 4  ;;  %v1580_v57 = vperm.slane %v4665_v27, 4 }
 0x259   : > { %7039 = vst [vmem:[#allocation28_spill] sm:$0xff] %v4777_v51  ;;  %v4781_v35 = vsel %vm7040_vm13, %v756_v18, 0.0  ;;  %v4791_v1 = vmul.f32 %v1497_v10, %v4624_v6  ;;  %v4794_v37 = vmul.f32 %v1497_v10, %v4449_v62  ;;  %v4797_v28 = vmul.f32 %v1497_v10, %v4472_v61 }
 0x25a   : > { %7041 = vst [vmem:[#allocation30_spill] sm:$0xff] %v4781_v35  ;;  %v907_v27 = vperm.slane %v4688_v9, 4  ;;  %v785_v54 = vadd.f32 %v781_v39, %v740_v20  ;;  %v786_v18 = vadd.f32 %v782_v31, %v741_v32  ;;  %v4802_v22 = vmul.f32 %v1497_v10, %v4628_v13  ;;  %v7049_v20 = vld [vmem:[#allocation38_spill] sm:$0xff]  ;;  %v7050_v9 = vld [vmem:[#allocation37_spill] sm:$0xff] }
 0x25b   : > { %7042 = vst [vmem:[#allocation3_spill] sm:$0xff] %v4791_v1  ;;  %v829_v24 = vmul.f32 %v7029_v40, %v821_v50  ;;  %v4809_v62 = vperm.slane %v859_v23, 0  ;;  %v4817_v61 = vsel %vm1606_vm11, 1, %v6850_v55  ;;  %v4820_v6 = vsel %vm946_vm5, 1, %v6850_v55  ;;  %vm1637_vm11 = vmand %vm4466_vm4, %vm3880_vm7  ;;  %v7053_v10 = vld [vmem:[#allocation41_spill] sm:$0xff] }
 0x25c   : > { %7043 = vst [vmem:[#allocation32_spill] sm:$0xff] %v4794_v37  ;;  %vm7047_vm13 = vcmp.eq.s32.totalorder %v4607_v36, 1  ;;  %vm7051_vm12 = vcmp.lt.s32.totalorder %v3867_v30, 57  ;;  %v864_v39 = vperm.slane %v860_v25, 0  ;;  %v4831_v31 = vperm.slane %v1577_v17, 0  ;;  %v7058_v17 = vld [vmem:[#allocation33_spill] sm:$0xff] }
 0x25d   : > { %7044 = vst [vmem:[#allocation62_spill] sm:$0xff] %v4797_v28  ;;  %v4824_v13 = vsel %vm7047_vm13, %v798_v48, 0.0  ;;  %v852_v32 = vsel %vm7051_vm12, %v7050_v9, %v7049_v20  ;;  %vm7054_vm5 = vcmp.lt.s32.totalorder %v3867_v30, 63  ;;  %v4849_v50 = vperm.slane %v907_v27, 0  ;;  %v7076_v28 = vld [vmem:[#allocation45_spill] sm:$0xff] }
 0x25e   : > { %7045 = vst [vmem:[#allocation63_spill] sm:$0xff] %v4802_v22  ;;  %v4841_v36 = vsel %vm7054_vm5, %v7053_v10, %v7012_v41  ;;  %vm7056_vm12 = vmmov %vm7054_vm5  ;;  %v902_v23 = vsel %vm900_vm6, 1, %v6850_v55  ;;  %vm7059_vm13 = vnez %v7058_v17  ;;  %vm7061_vm4 = vnez %v7060_v53  ;;  %v7065_v17 = vld [vmem:[#allocation42_spill] sm:$0xff] }
 0x25f   : > { %7046 = vst [vmem:[#allocation64_spill] sm:$0xff] %v4817_v61  ;;  %v4847_v48 = vsel %vm7056_vm12, %v7032_v4, %v7053_v10  ;;  %vm4856_vm3 = vmand %vm7061_vm4, %vm7059_vm13  ;;  %v833_v41 = vadd.f32 %v829_v24, %v788_v3  ;;  %v4860_v43 = vperm.slane %v1580_v57, 0  ;;  %v951_v4 = vperm.slane %v4820_v6, 0  ;;  %v4877_v57 = vpop.permute.xlu1 %1024  ;;  %v4890_v37 = vpop.permute.xlu2 %1075  ;;  %v7075_v22 = vld [vmem:[#allocation46_spill] sm:$0xff] }
 0x260   : > { %7048 = vst [vmem:[#allocation65_spill] sm:$0xff] %v4824_v13  ;;  %v1611_v13 = vperm.slane %v4817_v61, 0  ;;  %v6728_v10 = vmov 25   ;;  %v873_v27 = vsel %vm869_vm15, %v852_v32, 0.0  ;;  %vm7066_vm6 = vcmp.lt.s32.totalorder %v3867_v30, 57 }
 0x261   : > { %7052 = vst [vmem:[#allocation38_spill] sm:$0xff] %v4831_v31  ;;  %3213 = vset.pattern.permute.xlu2 %v6728_v10  ;;  %v4871_v34 = vsel %vm7066_vm6, %v7049_v20, %v7065_v17  ;;  %v4875_v3 = vsel %vm1637_vm11, 1, %v6850_v55  ;;  %vm7068_vm12 = vcmp.eq.s32.totalorder %v4714_v8, 1  ;;  %vm7069_vm15 = vcmp.eq.s32.totalorder %v4716_v26, 1  ;;  %vm993_vm11 = vmand %vm4856_vm3, %vm6979_vm0  ;;  %v7072_v26 = vld [vmem:[#allocation4_spill] sm:$0xff] }
 0x262   : > { %7055 = vst [vmem:[#allocation37_spill] sm:$0xff] %v4841_v36  ;;  %1626 = vperm.xlu2 %3213, %v4517_v19   ;;  %v818_v59 = vsel %vm7068_vm12, %v4847_v48, 0.0  ;;  %v819_v24 = vsel %vm7069_vm15, %v4841_v36, 0.0  ;;  %v904_v10 = vperm.slane %v902_v23, 0  ;;  %v905_v20 = vperm.slane %v902_v23, 4  ;;  %v7090_v36 = vld [vmem:[#allocation18_spill] sm:$0xff] }
 0x263   : > { %7057 = vst [vmem:[#allocation41_spill] sm:$0xff] %v4847_v48  ;;  %vm7070_vm13 = vcmp.eq.s32.totalorder %v4724_v42, 1  ;;  %vm868_vm6 = vcmp.eq.s32.totalorder %v864_v39, 1  ;;  %v881_v8 = vmul.f32 %v7072_v26, %v873_v27  ;;  %vm7073_vm15 = vcmp.eq.s32.totalorder %v4733_v60, 1  ;;  %v7085_v48 = vld [vmem:[#allocation52_spill] sm:$0xff] }
 0x264   : > { %7064 = vst [vmem:[#allocation33_spill] sm:$0xff] %v4860_v43  ;;  %v4894_v19 = vsel %vm7070_vm13, %v852_v32, 0.0  ;;  %v874_v23 = vsel %vm7073_vm15, %v4871_v34, 0.0  ;;  %v4902_v1 = vperm.slane %v1611_v13, 0  ;;  %v955_v51 = vperm.slane %v951_v4, 0  ;;  %vm945_vm13 = vmand %vm4671_vm8, %vm3880_vm7 }
 0x265   : > { %7067 = vst [vmem:[#allocation22_spill] sm:$0xff] %v4871_v34  ;;  %v826_v42 = vmul.f32 %v7029_v40, %v818_v59  ;;  %v827_v32 = vmul.f32 %v7029_v40, %v819_v24  ;;  %v995_v27 = vsel %vm993_vm11, 1, %v6850_v55  ;;  %vm7077_vm15 = vcmp.lt.s32.totalorder %v3867_v30, 56  ;;  %v7079_v59 = vld [vmem:[#allocation51_spill] sm:$0xff] }
 0x266   : > { %7071 = vst [vmem:[#allocation42_spill] sm:$0xff] %v4894_v19  ;;  %v4916_v60 = vsel %vm7077_vm15, %v7076_v28, %v7075_v22  ;;  %v908_v13 = vperm.slane %v904_v10, 0  ;;  %v909_v4 = vperm.slane %v905_v20, 0  ;;  %v952_v35 = vperm.slane %v4820_v6, 4  ;;  %vm7086_vm5 = vmmov %vm7077_vm15  ;;  %v7095_v6 = vld [vmem:[#allocation5_spill] sm:$0xff] }
 0x267   : > { %7074 = vst [vmem:[#allocation4_spill] sm:$0xff] %v4902_v1  ;;  %v882_v14 = vmul.f32 %v7072_v26, %v874_v23  ;;  %vm7080_vm8 = vcmp.lt.s32.totalorder %v3867_v30, 57  ;;  %v947_v19 = vsel %vm945_vm13, 1, %v6850_v55  ;;  %v885_v10 = vadd.f32 %v881_v8, %v4754_v2 }
 0x268   : > { %7078 = vst [vmem:[#allocation46_spill] sm:$0xff] %v4916_v60  ;;  %v4924_v40 = vsel %vm7080_vm8, %v7079_v59, %v7050_v9  ;;  %vm7082_vm11 = vmmov %vm7080_vm8  ;;  %v998_v20 = vperm.slane %v995_v27, 0  ;;  %v830_v23 = vadd.f32 %v826_v42, %v785_v54  ;;  %v831_v34 = vadd.f32 %v827_v32, %v786_v18  ;;  %v4952_v54 = vpop.permute.xlu1 %1118  ;;  %v4964_v42 = vpop.permute.xlu2 %1120 }
 0x269   : > { %7081 = vst [vmem:[#allocation45_spill] sm:$0xff] %v4924_v40  ;;  %v4930_v24 = vsel %vm7082_vm11, %v7065_v17, %v7079_v59  ;;  %vm7084_vm8 = vcmp.eq.s32.totalorder %v4759_v44, 1  ;;  %v4942_v17 = vsel %vm7086_vm5, %v7075_v22, %v7085_v48  ;;  %v7088_v59 = vld [vmem:[#allocation35_spill] sm:$0xff]  ;;  %vm7091_vm11 = vnez %v7090_v36  ;;  %vm1038_vm5 = vmand %vm4856_vm3, %vm6892_vm9 }
 0x26a   : > { %7083 = vst [vmem:[#allocation51_spill] sm:$0xff] %v4930_v24  ;;  %v918_v9 = vsel %vm7084_vm8, %v4916_v60, 0.0  ;;  %vm7089_vm13 = vnez %v7088_v59  ;;  %3216 = vset.pattern.permute.xlu2 %v6850_v55  ;;  %vm7094_vm8 = vcmp.eq.s32.totalorder %v4809_v62, 1  ;;  %v872_v18 = vsel %vm868_vm6, %v4924_v40, 0.0 }
 0x26b   : > { %7087 = vst [vmem:[#allocation52_spill] sm:$0xff] %v4942_v17  ;;  %vm4948_vm15 = vmand %vm7091_vm11, %vm7089_vm13  ;;  %v871_v44 = vsel %vm7094_vm8, %v4930_v24, 0.0  ;;  %v956_v22 = vperm.slane %v952_v35, 0  ;;  %v949_v8 = vperm.slane %v947_v19, 0  ;;  %v886_v32 = vadd.f32 %v882_v14, %v833_v41  ;;  %v7097_v14 = vld [vmem:[#allocation58_spill] sm:$0xff] }
 0x26c   : > { %v950_v59 = vperm.slane %v947_v19, 4  ;;  %v926_v60 = vmul.f32 %v7095_v6, %v918_v9  ;;  %vm7096_vm8 = vcmp.eq.s32.totalorder %v4849_v50, 1  ;;  %v1002_v35 = vperm.slane %v998_v20, 0  ;;  %vm992_vm10 = vmand %vm4948_vm15, %vm6889_vm14  ;;  %v7098_v19 = vld [vmem:[#allocation56_spill] sm:$0xff] }
 0x26d   : > { %v919_v62 = vsel %vm7096_vm8, %v4942_v17, 0.0  ;;  %v879_v39 = vmul.f32 %v7072_v26, %v871_v44  ;;  %v880_v41 = vmul.f32 %v7072_v26, %v872_v18  ;;  %vm7099_vm12 = vcmp.lt.s32.totalorder %v3867_v30, 55  ;;  %v7101_v17 = vld [vmem:[#allocation59_spill] sm:$0xff] }
 0x26e   : > { %v4981_v9 = vsel %vm7099_vm12, %v7098_v19, %v7097_v14  ;;  %v1040_v50 = vsel %vm1038_vm5, 1, %v6850_v55  ;;  %vm7102_vm8 = vcmp.lt.s32.totalorder %v3867_v30, 56  ;;  %v953_v24 = vperm.slane %v949_v8, 0 }
 0x26f   : > { %7100 = vst [vmem:[#allocation35_spill] sm:$0xff] %v4981_v9  ;;  %v4988_v20 = vsel %vm7102_vm8, %v7085_v48, %v7101_v17  ;;  %v999_v40 = vperm.slane %v995_v27, 4  ;;  %v927_v44 = vmul.f32 %v7095_v6, %v919_v62  ;;  %vm7104_vm13 = vmmov %vm7102_vm8  ;;  %v954_v18 = vperm.slane %v950_v59, 0  ;;  %v7108_v62 = vld [vmem:[#allocation60_spill] sm:$0xff]  ;;  %v7112_v59 = vld [vmem:[#allocation6_spill] sm:$0xff] }
 0x270   : > { %7103 = vst [vmem:[#allocation18_spill] sm:$0xff] %v4988_v20  ;;  %v4995_v26 = vsel %vm7104_vm13, %v7101_v17, %v7076_v28  ;;  %v994_v1 = vsel %vm992_vm10, 1, %v6850_v55  ;;  %v930_v12 = vadd.f32 %v926_v60, %v885_v10  ;;  %vm7106_vm12 = vcmp.eq.s32.totalorder %v955_v51, 1  ;;  %vm1083_vm10 = vmand %vm4856_vm3, %vm3905_vm2  ;;  %v5012_v51 = vpop.permute.xlu1 %1069 }
 0x271   : > { %7105 = vst [vmem:[#allocation5_spill] sm:$0xff] %v4995_v26  ;;  %v963_v61 = vsel %vm7106_vm12, %v4981_v9, 0.0  ;;  %vm1006_vm5 = vcmp.eq.s32.totalorder %v1002_v35, 1  ;;  %v1043_v48 = vperm.slane %v1040_v50, 0  ;;  %v883_v43 = vadd.f32 %v879_v39, %v830_v23  ;;  %v5016_v23 = vpop.permute.xlu2 %1122  ;;  %vm1037_vm3 = vmand %vm4948_vm15, %vm6904_vm1 }
 0x272   : > { %v884_v8 = vadd.f32 %v880_v41, %v831_v34  ;;  %vm7107_vm8 = vcmp.eq.s32.totalorder %v908_v13, 1  ;;  %vm7109_vm6 = vcmp.lt.s32.totalorder %v3867_v30, 55  ;;  %vm7111_vm13 = vcmp.eq.s32.totalorder %v909_v4, 1  ;;  %v7114_v4 = vld [vmem:[#allocation50_spill] sm:$0xff] }
 0x273   : > { %v916_v27 = vsel %vm7107_vm8, %v4988_v20, 0.0  ;;  %v5006_v28 = vsel %vm7109_vm6, %v7097_v14, %v7108_v62  ;;  %v917_v60 = vsel %vm7111_vm13, %v4995_v26, 0.0  ;;  %v1003_v34 = vperm.slane %v999_v40, 0  ;;  %v7115_v40 = vld [vmem:[#allocation61_spill] sm:$0xff] }
 0x274   : > { %7110 = vst [vmem:[#allocation58_spill] sm:$0xff] %v5006_v28  ;;  %v996_v10 = vperm.slane %v994_v1, 0  ;;  %v997_v13 = vperm.slane %v994_v1, 4  ;;  %v931_v17 = vadd.f32 %v927_v44, %v886_v32  ;;  %v971_v39 = vmul.f32 %v7112_v59, %v963_v61 }
 0x275   : > { %v924_v41 = vmul.f32 %v7095_v6, %v916_v27  ;;  %vm7113_vm8 = vcmp.eq.s32.totalorder %v956_v22, 1  ;;  %v1047_v14 = vperm.slane %v1043_v48, 0  ;;  %v1085_v20 = vsel %vm1083_vm10, 1, %v6850_v55 }
 0x276   : > { %v964_v25 = vsel %vm7113_vm8, %v5006_v28, 0.0  ;;  %v925_v1 = vmul.f32 %v7095_v6, %v917_v60  ;;  %vm7116_vm13 = vcmp.lt.s32.totalorder %v3867_v30, 9  ;;  %v1044_v32 = vperm.slane %v1040_v50, 4  ;;  %vm7117_vm8 = vmmov %vm7109_vm6 }
 0x277   : > { %v989_v61 = vsel %vm7116_vm13, %v7115_v40, %v7114_v4  ;;  %v5037_v22 = vsel %vm7117_vm8, %v7108_v62, %v4419_v0  ;;  %v1000_v44 = vperm.slane %v996_v10, 0  ;;  %v1001_v48 = vperm.slane %v997_v13, 0  ;;  %vm7121_vm12 = vmmov %vm7116_vm13 }
 0x278   : > { %7118 = vst [vmem:[#allocation56_spill] sm:$0xff] %v5037_v22  ;;  %v972_v27 = vmul.f32 %v7112_v59, %v964_v25  ;;  %v5044_v6 = vsel %vm7109_vm6, %v4419_v0, %v7098_v19  ;;  %v1088_v60 = vperm.slane %v1085_v20, 0  ;;  %v1039_v50 = vsel %vm1037_vm3, 1, %v6850_v55  ;;  %v7122_v0 = vld [vmem:[#allocation31_spill] sm:$0xff] }
 0x279   : > { %7119 = vst [vmem:[#allocation59_spill] sm:$0xff] %v5044_v6  ;;  %v975_v28 = vadd.f32 %v971_v39, %v930_v12  ;;  %v928_v26 = vadd.f32 %v924_v41, %v883_v43  ;;  %v1010_v9 = vsel %vm1006_vm5, %v989_v61, 0.0  ;;  %v929_v62 = vadd.f32 %v925_v1, %v884_v8  ;;  %v5058_v12 = vpop.permute.xlu1 %1116  ;;  %v5066_v35 = vpop.permute.xlu2 %1199  ;;  %v7125_v8 = vld [vmem:[#allocation7_spill] sm:$0xff] }
 0x27a   : > { %vm7120_vm8 = vcmp.eq.s32.totalorder %v953_v24, 1  ;;  %v988_v13 = vsel %vm7121_vm12, %v7114_v4, %v4433_v49  ;;  %v1048_v25 = vperm.slane %v1044_v32, 0  ;;  %vm7123_vm6 = vnez %v7122_v0 }
 0x27b   : > { %v961_v10 = vsel %vm7120_vm8, %v5037_v22, 0.0  ;;  %vm1130_vm3 = vmand %vm7123_vm6, %vm6979_vm0  ;;  %vm7124_vm5 = vcmp.eq.s32.totalorder %v954_v18, 1  ;;  %v1041_v24 = vperm.slane %v1039_v50, 0  ;;  %v976_v19 = vadd.f32 %v972_v27, %v931_v17 }
 0x27c   : > { %v962_v43 = vsel %vm7124_vm5, %v5044_v6, 0.0  ;;  %vm1082_vm8 = vmand %vm4948_vm15, %vm3880_vm7  ;;  %v1018_v39 = vmul.f32 %v7125_v8, %v1010_v9  ;;  %v1092_v41 = vperm.slane %v1088_v60, 0  ;;  %v1042_v1 = vperm.slane %v1039_v50, 4 }
 0x27d   : > { %v969_v4 = vmul.f32 %v7112_v59, %v961_v10  ;;  %vm7126_vm12 = vcmp.eq.s32.totalorder %v1003_v34, 1  ;;  %vm7127_vm5 = vcmp.lt.s32.totalorder %v3867_v30, 8  ;;  %v1132_v32 = vsel %vm1130_vm3, 1, %v6850_v55 }
 0x27e   : > { %v1011_v18 = vsel %vm7126_vm12, %v988_v13, 0.0  ;;  %v1034_v61 = vsel %vm7127_vm5, %v4554_v38, %v4578_v63  ;;  %v970_v2 = vmul.f32 %v7112_v59, %v962_v43  ;;  %v1084_v9 = vsel %vm1082_vm8, 1, %v6850_v55  ;;  %vm7128_vm12 = vmmov %vm7116_vm13  ;;  %v7130_v43 = vld [vmem:[#allocation25_spill] sm:$0xff] }
 0x27f   : > { %v990_v34 = vsel %vm7116_vm13, %v4690_v11, %v7115_v40  ;;  %v991_v17 = vsel %vm7128_vm12, %v4433_v49, %v4690_v11  ;;  %v1045_v27 = vperm.slane %v1041_v24, 0  ;;  %v1089_v60 = vperm.slane %v1085_v20, 4  ;;  %v7134_v20 = vld [vmem:[#allocation23_spill] sm:$0xff] }
 0x280   : > { %v1019_v50 = vmul.f32 %v7125_v8, %v1011_v18  ;;  %vm7129_vm3 = vcmp.eq.s32.totalorder %v1047_v14, 1  ;;  %v1046_v10 = vperm.slane %v1042_v1, 0  ;;  %v1135_v13 = vperm.slane %v1132_v32, 0  ;;  %v7136_v1 = vld [vmem:[#allocation8_spill] sm:$0xff] }
 0x281   : > { %v1055_v59 = vsel %vm7129_vm3, %v1034_v61, 0.0  ;;  %vm7131_vm8 = vnez %v7130_v43  ;;  %v1022_v22 = vadd.f32 %v1018_v39, %v975_v28  ;;  %v973_v40 = vadd.f32 %v969_v4, %v928_v26  ;;  %v5099_v24 = vpop.permute.xlu1 %1197  ;;  %v5107_v28 = vpop.permute.xlu2 %1244 }
 0x282   : > { %vm1129_vm5 = vmand %vm7131_vm8, %vm6889_vm14  ;;  %vm1096_vm13 = vcmp.eq.s32.totalorder %v1092_v41, 1  ;;  %v1086_v6 = vperm.slane %v1084_v9, 0  ;;  %v974_v31 = vadd.f32 %v970_v2, %v929_v62  ;;  %vm7132_vm10 = vcmp.eq.s32.totalorder %v1000_v44, 1 }
 0x283   : > { %v1008_v49 = vsel %vm7132_vm10, %v991_v17, 0.0  ;;  %vm7133_vm12 = vcmp.eq.s32.totalorder %v1001_v48, 1  ;;  %vm7135_vm3 = vcmp.lt.s32.totalorder %v3867_v30, 8  ;;  %v1063_v18 = vmul.f32 %v7136_v1, %v1055_v59  ;;  %vm1207_vm10 = vmand %vm7123_vm6, %vm3905_vm2 }
 0x284   : > { %v1009_v11 = vsel %vm7133_vm12, %v990_v34, 0.0  ;;  %v1033_v14 = vsel %vm7135_vm3, %v4578_v63, %v7134_v20  ;;  %v1093_v61 = vperm.slane %v1089_v60, 0  ;;  %v1131_v26 = vsel %vm1129_vm5, 1, %v6850_v55  ;;  %v7139_v60 = vld [vmem:[#allocation57_spill] sm:$0xff] }
 0x285   : > { %v1023_v44 = vadd.f32 %v1019_v50, %v976_v19  ;;  %v1139_v48 = vperm.slane %v1135_v13, 0  ;;  %v1087_v62 = vperm.slane %v1084_v9, 4  ;;  %v1016_v63 = vmul.f32 %v7125_v8, %v1008_v49 }
 0x286   : > { %v1017_v39 = vmul.f32 %v7125_v8, %v1009_v11  ;;  %vm7137_vm3 = vcmp.eq.s32.totalorder %v1048_v25, 1  ;;  %v5112_v2 = vperm.slane %v1086_v6, 0  ;;  %vm7138_vm5 = vcmp.lt.s32.totalorder %v3867_v30, 7 }
 0x287   : > { %v1056_v4 = vsel %vm7137_vm3, %v1033_v14, 0.0  ;;  %v1079_v0 = vsel %vm7138_vm5, %v4773_v15, %v4788_v47  ;;  %v1136_v34 = vperm.slane %v1132_v32, 4  ;;  %v1133_v17 = vperm.slane %v1131_v26, 0 }
 0x288   : > { %v1209_v19 = vsel %vm1207_vm10, 1, %v6850_v55  ;;  %vm7140_vm6 = vnez %v7139_v60  ;;  %v1067_v25 = vadd.f32 %v1063_v18, %v1022_v22  ;;  %vm1124_vm15 = vcmp.lt.s32.totalorder %v3867_v30, 1 }
 0x289   : > { %vm5123_vm12 = vmand %vm7061_vm4, %vm7140_vm6  ;;  %v1134_v6 = vperm.slane %v1131_v26, 4  ;;  %v1064_v8 = vmul.f32 %v7136_v1, %v1056_v4  ;;  %vm7143_vm5 = vcmp.lt.s32.totalorder %v3867_v30, 8  ;;  %v5137_v50 = vperm.slane %v1087_v62, 0  ;;  %v5161_v18 = vpop.permute.xlu2 %1240  ;;  %v7148_v62 = vld [vmem:[#allocation9_spill] sm:$0xff] }
 0x28a   : > { %v1035_v32 = vsel %vm7143_vm5, %v4877_v57, %v4554_v38  ;;  %vm7144_vm10 = vmmov %vm7143_vm5  ;;  %v1100_v22 = vsel %vm1096_vm13, %v1079_v0, 0.0  ;;  %v1213_v59 = vperm.slane %v1209_v19, 4  ;;  %v1212_v13 = vperm.slane %v1209_v19, 0 }
 0x28b   : > { %v1036_v53 = vsel %vm7144_vm10, %v7134_v20, %v4877_v57  ;;  %vm1254_vm6 = vmand %vm5123_vm12, %vm6979_vm0  ;;  %v1020_v49 = vadd.f32 %v1016_v63, %v973_v40  ;;  %v1021_v11 = vadd.f32 %v1017_v39, %v974_v31  ;;  %v1140_v38 = vperm.slane %v1136_v34, 0  ;;  %v5151_v57 = vpop.permute.xlu1 %1195  ;;  %v7150_v34 = vld [vmem:[#allocation43_spill] sm:$0xff] }
 0x28c   : > { %v5145_v14 = vperm.slane %v1133_v17, 0  ;;  %vm1206_vm13 = vmand %vm7131_vm8, %vm3880_vm7  ;;  %vm7145_vm10 = vcmp.eq.s32.totalorder %v1045_v27, 1  ;;  %vm7146_vm4 = vcmp.eq.s32.totalorder %v1046_v10, 1  ;;  %vm7147_vm3 = vcmp.lt.s32.totalorder %v3867_v30, 7  ;;  %v3088_v17 = vld [vmem:[%s6578_s9 + $0x48] sm:$0xff] }
 0x28d   : > { %v1053_v41 = vsel %vm7145_vm10, %v1036_v53, 0.0  ;;  %v1054_v20 = vsel %vm7146_vm4, %v1035_v32, 0.0  ;;  %v1078_v31 = vsel %vm7147_vm3, %v4788_v47, %v4890_v37  ;;  %v5159_v40 = vperm.slane %v1134_v6, 0 }
 0x28e   : > { %v1068_v26 = vadd.f32 %v1064_v8, %v1023_v44  ;;  %v1108_v63 = vmul.f32 %v7148_v62, %v1100_v22  ;;  %v5171_v27 = vsel %vm1254_vm6, 1, %v6850_v55  ;;  %v1126_v47 = vsel %vm1124_vm15, %v4952_v54, %v4964_v42  ;;  %v3102_v8 = vld [vmem:[%s6578_s9 + $0xb8] sm:$0xff] }
 0x28f   : > { %v5177_v10 = vperm.slane %v1213_v59, 0  ;;  %v5179_v43 = vperm.slane %v1212_v13, 0  ;;  %v1208_v44 = vsel %vm1206_vm13, 1, %v6850_v55  ;;  %v1061_v39 = vmul.f32 %v7136_v1, %v1053_v41  ;;  %v3110_v13 = vld [vmem:[%s6578_s9 + $0xf8] sm:$0xff]  ;;  %1955 = vmatpush.bf16.msrb.mxu2 %v3102_v8 }
 0x290   : > { %v1062_v4 = vmul.f32 %v7136_v1, %v1054_v20  ;;  %vm7149_vm3 = vcmp.eq.s32.totalorder %v1093_v61, 1  ;;  %vm1144_vm0 = vcmp.eq.s32.totalorder %v1140_v38, 1  ;;  %vm1141_vm4 = vcmp.eq.s32.totalorder %v5145_v14, 1  ;;  %1968 = vmatpush.bf16.msrb.mxu3 %v3110_v13 }
 0x291   : > { %v1101_v45 = vsel %vm7149_vm3, %v1078_v31, 0.0  ;;  %vm1142_vm6 = vcmp.eq.s32.totalorder %v5159_v40, 1  ;;  %vm1201_vm10 = vcmp.lt.s32.totalorder %v3867_v30, 127  ;;  %v1259_v0 = vperm.slane %v5171_v27, 0  ;;  %vm1299_vm3 = vmand %vm5123_vm12, %vm6892_vm9  ;;  %v3100_v40 = vld [vmem:[%s6578_s9 + $0xa8] sm:$0xff] }
 0x292   : > { %vm7151_vm8 = vnez %v7150_v34  ;;  %vm7154_vm5 = vcmp.eq.s32.totalorder %v1139_v48, 1  ;;  %v1125_v61 = vsel %vm1124_vm15, %v4964_v42, %v5016_v23  ;;  %v1210_v19 = vperm.slane %v1208_v44, 0  ;;  %v3086_v48 = vld [vmem:[%s6578_s9 + $0x38] sm:$0xff] }
 0x293   : > { %vm5193_vm13 = vmand %vm7091_vm11, %vm7151_vm8  ;;  %v1147_v1 = vsel %vm7154_vm5, %v1126_v47, 0.0  ;;  %v1211_v60 = vperm.slane %v1208_v44, 4  ;;  %v1112_v6 = vadd.f32 %v1108_v63, %v1067_v25  ;;  %v1109_v36 = vmul.f32 %v7148_v62, %v1101_v45  ;;  %v3094_v42 = vld [vmem:[%s6578_s9 + $0x78] sm:$0xff]  ;;  %v5230_v59 = vpop.permute.xlu1 %1289  ;;  %1929 = vmatpush.bf16.msrb.mxu0 %v3086_v48  ;;  %v3101_v44 = vld [vmem:[%s6578_s9 + $0xb0] sm:$0xff] }
 0x294   : > { %v5218_v32 = vadd.f32 %v1061_v39, %v1020_v49  ;;  %v5220_v25 = vadd.f32 %v1062_v4, %v1021_v11  ;;  %vm7155_vm5 = vcmp.lt.s32.totalorder %v3867_v30, 7  ;;  %vm1253_vm11 = vmand %vm5193_vm13, %vm6889_vm14  ;;  %v7157_v49 = vld [vmem:[#allocation10_spill] sm:$0xff]  ;;  %v1260_v41 = vperm.slane %v5171_v27, 4  ;;  %1942 = vmatpush.bf16.msrb.mxu1 %v3094_v42  ;;  %v3109_v45 = vld [vmem:[%s6578_s9 + $0xf0] sm:$0xff]  ;;  %1956 = vmatpush.bf16.msrb.mxu2 %v3101_v44 }
 0x295   : > { %v1080_v53 = vsel %vm7155_vm5, %v5012_v51, %v4773_v15  ;;  %vm7156_vm8 = vmmov %vm7155_vm5  ;;  %v1155_v11 = vmul.f32 %v7157_v49, %v1147_v1  ;;  %v1148_v15 = vsel %vm1144_vm0, %v1125_v61, 0.0  ;;  %vm1248_vm0 = vcmp.lt.s32.totalorder %v3867_v30, 121  ;;  %v7160_v1 = vld [vmem:[#allocation13_spill] sm:$0xff]  ;;  %1969 = vmatpush.bf16.msrb.mxu3 %v3109_v45 }
 0x296   : > { %v1081_v22 = vsel %vm7156_vm8, %v4890_v37, %v5012_v51  ;;  %v5248_v37 = vsel %vm1299_vm3, 1, %v6850_v55  ;;  %v5250_v51 = vpop.permute.xlu2 %1291  ;;  %vm1344_vm8 = vmand %vm5123_vm12, %vm3905_vm2  ;;  %v5257_v38 = vperm.slane %v1259_v0, 0  ;;  %v5259_v20 = vperm.slane %v1210_v19, 0  ;;  %v3083_v44 = vld [vmem:[%s6578_s9 + $0x20] sm:$0xff] }
 0x297   : > { %v5261_v31 = vperm.slane %v1211_v60, 0  ;;  %vm7158_vm9 = vcmp.eq.s32.totalorder %v5112_v2, 1  ;;  %vm7159_vm3 = vcmp.eq.s32.totalorder %v5137_v50, 1  ;;  %v1128_v27 = vsel %vm1124_vm15, %v5016_v23, %v5058_v12  ;;  %v3085_v2 = vld [vmem:[%s6578_s9 + $0x30] sm:$0xff] }
 0x298   : > { %v1098_v21 = vsel %vm7158_vm9, %v1081_v22, 0.0  ;;  %v1099_v63 = vsel %vm7159_vm3, %v1080_v53, 0.0  ;;  %v1255_v47 = vsel %vm1253_vm11, 1, %v6850_v55  ;;  %v3093_v50 = vld [vmem:[%s6578_s9 + $0x70] sm:$0xff]  ;;  %v1156_v23 = vmul.f32 %v7157_v49, %v1148_v15  ;;  %1930 = vmatpush.bf16.msrb.mxu0 %v3085_v2  ;;  %v3108_v22 = vld [vmem:[%s6578_s9 + $0xe8] sm:$0xff]  ;;  %1957 = vmatpush.bf16.msrb.mxu2 %v3100_v40 }
 0x299   : > { %v1127_v52 = vsel %vm1124_vm15, %v5058_v12, %v4952_v54  ;;  %v1304_v39 = vperm.slane %v5248_v37, 0  ;;  %v5298_v4 = vsel %vm1344_vm8, 1, %v6850_v55  ;;  %v1113_v0 = vadd.f32 %v1109_v36, %v1068_v26  ;;  %1943 = vmatpush.bf16.msrb.mxu1 %v3093_v50  ;;  %v3084_v36 = vld [vmem:[%s6578_s9 + $0x28] sm:$0xff]  ;;  %vm1298_vm8 = vmand %vm5193_vm13, %vm6904_vm1  ;;  %1970 = vmatpush.bf16.msrb.mxu3 %v3108_v22  ;;  %v7165_v50 = vld [vmem:[#allocation36_spill] sm:$0xff] }
 0x29a   : > { %v1159_v34 = vadd.f32 %v1155_v11, %v1112_v6  ;;  %v1205_v54 = vsel %vm1201_vm10, %v5066_v35, %v7160_v1  ;;  %v5307_v12 = vperm.slane %v1260_v41, 0  ;;  %v1106_v9 = vmul.f32 %v7148_v62, %v1098_v21  ;;  %v7162_v11 = vld [vmem:[#allocation48_spill] sm:$0xff] }
 0x29b   : > { %v1145_v61 = vsel %vm1141_vm4, %v1128_v27, 0.0  ;;  %vm1267_vm14 = vcmp.eq.s32.totalorder %v5257_v38, 1  ;;  %v1257_v19 = vperm.slane %v1255_v47, 0  ;;  %v1107_v26 = vmul.f32 %v7148_v62, %v1099_v63  ;;  %v3092_v62 = vld [vmem:[%s6578_s9 + $0x68] sm:$0xff]  ;;  %v5334_v53 = vpop.permute.xlu1 %1242  ;;  %v3082_v38 = vld [vmem:[%s6578_s9 + $0x18] sm:$0xff] }
 0x29c   : > { %v1146_v60 = vsel %vm1142_vm6, %v1127_v52, 0.0  ;;  %v1202_v6 = vsel %vm1201_vm10, %v5099_v24, %v5066_v35  ;;  %vm1218_vm15 = vcmp.eq.s32.totalorder %v5259_v20, 1  ;;  %v1349_v14 = vperm.slane %v5298_v4, 0  ;;  %1931 = vmatpush.bf16.msrb.mxu0 %v3084_v36  ;;  %v3098_v36 = vld [vmem:[%s6578_s9 + $0x98] sm:$0xff]  ;;  %v3105_v20 = vld [vmem:[%s6578_s9 + $0xd0] sm:$0xff] }
 0x29d   : > { %v1160_v48 = vadd.f32 %v1156_v23, %v1113_v0  ;;  %vm7161_vm12 = vcmp.eq.s32.totalorder %v5177_v10, 1  ;;  %vm1219_vm4 = vcmp.eq.s32.totalorder %v5261_v31, 1  ;;  %v1308_v42 = vperm.slane %v1304_v39, 0  ;;  %1944 = vmatpush.bf16.msrb.mxu1 %v3092_v62  ;;  %v3091_v23 = vld [vmem:[%s6578_s9 + $0x60] sm:$0xff] }
 0x29e   : > { %v1225_v35 = vsel %vm7161_vm12, %v1205_v54, 0.0  ;;  %v1258_v8 = vperm.slane %v1255_v47, 4  ;;  %v1153_v13 = vmul.f32 %v7157_v49, %v1145_v61  ;;  %v1191_v15 = vadd.f32 %v7162_v11, %v1159_v34  ;;  %v5343_v10 = vpop.permute.xlu2 %1285  ;;  %v7164_v47 = vld [vmem:[#allocation12_spill] sm:$0xff]  ;;  %v7166_v39 = vld [vmem:[#allocation49_spill] sm:$0xff] }
 0x29f   : > { %vm1268_vm6 = vcmp.eq.s32.totalorder %v5307_v12, 1  ;;  %v1305_v41 = vperm.slane %v5248_v37, 4  ;;  %v1154_v21 = vmul.f32 %v7157_v49, %v1146_v60  ;;  %vm7163_vm11 = vcmp.eq.s32.totalorder %v5179_v43, 1  ;;  %v3107_v34 = vld [vmem:[%s6578_s9 + $0xe0] sm:$0xff] }
 0x2a0   : > { %v1224_v63 = vsel %vm7163_vm11, %v1202_v6, 0.0  ;;  %vm1293_vm5 = vcmp.lt.s32.totalorder %v3867_v30, 120  ;;  %v5349_v27 = vperm.slane %v1257_v19, 0  ;;  %v1110_v37 = vadd.f32 %v1106_v9, %v5218_v32  ;;  %v3099_v32 = vld [vmem:[%s6578_s9 + $0xa0] sm:$0xff]  ;;  %1932 = vmatpush.bf16.msrb.mxu0 %v3083_v44  ;;  %1971 = vmatpush.bf16.msrb.mxu3 %v3107_v34 }
 0x2a1   : > { %v1233_v2 = vmul.f32 %v7164_v47, %v1225_v35  ;;  %v1249_v43 = vsel %vm1248_vm0, %v5107_v28, %v7165_v50  ;;  %v1353_v49 = vperm.slane %v1349_v14, 0  ;;  %v1111_v52 = vadd.f32 %v1107_v26, %v5220_v25  ;;  %1945 = vmatpush.bf16.msrb.mxu1 %v3091_v23  ;;  %1958 = vmatpush.bf16.msrb.mxu2 %v3099_v32  ;;  %v3090_v14 = vld [vmem:[%s6578_s9 + $0x58] sm:$0xff]  ;;  %v7169_v23 = vld [vmem:[#allocation29_spill] sm:$0xff] }
 0x2a2   : > { %v1192_v45 = vadd.f32 %v7166_v39, %v1160_v48  ;;  %vm1312_vm9 = vcmp.eq.s32.totalorder %v1308_v42, 1  ;;  %v5372_v0 = vperm.slane %v1258_v8, 0  ;;  %v1157_v54 = vadd.f32 %v1153_v13, %v1110_v37  ;;  %v3106_v8 = vld [vmem:[%s6578_s9 + $0xd8] sm:$0xff]  ;;  %v7167_v13 = vld [vmem:[#allocation21_spill] sm:$0xff]  ;;  %v3097_v37 = vld [vmem:[%s6578_s9 + $0x90] sm:$0xff] }
 0x2a3   : > { %v1232_v9 = vmul.f32 %v7164_v47, %v1224_v63  ;;  %v1309_v61 = vperm.slane %v1305_v41, 0  ;;  %v1300_v25 = vsel %vm1298_vm8, 1, %v6850_v55  ;;  %v5384_v19 = vadd.f32 %v1154_v21, %v1111_v52  ;;  %v5417_v40 = vpop.permute.xlu1 %1334 }
 0x2a4   : > { %v1271_v26 = vsel %vm1267_vm14, %v1249_v43, 0.0  ;;  %v1294_v60 = vsel %vm1293_vm5, %v5230_v59, %v5250_v51  ;;  %vm1265_vm3 = vcmp.eq.s32.totalorder %v5349_v27, 1  ;;  %v5393_v6 = vadd.f32 %v1233_v2, %v1192_v45  ;;  %1933 = vmatpush.bf16.msrb.mxu0 %v3082_v38  ;;  %1972 = vmatpush.bf16.msrb.mxu3 %v3106_v8  ;;  %v7168_v2 = vld [vmem:[#allocation44_spill] sm:$0xff]  ;;  %v3087_v27 = vld [vmem:[%s6578_s9 + $0x40] sm:$0xff] }
 0x2a5   : > { %v1204_v5 = vsel %vm1201_vm10, %v7160_v1, %v5151_v57  ;;  %vm1338_vm1 = vcmp.lt.s32.totalorder %v3867_v30, 119  ;;  %vm1357_vm12 = vcmp.eq.s32.totalorder %v1353_v49, 1  ;;  %v1203_v1 = vsel %vm1201_vm10, %v5151_v57, %v5099_v24  ;;  %vm1343_vm10 = vmand %vm5193_vm13, %vm3880_vm7  ;;  %1946 = vmatpush.bf16.msrb.mxu1 %v3090_v14  ;;  %1959 = vmatpush.bf16.msrb.mxu2 %v3098_v36  ;;  %v3080_v49 = vld [vmem:[%s6578_s9 + $0x8] sm:$0xff] }
 0x2a6   : > { %v1252_v62 = vsel %vm1248_vm0, %v7165_v50, %v5161_v18  ;;  %v1302_v48 = vperm.slane %v1300_v25, 0  ;;  %v1350_v35 = vperm.slane %v5298_v4, 4  ;;  %v1236_v22 = vadd.f32 %v1232_v9, %v1191_v15  ;;  %v1337_v24 = vpop.permute.xlu2 %1336  ;;  %v3081_v4 = vld [vmem:[%s6578_s9 + $0x10] sm:$0xff] }
 0x2a7   : > { %v1279_v11 = vmul.f32 %v7167_v13, %v1271_v26  ;;  %v1316_v41 = vsel %vm1312_vm9, %v1294_v60, 0.0  ;;  %v1303_v57 = vperm.slane %v1300_v25, 4  ;;  %v3089_v15 = vld [vmem:[%s6578_s9 + $0x50] sm:$0xff]  ;;  %v1222_v42 = vsel %vm1218_vm15, %v1204_v5, 0.0  ;;  %v3096_v26 = vld [vmem:[%s6578_s9 + $0x88] sm:$0xff] }
 0x2a8   : > { %vm1313_vm14 = vcmp.eq.s32.totalorder %v1309_v61, 1  ;;  %v1297_v21 = vsel %vm1293_vm5, %v5250_v51, %v5343_v10  ;;  %v1339_v63 = vsel %vm1338_vm1, %v5417_v40, %v1337_v24  ;;  %v5451_v50 = vadd.f32 %v7168_v2, %v1157_v54  ;;  %1934 = vmatpush.bf16.msrb.mxu0 %v3081_v4  ;;  %v7170_v61 = vld [vmem:[#allocation14_spill] sm:$0xff]  ;;  %1973 = vmatpush.bf16.msrb.mxu3 %v3105_v20  ;;  %v7173_v20 = vld [vmem:[#allocation47_spill] sm:$0xff] }
 0x2a9   : > { %v1223_v51 = vsel %vm1219_vm4, %v1203_v1, 0.0  ;;  %v1272_v43 = vsel %vm1268_vm6, %v1252_v62, 0.0  ;;  %v1361_v44 = vsel %vm1357_vm12, %v1339_v63, 0.0  ;;  %v1324_v32 = vmul.f32 %v7169_v23, %v1316_v41  ;;  %1947 = vmatpush.bf16.msrb.mxu1 %v3089_v15  ;;  %1960 = vmatpush.bf16.msrb.mxu2 %v3097_v37  ;;  %v3104_v60 = vld [vmem:[%s6578_s9 + $0xc8] sm:$0xff]  ;;  %v3103_v41 = vld [vmem:[%s6578_s9 + $0xc0] sm:$0xff] }
 0x2aa   : > { %v1306_v52 = vperm.slane %v1302_v48, 0  ;;  %v1354_v39 = vperm.slane %v1350_v35, 0  ;;  %v1345_v45 = vsel %vm1343_vm10, 1, %v6850_v55  ;;  %v1283_v34 = vadd.f32 %v1279_v11, %v1236_v22  ;;  %v3079_v35 = vld [vmem:[%s6578_s9] sm:$0xff] }
 0x2ab   : > { %v1230_v31 = vmul.f32 %v7164_v47, %v1222_v42  ;;  %v1317_v54 = vsel %vm1313_vm14, %v1297_v21, 0.0  ;;  %v1307_v12 = vperm.slane %v1303_v57, 0  ;;  %v1280_v29 = vmul.f32 %v7167_v13, %v1272_v43  ;;  %v1288_v62 = vpop.permute.xlu1 %1287  ;;  %v3095_v11 = vld [vmem:[%s6578_s9 + $0x80] sm:$0xff] }
 0x2ac   : > { %vm1266_vm7 = vcmp.eq.s32.totalorder %v5372_v0, 1  ;;  %v1251_v9 = vsel %vm1248_vm0, %v5161_v18, %v5334_v53  ;;  %v1369_v25 = vmul.f32 %v7170_v61, %v1361_v44  ;;  %v1231_v5 = vmul.f32 %v7164_v47, %v1223_v51  ;;  %1935 = vmatpush.bf16.msrb.mxu0 %v3080_v49  ;;  %1974 = vmatpush.bf16.msrb.mxu3 %v3104_v60  ;;  %v7174_v44 = vld [vmem:[#allocation38_spill] sm:$0xff] }
 0x2ad   : > { %v1250_v38 = vsel %vm1248_vm0, %v5334_v53, %v5107_v28  ;;  %v1347_v18 = vperm.slane %v1345_v45, 0  ;;  %v1348_v14 = vperm.slane %v1345_v45, 4  ;;  %v1328_v36 = vadd.f32 %v1324_v32, %v1283_v34  ;;  %1948 = vmatpush.bf16.msrb.mxu1 %v3088_v17  ;;  %1961 = vmatpush.bf16.msrb.mxu2 %v3096_v26  ;;  %v7180_v17 = vld [vmem:[#allocation26_spill] sm:$0xff] }
 0x2ae   : > { %v1325_v1 = vmul.f32 %v7169_v23, %v1317_v54  ;;  %vm1310_vm13 = vcmp.eq.s32.totalorder %v1306_v52, 1  ;;  %vm1358_vm15 = vcmp.eq.s32.totalorder %v1354_v39, 1  ;;  %v1269_v48 = vsel %vm1265_vm3, %v1251_v9, 0.0  ;;  %v1331_v53 = vpop.permute.xlu2 %1330  ;;  %v7175_v52 = vld [vmem:[#allocation11_spill] sm:$0xff]  ;;  %v7178_v54 = vld [vmem:[#allocation24_spill] sm:$0xff] }
 0x2af   : > { %vm1311_vm4 = vcmp.eq.s32.totalorder %v1307_v12, 1  ;;  %v1295_v47 = vsel %vm1293_vm5, %v1288_v62, %v5230_v59  ;;  %v1296_v28 = vsel %vm1293_vm5, %v5343_v10, %v1288_v62  ;;  %v1284_v8 = vadd.f32 %v1280_v29, %v5393_v6  ;;  %v7182_v62 = vld [vmem:[#allocation19_spill] sm:$0xff] }
 0x2b0   : > { %v1270_v59 = vsel %vm1266_vm7, %v1250_v38, 0.0  ;;  %v1373_v22 = vadd.f32 %v1369_v25, %v1328_v36  ;;  %v1342_v10 = vsel %vm1338_vm1, %v1337_v24, %v1331_v53  ;;  %vm1551_vm0 = vcmp.eq.s32.totalorder %v4726_v58, 1  ;;  %1936 = vmatpush.bf16.msrb.mxu0 %v3079_v35  ;;  %1975 = vmatpush.bf16.msrb.mxu3 %v3103_v41  ;;  %v7183_v35 = vld [vmem:[#allocation4_spill] sm:$0xff]  ;;  %v7191_v58 = vld [vmem:[#allocation46_spill] sm:$0xff] }
 0x2b1   : > { %vm1554_vm6 = vcmp.eq.s32.totalorder %v4742_v33, 1  ;;  %vm1587_vm11 = vcmp.eq.s32.totalorder %v4751_v16, 1  ;;  %vm7171_vm5 = vnez %v6999_v7  ;;  %v1314_v0 = vsel %vm1310_vm13, %v1296_v28, 0.0  ;;  %1949 = vmatpush.bf16.msrb.mxu1 %v3087_v27  ;;  %1962 = vmatpush.bf16.msrb.mxu2 %v3095_v11  ;;  %v7185_v11 = vld [vmem:[#allocation41_spill] sm:$0xff] }
 0x2b2   : > { %vm1638_vm8 = vmand %vm7171_vm5, %vm3905_vm2  ;;  %v1362_v6 = vsel %vm1358_vm15, %v1342_v10, 0.0  ;;  %v1351_v24 = vperm.slane %v1347_v18, 0  ;;  %v1352_v57 = vperm.slane %v1348_v14, 0  ;;  %v1277_v4 = vmul.f32 %v7167_v13, %v1269_v48  ;;  %v7192_v16 = vld [vmem:[#allocation45_spill] sm:$0xff] }
 0x2b3   : > { %v1329_v15 = vadd.f32 %v1325_v1, %v1284_v8  ;;  %v1315_v42 = vsel %vm1311_vm4, %v1295_v47, 0.0  ;;  %v1370_v21 = vmul.f32 %v7170_v61, %v1362_v6  ;;  %vm1618_vm9 = vcmp.eq.s32.totalorder %v4766_v56, 1  ;;  %v1333_v9 = vpop.permute.xlu1 %1332  ;;  %v7187_v6 = vld [vmem:[#allocation54_spill] sm:$0xff] }
 0x2b4   : > { %v7172_v63 = vperm.slane %v4875_v3, 4  ;;  %v1190_v2 = vadd.f32 %v7173_v20, %v5384_v19  ;;  %v1234_v51 = vadd.f32 %v1230_v31, %v5451_v50  ;;  %v1278_v43 = vmul.f32 %v7167_v13, %v1270_v59  ;;  %v7176_v50 = vld [vmem:[#allocation33_spill] sm:$0xff]  ;;  %v7177_v31 = vld [vmem:[#allocation64_spill] sm:$0xff] }
 0x2b5   : > { %vm1585_vm3 = vcmp.eq.s32.totalorder %v7174_v44, 1  ;;  %v1640_v32 = vsel %vm1638_vm8, 1, %v6850_v55  ;;  %v1407_v39 = vadd.f32 %v7175_v52, %v1373_v22  ;;  %v1322_v45 = vmul.f32 %v7169_v23, %v1314_v0  ;;  %v7184_v22 = vld [vmem:[#allocation37_spill] sm:$0xff] }
 0x2b6   : > { %v5532_v37 = vperm.slane %v7172_v63, 0  ;;  %v1374_v19 = vadd.f32 %v1370_v21, %v1329_v15  ;;  %vm1588_vm12 = vcmp.eq.s32.totalorder %v7176_v50, 1  ;;  %v1235_v13 = vadd.f32 %v1231_v5, %v1190_v2  ;;  %v7181_v5 = vld [vmem:[#allocation39_spill] sm:$0xff]  ;;  %v7190_v21 = vld [vmem:[#allocation17_spill] sm:$0xff]  ;;  %v7203_v50 = vld [vmem:[#allocation28_spill] sm:$0xff] }
 0x2b7   : > { %v1323_v34 = vmul.f32 %v7169_v23, %v1315_v42  ;;  %vm1355_vm10 = vcmp.eq.s32.totalorder %v1351_v24, 1  ;;  %vm1356_vm14 = vcmp.eq.s32.totalorder %v1352_v57, 1  ;;  %v1612_v7 = vperm.slane %v7177_v31, 4  ;;  %v7188_v57 = vld [vmem:[#allocation40_spill] sm:$0xff]  ;;  %v7189_v15 = vld [vmem:[#allocation55_spill] sm:$0xff] }
 0x2b8   : > { %v7179_v46 = vperm.slane %v7178_v54, 0  ;;  %v1281_v49 = vadd.f32 %v1277_v4, %v1234_v51  ;;  %v1408_v29 = vadd.f32 %v7180_v17, %v1374_v19  ;;  %v1643_v25 = vperm.slane %v1640_v32, 0  ;;  %v7195_v19 = vld [vmem:[#allocation51_spill] sm:$0xff]  ;;  %v7197_v31 = vld [vmem:[#allocation20_spill] sm:$0xff]  ;;  %v7198_v54 = vld [vmem:[#allocation30_spill] sm:$0xff] }
 0x2b9   : > { %v1282_v26 = vadd.f32 %v1278_v43, %v1235_v13  ;;  %v1340_v60 = vsel %vm1338_vm1, %v1333_v9, %v5417_v40  ;;  %v1341_v23 = vsel %vm1338_vm1, %v1331_v53, %v1333_v9  ;;  %v1439_v38 = vadd.f32 %v7181_v5, %v1407_v39  ;;  %v7194_v39 = vld [vmem:[#allocation2_spill] sm:$0xff]  ;;  %v7200_v17 = vld [vmem:[#allocation53_spill] sm:$0xff]  ;;  %v7204_v5 = vld [vmem:[#allocation15_spill] sm:$0xff] }
 0x2ba   : > { %v1613_v12 = vperm.slane %v7179_v46, 0  ;;  %v1326_v18 = vadd.f32 %v1322_v45, %v1281_v49  ;;  %v1359_v14 = vsel %vm1355_vm10, %v1341_v23, 0.0  ;;  %v1360_v36 = vsel %vm1356_vm14, %v1340_v60, 0.0  ;;  %v7199_v49 = vld [vmem:[#allocation16_spill] sm:$0xff]  ;;  %v7201_v9 = vld [vmem:[#allocation62_spill] sm:$0xff] }
 0x2bb   : > { %v1327_v1 = vadd.f32 %v1323_v34, %v1282_v26  ;;  %v1440_v48 = vadd.f32 %v7182_v62, %v1408_v29  ;;  %v1367_v47 = vmul.f32 %v7170_v61, %v1359_v14  ;;  %v1368_v28 = vmul.f32 %v7170_v61, %v1360_v36  ;;  %v7186_v61 = vld [vmem:[#allocation22_spill] sm:$0xff]  ;;  %v1529_v51 = vpop.permute.xlu1 %1528  ;;  %v7196_v34 = vld [vmem:[#allocation52_spill] sm:$0xff]  ;;  %v7202_v26 = vld [vmem:[#allocation63_spill] sm:$0xff] }
 0x2bc   : > { %vm1619_vm2 = vcmp.eq.s32.totalorder %v7183_v35, 1  ;;  %v1616_v27 = vperm.slane %v1612_v7, 0  ;;  %v1641_v40 = vperm.slane %v4875_v3, 0  ;;  %v1644_v8 = vperm.slane %v1640_v32, 4  ;;  %v1561_v3 = vpop.permute.xlu2 %1560  ;;  %v7193_v32 = vld [vmem:[#allocation34_spill] sm:$0xff]  ;;  %v7206_v36 = vld [vmem:[#allocation32_spill] sm:$0xff] }
 0x2bd   : > { %vm1650_vm1 = vcmp.eq.s32.totalorder %v5532_v37, 1  ;;  %v1647_v30 = vperm.slane %v1643_v25, 0  ;;  %v1371_v53 = vadd.f32 %v1367_v47, %v1326_v18  ;;  %v1372_v59 = vadd.f32 %v1368_v28, %v1327_v1  ;;  %v7205_v18 = vld [vmem:[#allocation3_spill] sm:$0xff]  ;;  %v7208_v35 = vld [vmem:[#allocation5_spill] sm:$0xff] }
 0x2be   : > { %v1555_v10 = vsel %vm1551_vm0, %v7184_v22, 0.0  ;;  %v1558_v41 = vsel %vm1554_vm6, %v7185_v11, 0.0  ;;  %v1591_v0 = vsel %vm1587_vm11, %v7186_v61, 0.0  ;;  %vm1617_vm7 = vcmp.eq.s32.totalorder %v1613_v12, 1  ;;  %v7207_v47 = vld [vmem:[#allocation35_spill] sm:$0xff]  ;;  %v7210_v22 = vld [vmem:[#allocation65_spill] sm:$0xff] }
 0x2bf   : > { %v1405_v24 = vadd.f32 %v7187_v6, %v1371_v53  ;;  %v1406_v4 = vadd.f32 %v7188_v57, %v1372_v59  ;;  %v1471_v42 = vadd.f32 %v7189_v15, %v1439_v38  ;;  %v1472_v63 = vadd.f32 %v7190_v21, %v1440_v48  ;;  %v7209_v53 = vld [vmem:[#allocation27_spill] sm:$0xff]  ;;  %v7211_v57 = vld [vmem:[#allocation18_spill] sm:$0xff] }
 0x2c0   : > { %v1622_v20 = vsel %vm1618_vm9, %v7191_v58, 0.0  ;;  %vm1620_vm13 = vcmp.eq.s32.totalorder %v1616_v27, 1  ;;  %v1645_v33 = vperm.slane %v1641_v40, 0  ;;  %v1648_v2 = vperm.slane %v1644_v8, 0  ;;  %v7212_v15 = vld [vmem:[#allocation58_spill] sm:$0xff]  ;;  %v7213_v21 = vld [vmem:[#allocation59_spill] sm:$0xff] }
 0x2c1   : > { %v1589_v43 = vsel %vm1585_vm3, %v7192_v16, 0.0  ;;  %vm1651_vm15 = vcmp.eq.s32.totalorder %v1647_v30, 1  ;;  %v1437_v52 = vadd.f32 %v7193_v32, %v1405_v24  ;;  %v1438_v45 = vadd.f32 %v7194_v39, %v1406_v4  ;;  %v7215_v39 = vld [vmem:[#allocation42_spill] sm:$0xff] }
 0x2c2   : > { %v1592_v13 = vsel %vm1588_vm12, %v7195_v19, 0.0  ;;  %v1623_v56 = vsel %vm1619_vm2, %v7196_v34, 0.0  ;;  %v1533_v7 = vmul.f32 %v1529_v51, %v7197_v31  ;;  %v1534_v46 = vmul.f32 %v1529_v51, %v7198_v54 }
 0x2c3   : > { %v1469_v44 = vadd.f32 %v7199_v49, %v1437_v52  ;;  %v1470_v29 = vadd.f32 %v7200_v17, %v1438_v45  ;;  %v1505_v25 = vadd.f32 %v7201_v9, %v1471_v42  ;;  %v1506_v60 = vadd.f32 %v7202_v26, %v1472_v63  ;;  %v7214_v63 = vld [vmem:[#allocation56_spill] sm:$0xff]  ;;  %v1595_v58 = vpop.permute.xlu1 %1594 }
 0x2c4   : > { %vm1649_vm4 = vcmp.eq.s32.totalorder %v1645_v33, 1  ;;  %vm1652_vm0 = vcmp.eq.s32.totalorder %v1648_v2, 1  ;;  %v1531_v23 = vmul.f32 %v1529_v51, %v7203_v50  ;;  %v1532_v38 = vmul.f32 %v1529_v51, %v7204_v5 }
 0x2c5   : > { %v1503_v14 = vadd.f32 %v7205_v18, %v1469_v44  ;;  %v1504_v1 = vadd.f32 %v7206_v36, %v1470_v29  ;;  %v1537_v62 = vadd.f32 %v1533_v7, %v1505_v25  ;;  %v1538_v48 = vadd.f32 %v1534_v46, %v1506_v60 }
 0x2c6   : > { %v1654_v28 = vsel %vm1650_vm1, %v7207_v47, 0.0  ;;  %v1621_v40 = vsel %vm1617_vm7, %v7208_v35, 0.0  ;;  %v1563_v8 = vmul.f32 %v1561_v3, %v1555_v10  ;;  %v1564_v59 = vmul.f32 %v1561_v3, %v7209_v53  ;;  %v1627_v10 = vpop.permute.xlu2 %1626 }
 0x2c7   : > { %v1565_v11 = vmul.f32 %v1561_v3, %v7210_v22  ;;  %v1566_v61 = vmul.f32 %v1561_v3, %v1558_v41  ;;  %v1535_v6 = vadd.f32 %v1531_v23, %v1503_v14  ;;  %v1536_v24 = vadd.f32 %v1532_v38, %v1504_v1  ;;  %v1659_v3 = vpop.permute.xlu0 %1658 }
 0x2c8   : > { %v1624_v4 = vsel %vm1620_vm13, %v7211_v57, 0.0  ;;  %v1655_v42 = vsel %vm1651_vm15, %v7212_v15, 0.0  ;;  %v1653_v37 = vsel %vm1649_vm4, %v7213_v21, 0.0  ;;  %v1656_v12 = vsel %vm1652_vm0, %v7214_v63, 0.0  ;;  %v5621_v57 = vld [vmem:[%s6574_s5 + $0x8] sm:$0xff] }
 0x2c9   : > { %v1567_v51 = vadd.f32 %v1563_v8, %v1535_v6  ;;  %v1568_v16 = vadd.f32 %v1564_v59, %v1536_v24  ;;  %v1569_v32 = vadd.f32 %v1565_v11, %v1537_v62  ;;  %v1570_v41 = vadd.f32 %v1566_v61, %v1538_v48 }
 0x2ca   : > { %v1597_v52 = vmul.f32 %v1595_v58, %v1589_v43  ;;  %v1598_v27 = vmul.f32 %v1595_v58, %v7215_v39  ;;  %v1599_v45 = vmul.f32 %v1595_v58, %v1591_v0  ;;  %v1600_v19 = vmul.f32 %v1595_v58, %v1592_v13 }
 0x2cb   : > { %v1629_v30 = vmul.f32 %v1627_v10, %v1621_v40  ;;  %v1630_v34 = vmul.f32 %v1627_v10, %v1622_v20  ;;  %v1631_v31 = vmul.f32 %v1627_v10, %v1623_v56  ;;  %v1632_v33 = vmul.f32 %v1627_v10, %v1624_v4  ;;  %v5626_v4 = vld [vmem:[%s6574_s5] sm:$0xff] }
 0x2cc   : > { %v1601_v7 = vadd.f32 %v1597_v52, %v1567_v51  ;;  %v1602_v54 = vadd.f32 %v1598_v27, %v1568_v16  ;;  %v1603_v2 = vadd.f32 %v1599_v45, %v1569_v32  ;;  %v1604_v46 = vadd.f32 %v1600_v19, %v1570_v41  ;;  %2169 = vperm.xlu0 %3215, %v5626_v4  }
 0x2cd   : > { %v1662_v49 = vmul.f32 %v1659_v3, %v1654_v28  ;;  %v1663_v44 = vmul.f32 %v1659_v3, %v1655_v42  ;;  %v1661_v17 = vmul.f32 %v1659_v3, %v1653_v37  ;;  %v1664_v29 = vmul.f32 %v1659_v3, %v1656_v12 }
 0x2ce   : > { %v1633_v9 = vadd.f32 %v1629_v30, %v1601_v7  ;;  %v1634_v25 = vadd.f32 %v1630_v34, %v1602_v54  ;;  %v1635_v26 = vadd.f32 %v1631_v31, %v1603_v2  ;;  %v1636_v43 = vadd.f32 %v1632_v33, %v1604_v46  ;;  %v2007_v31 = vld [vmem:[%s6572_s3] sm:$0xf] }
 0x2cf   : > { %v7216_v21 = vmov 1   ;;  %v7217_v37 = vmov 3   ;;  %v7218_v12 = vmov 2   ;;  %v7219_v32 = vmov 5  }
 0x2d0   : > { %v1665_v60 = vadd.f32 %v1661_v17, %v1633_v9  ;;  %v1666_v50 = vadd.f32 %v1662_v49, %v1634_v25  ;;  %v1667_v0 = vadd.f32 %v1663_v44, %v1635_v26  ;;  %v1668_v13 = vadd.f32 %v1664_v29, %v1636_v43  ;;  %v5693_v26 = vld [vmem:[%s6577_s8] sm:$0x7] }
 0x2d1   : > { %vm2013_vm9 = vcmask 1043456   ;;  %v7220_v19 = vmov 4   ;;  %v7221_v30 = vmov 7   ;;  %vm2009_vm3 = vcmask 64512  }
 0x2d2   : > { %v1669_v23 = vpack.c.bf16 %v1665_v60, %v1665_v60  ;;  %v1670_v20 = vpack.c.bf16 %v1666_v50, %v1666_v50  ;;  %v1671_v56 = vpack.c.bf16 %v1667_v0, %v1667_v0  ;;  %v1672_v5 = vpack.c.bf16 %v1668_v13, %v1668_v13 }
 0x2d3   : > { %v7222_v33 = vmov 6   ;;  %v7223_v7 = vmov 9   ;;  %v7224_v54 = vmov 8   ;;  %v7225_v2 = vmov 10  }
 0x2d4   : > { %1937 = vmatmul.bf16.vlgmr.msrb.gmra.mxu0 %v1669_v23  ;;  %1950 = vmatmul.bf16.vlgmr.msrb.gmra.mxu1 %v1670_v20  ;;  %v7226_v46 = vmov 12   ;;  %v7227_v49 = vmov 13   ;;  %v7228_v44 = vmov 15   ;;  %v7229_v17 = vmov 11  }
 0x2d5   : > { %1963 = vmatmul.bf16.vlgmr.msrb.gmra.mxu2 %v1671_v56  ;;  %1976 = vmatmul.bf16.vlgmr.msrb.gmra.mxu3 %v1672_v5  ;;  %v7230_v29 = vmov 14   ;;  %v7231_v9 = vmov 16   ;;  %v7232_v25 = vmov 17   ;;  %vm364_vm12 = vcmp.ge.s32.totalorder %v5693_v26, 0 }
 0x2d6   : > { %3222 = vset.pattern.permute.xlu0 %v7217_v37  ;;  %v7233_v43 = vmov 18   ;;  %v2030_v60 = vsel %vm364_vm12, 1, %v6850_v55  ;;  %v7234_v0 = vmov 0  ;;  %v7237_v13 = vmov 19  }
 0x2d7   : > { %2247 = vperm.xlu0 %3222, %v5621_v57   ;;  %v2031_v50 = vperm.slane %v2030_v60, 0  ;;  %v7238_v5 = vmov 20  }
 0x2d9   : > { %vm5701_vm10 = vcmp.eq.s32.totalorder %v2031_v50, 1 }
 0x2da   : > { %v7235_v0 = vsel %vm5701_vm10, 4294967295, %v7234_v0 }
 0x2db   : > { %7236 = vst [vmem:[#allocation60_spill] sm:$0xff] %v7235_v0 }
 0x2df   : > { %3226 = vset.pattern.permute.xlu0 %v7219_v32 }
 0x2e0   : > { %2291 = vperm.xlu0 %3226, %v5621_v57  }
 0x2e8   : > { %3230 = vset.pattern.permute.xlu0 %v7221_v30 }
 0x2e9   : > { %2338 = vperm.xlu0 %3230, %v5621_v57  }
 0x2f1   : > { %3234 = vset.pattern.permute.xlu0 %v7223_v7 }
 0x351   : > { %v1938_v38 = vpop.f32.mrf.mxu0  ;;  %v1951_v18 = vpop.f32.mrf.mxu1 }
 0x352   : > { %v1952_v14 = vadd.f32 %v1951_v18, %v1938_v38  ;;  %v7239_v18 = vmov 21  }
 0x358   : > { %v1964_v36 = vpop.f32.mrf.mxu2  ;;  %v1977_v1 = vpop.f32.mrf.mxu3 }
 0x359   : > { %v1965_v62 = vadd.f32 %v1964_v36, %v1952_v14  ;;  %v1940_v48 = vpop.f32.mrf.mxu0  ;;  %v1953_v47 = vpop.f32.mrf.mxu1  ;;  %v7240_v14 = vmov 22  }
 0x35b   : > { %v1978_v28 = vadd.f32 %v1977_v1, %v1965_v62  ;;  %v7241_v1 = vmov 23  }
 0x35d   : > { %1981 = vadd.xlane.f32.xlu1 %v1978_v28  ;;  %v1984_v35 = vmul.f32 %v1978_v28, %v1978_v28 }
 0x35f   : > { %1985 = vadd.xlane.f32.xlu2 %v1984_v35  ;;  %v5750_v35 = vpop.permute.xlu0 %2169 }
 0x360   : > { %v1966_v40 = vpop.f32.mrf.mxu2  ;;  %v1979_v8 = vpop.f32.mrf.mxu3 }
 0x367   : > { %v5755_v8 = vpop.permute.xlu0 %2247 }
 0x376   : > { %2193 = vperm.xlu1 %3217, %v5626_v4  }
 0x377   : > { %2174 = vperm.xlu2 %3216, %v5621_v57  }
 0x37e   : > { %3220 = vset.pattern.permute.xlu1 %v7218_v12 }
 0x37f   : > { %3218 = vset.pattern.permute.xlu2 %v7216_v21  ;;  %2222 = vperm.xlu1 %3220, %v5621_v57  }
 0x380   : > { %2197 = vperm.xlu2 %3218, %v5621_v57  }
 0x387   : > { %3221 = vset.pattern.permute.xlu1 %v7217_v37 }
 0x388   : > { %3219 = vset.pattern.permute.xlu2 %v7218_v12  ;;  %2243 = vperm.xlu1 %3221, %v5626_v4  }
 0x389   : > { %2218 = vperm.xlu2 %3219, %v5626_v4  }
 0x390   : > { %3224 = vset.pattern.permute.xlu1 %v7220_v19 }
 0x391   : > { %3223 = vset.pattern.permute.xlu2 %v7220_v19  ;;  %2269 = vperm.xlu1 %3224, %v5621_v57   ;;  %v3111_v19 = vld [vmem:[%s6573_s4] sm:$0xff] }
 0x392   : > { %2265 = vperm.xlu2 %3223, %v5626_v4  }
 0x399   : > { %3225 = vset.pattern.permute.xlu1 %v7219_v32 }
 0x39a   : > { %3227 = vset.pattern.permute.xlu2 %v7222_v33  ;;  %2287 = vperm.xlu1 %3225, %v5626_v4  }
 0x39b   : > { %2312 = vperm.xlu2 %3227, %v5626_v4  }
 0x3a2   : > { %3228 = vset.pattern.permute.xlu1 %v7222_v33 }
 0x3a3   : > { %3231 = vset.pattern.permute.xlu2 %v7224_v54  ;;  %2316 = vperm.xlu1 %3228, %v5621_v57  }
 0x3a4   : > { %2356 = vperm.xlu2 %3231, %v5626_v4  }
 0x3ab   : > { %3229 = vset.pattern.permute.xlu1 %v7221_v30 }
 0x3ac   : > { %3235 = vset.pattern.permute.xlu2 %v7225_v2  ;;  %2334 = vperm.xlu1 %3229, %v5626_v4  }
 0x3ad   : > { %2401 = vperm.xlu2 %3235, %v5626_v4  }
 0x3b4   : > { %3232 = vset.pattern.permute.xlu1 %v7224_v54 }
 0x3b5   : > { %3239 = vset.pattern.permute.xlu2 %v7226_v46  ;;  %2360 = vperm.xlu1 %3232, %v5621_v57  }
 0x3b6   : > { %2446 = vperm.xlu2 %3239, %v5626_v4  }
 0x3bd   : > { %3233 = vset.pattern.permute.xlu1 %v7223_v7 }
 0x3be   : > { %3242 = vset.pattern.permute.xlu2 %v7227_v49  ;;  %2379 = vperm.xlu1 %3233, %v5626_v4  }
 0x3bf   : > { %2468 = vperm.xlu2 %3242, %v5621_v57  }
 0x3c6   : > { %3236 = vset.pattern.permute.xlu1 %v7225_v2 }
 0x3c7   : > { %3245 = vset.pattern.permute.xlu2 %v7228_v44  ;;  %2405 = vperm.xlu1 %3236, %v5621_v57  }
 0x3cf   : > { %3237 = vset.pattern.permute.xlu1 %v7229_v17 }
 0x3d0   : > { %v1982_v53 = vpop.xlane.xlu1 %1981  ;;  %2423 = vperm.xlu1 %3237, %v5626_v4  }
 0x3d1   : > { %v1983_v59 = vmul.f32 0.015625, %v1982_v53 }
 0x3d2   : > { %v1986_v22 = vpop.xlane.xlu2 %1985 }
 0x3d3   : > { %v1988_v11 = vmul.f32 %v1983_v59, %v1983_v59  ;;  %v1987_v61 = vmul.f32 0.015625, %v1986_v22  ;;  %v1991_v41 = vsub.f32 %v1978_v28, %v1983_v59  ;;  %v5759_v59 = vpop.permute.xlu0 %2291 }
 0x3d4   : > { %7242 = vst [vmem:[#allocation6_spill] sm:$0xff] %v5759_v59 }
 0x3d5   : > { %v1989_v6 = vsub.f32 %v1987_v61, %v1988_v11 }
 0x3d7   : > { %v1990_v24 = vmax.f32 %v1989_v6, 0.0 }
 0x3d8   : > { %3240 = vset.pattern.permute.xlu1 %v7226_v46 }
 0x3d9   : > { %v1992_v15 = vadd.f32 1e-05, %v1990_v24  ;;  %2450 = vperm.xlu1 %3240, %v5621_v57  }
 0x3da   : > { %v5721_v36 = vpop.permute.xlu2 %2174 }
 0x3db   : > { %3271 = vrsqrt.f32 %v1992_v15  ;;  %vm1999_vm11 = vweird.f32 %v1992_v15  ;;  %v5763_v11 = vpop.permute.xlu0 %2338 }
 0x3dc   : > { %7243 = vst [vmem:[#allocation50_spill] sm:$0xff] %v5763_v11  ;;  %v7301_v11 = vmov 0 }
 0x3e1   : > { %v3272_v42 = vpop.eup %3271  ;;  %3243 = vset.pattern.permute.xlu1 %v7230_v29 }
 0x3e2   : > { %v1994_v63 = vmul.f32 %v3272_v42, %v1992_v15  ;;  %vm2000_vm6 = vweird.f32 %v3272_v42  ;;  %2486 = vperm.xlu1 %3243, %v5626_v4   ;;  %v5729_v62 = vpop.permute.xlu2 %2197 }
 0x3e3   : > { %vm2001_vm5 = vmor %vm1999_vm11, %vm2000_vm6 }
 0x3e4   : > { %v1995_v10 = vmul.f32 %v3272_v42, %v1994_v63 }
 0x3e6   : > { %v1996_v58 = vmul.f32 0.5, %v1995_v10 }
 0x3e8   : > { %v1997_v51 = vsub.f32 1.5, %v1996_v58  ;;  %v5777_v30 = vpop.permute.xlu1 %2193 }
 0x3ea   : > { %v1998_v16 = vmul.f32 %v3272_v42, %v1997_v51  ;;  %3246 = vset.pattern.permute.xlu1 %v7228_v44  ;;  %v5735_v48 = vpop.permute.xlu2 %2218 }
 0x3eb   : > { %2513 = vperm.xlu1 %3246, %v5621_v57  }
 0x3ec   : > { %v2002_v3 = vsel %vm2001_vm5, %v3272_v42, %v1998_v16 }
 0x3ed   : > { %v2003_v52 = vmul.f32 %v2002_v3, %v1991_v41 }
 0x3ef   : > { %vm2004_vm8 = vcmp.ge.f32.partialorder %v2003_v52, 0.0  ;;  %v2005_v39 = vmul.f32 0.01, %v2003_v52 }
 0x3f1   : > { %v2006_v27 = vsel %vm2004_vm8, %v2003_v52, %v2005_v39 }
 0x3f2   : > { %v2008_v45 = vpack.c.bf16 %v2006_v27, %v2006_v27  ;;  %v5741_v47 = vpop.permute.xlu2 %2265 }
 0x3f3   : > { %3247 = vset.pattern.permute.xlu1 %v7231_v9 }
 0x3f4   : > { %v2015_v34 = vsel %vm2013_vm9, %v2008_v45, 0  ;;  %2531 = vperm.xlu1 %3247, %v5626_v4  }
 0x3f5   : > { %2024 = vmatpush.bf16.msra.mxu0 %v2015_v34  ;;  %v5779_v34 = vpop.permute.xlu1 %2222 }
 0x3f8   : > { %3069 = vmatmul.msk.bf16.vlgmr.msra.gmra.mxu0 %vm2009_vm3, %v2007_v31 }
 0x3fa   : > { %v5746_v28 = vpop.permute.xlu2 %2312 }
 0x3fc   : > { %3250 = vset.pattern.permute.xlu1 %v7232_v25 }
 0x3fd   : > { %2557 = vperm.xlu1 %3250, %v5621_v57   ;;  %v5781_v31 = vpop.permute.xlu1 %2243 }
 0x402   : > { %v5752_v40 = vpop.permute.xlu2 %2356 }
 0x405   : > { %3251 = vset.pattern.permute.xlu1 %v7233_v43  ;;  %v5783_v33 = vpop.permute.xlu1 %2269 }
 0x406   : > { %2576 = vperm.xlu1 %3251, %v5626_v4  }
 0x40a   : > { %v5757_v53 = vpop.permute.xlu2 %2401 }
 0x40d   : > { %v5785_v7 = vpop.permute.xlu1 %2287 }
 0x40e   : > { %3254 = vset.pattern.permute.xlu1 %v7237_v13 }
 0x40f   : > { %2602 = vperm.xlu1 %3254, %v5621_v57  }
 0x412   : > { %v5761_v22 = vpop.permute.xlu2 %2446 }
 0x415   : > { %v5787_v54 = vpop.permute.xlu1 %2316 }
 0x416   : > { %7246 = vst [vmem:[#allocation7_spill] sm:$0xff] %v5787_v54 }
 0x417   : > { %3255 = vset.pattern.permute.xlu1 %v7238_v5 }
 0x418   : > { %2620 = vperm.xlu1 %3255, %v5626_v4  }
 0x41a   : > { %v5765_v61 = vpop.permute.xlu2 %2468 }
 0x41b   : > { %7244 = vst [vmem:[#allocation61_spill] sm:$0xff] %v5765_v61 }
 0x41e   : > { %v5789_v2 = vpop.permute.xlu1 %2334 }
 0x420   : > { %3258 = vset.pattern.permute.xlu1 %v7239_v18 }
 0x421   : > { %2647 = vperm.xlu1 %3258, %v5621_v57  }
 0x427   : > { %v5791_v46 = vpop.permute.xlu1 %2360 }
 0x428   : > { %7247 = vst [vmem:[#allocation25_spill] sm:$0xff] %v5791_v46 }
 0x429   : > { %3259 = vset.pattern.permute.xlu1 %v7240_v14 }
 0x42a   : > { %2665 = vperm.xlu1 %3259, %v5626_v4  }
 0x432   : > { %3262 = vset.pattern.permute.xlu1 %v7241_v1 }
 0x475   : > { %v5707_v23 = vpop.f32.mrf.mxu0 }
 0x476   : > { %v2033_v20 = vsel %vm5701_vm10, %v5707_v23, 0.0 }
 0x477   : > { %2034 = vadd.xlane.f32.xlu0 %v2033_v20  ;;  %v2037_v56 = vmul.f32 %v2033_v20, %v2033_v20 }
 0x479   : > { %2038 = vadd.xlane.f32.xlu2 %v2037_v56 }
 0x47d   : > { %v2028_v38 = vpop.f32.mrf.mxu0 }
 0x48b   : > { %2383 = vperm.xlu0 %3234, %v5621_v57  }
 0x491   : > { %2509 = vperm.xlu2 %3245, %v5626_v4  }
 0x493   : > { %3238 = vset.pattern.permute.xlu0 %v7229_v17 }
 0x494   : > { %2427 = vperm.xlu0 %3238, %v5621_v57  }
 0x499   : > { %3249 = vset.pattern.permute.xlu2 %v7232_v25 }
 0x49a   : > { %2553 = vperm.xlu2 %3249, %v5626_v4  }
 0x49c   : > { %3241 = vset.pattern.permute.xlu0 %v7227_v49  ;;  %v5793_v49 = vpop.permute.xlu1 %2379 }
 0x49d   : > { %2464 = vperm.xlu0 %3241, %v5626_v4  }
 0x4a2   : > { %3253 = vset.pattern.permute.xlu2 %v7237_v13 }
 0x4a3   : > { %2598 = vperm.xlu2 %3253, %v5626_v4  }
 0x4a4   : > { %v5795_v44 = vpop.permute.xlu1 %2405 }
 0x4a5   : > { %3244 = vset.pattern.permute.xlu0 %v7230_v29  ;;  %7248 = vst [vmem:[#allocation23_spill] sm:$0xff] %v5795_v44 }
 0x4a6   : > { %2490 = vperm.xlu0 %3244, %v5621_v57  }
 0x4ab   : > { %3257 = vset.pattern.permute.xlu2 %v7239_v18 }
 0x4ac   : > { %2643 = vperm.xlu2 %3257, %v5626_v4  }
 0x4ae   : > { %3248 = vset.pattern.permute.xlu0 %v7231_v9 }
 0x4af   : > { %2535 = vperm.xlu0 %3248, %v5621_v57  }
 0x4b4   : > { %3261 = vset.pattern.permute.xlu2 %v7241_v1 }
 0x4b7   : > { %3252 = vset.pattern.permute.xlu0 %v7233_v43  ;;  %v5804_v43 = vpop.permute.xlu1 %2423 }
 0x4b8   : > { %2580 = vperm.xlu0 %3252, %v5621_v57  }
 0x4bf   : > { %v5809_v13 = vpop.permute.xlu1 %2450 }
 0x4c0   : > { %3256 = vset.pattern.permute.xlu0 %v7238_v5  ;;  %7249 = vst [vmem:[#allocation8_spill] sm:$0xff] %v5809_v13 }
 0x4c1   : > { %2624 = vperm.xlu0 %3256, %v5621_v57  }
 0x4c9   : > { %3260 = vset.pattern.permute.xlu0 %v7240_v14 }
 0x4ea   : > { %v2035_v6 = vpop.xlane.xlu0 %2034 }
 0x4eb   : > { %v2036_v24 = vmul.f32 0.015625, %v2035_v6 }
 0x4ec   : > { %v2039_v15 = vpop.xlane.xlu2 %2038 }
 0x4ed   : > { %v2041_v42 = vmul.f32 %v2036_v24, %v2036_v24  ;;  %v2040_v21 = vmul.f32 0.015625, %v2039_v15  ;;  %v2044_v3 = vsub.f32 %v5707_v23, %v2036_v24  ;;  %v5811_v23 = vpop.permute.xlu1 %2486 }
 0x4ef   : > { %v2042_v37 = vsub.f32 %v2040_v21, %v2041_v42 }
 0x4f1   : > { %v2043_v63 = vmax.f32 %v2042_v37, 0.0 }
 0x4f3   : > { %v2045_v12 = vadd.f32 1e-05, %v2043_v63 }
 0x4f4   : > { %v5829_v24 = vpop.permute.xlu2 %2509 }
 0x4f5   : > { %3273 = vrsqrt.f32 %v2045_v12  ;;  %vm2052_vm2 = vweird.f32 %v2045_v12  ;;  %v5813_v20 = vpop.permute.xlu1 %2513 }
 0x4f6   : > { %7250 = vst [vmem:[#allocation57_spill] sm:$0xff] %v5813_v20 }
 0x4fb   : > { %v3274_v10 = vpop.eup %3273 }
 0x4fc   : > { %v2047_v58 = vmul.f32 %v3274_v10, %v2045_v12  ;;  %vm2053_vm14 = vweird.f32 %v3274_v10  ;;  %v5835_v21 = vpop.permute.xlu2 %2553 }
 0x4fd   : > { %vm2054_vm1 = vmor %vm2052_vm2, %vm2053_vm14  ;;  %v5815_v56 = vpop.permute.xlu1 %2531  ;;  %v5817_v5 = vpop.permute.xlu0 %2383  ;;  %vm2145_vm14 = vcmp.lt.s32.totalorder %v5693_v26, 4 }
 0x4fe   : > { %v2048_v51 = vmul.f32 %v3274_v10, %v2047_v58  ;;  %7251 = vst [vmem:[#allocation9_spill] sm:$0xff] %v5817_v5  ;;  %vm5938_vm2 = vmand %vm364_vm12, %vm2145_vm14 }
 0x500   : > { %v2049_v16 = vmul.f32 0.5, %v2048_v51 }
 0x502   : > { %v2050_v32 = vsub.f32 1.5, %v2049_v16 }
 0x504   : > { %v2051_v41 = vmul.f32 %v3274_v10, %v2050_v32  ;;  %v5841_v12 = vpop.permute.xlu2 %2598 }
 0x505   : > { %v5819_v38 = vpop.permute.xlu1 %2557 }
 0x506   : > { %v2055_v52 = vsel %vm2054_vm1, %v3274_v10, %v2051_v41  ;;  %7252 = vst [vmem:[#allocation43_spill] sm:$0xff] %v5819_v38  ;;  %v5821_v18 = vpop.permute.xlu0 %2427 }
 0x507   : > { %v5768_v39 = vmul.f32 %v2055_v52, %v2044_v3  ;;  %7253 = vst [vmem:[#allocation10_spill] sm:$0xff] %v5821_v18 }
 0x509   : > { %7245 = vst [vmem:[#allocation31_spill] sm:$0xff] %v5768_v39  ;;  %v2059_v27 = vpack.c.bf16 %v5768_v39, %v5768_v39 }
 0x50b   : > { %v2069_v45 = vsel %vm2013_vm9, %v2059_v27, 0 }
 0x50c   : > { %2078 = vmatpush.bf16.msra.mxu1 %v2069_v45  ;;  %v5847_v51 = vpop.permute.xlu2 %2643 }
 0x50d   : > { %v5823_v14 = vpop.permute.xlu1 %2576 }
 0x50f   : > { %3074 = vmatmul.msk.bf16.vlgmr.msra.gmra.mxu1 %vm2009_vm3, %v3111_v19  ;;  %v5825_v1 = vpop.permute.xlu0 %2464 }
 0x515   : > { %v5827_v6 = vpop.permute.xlu1 %2602 }
 0x516   : > { %7254 = vst [vmem:[#allocation13_spill] sm:$0xff] %v5827_v6 }
 0x518   : > { %v5831_v15 = vpop.permute.xlu0 %2490 }
 0x519   : > { %7255 = vst [vmem:[#allocation48_spill] sm:$0xff] %v5831_v15 }
 0x51d   : > { %v5833_v42 = vpop.permute.xlu1 %2620 }
 0x521   : > { %v5837_v37 = vpop.permute.xlu0 %2535 }
 0x522   : > { %7256 = vst [vmem:[#allocation12_spill] sm:$0xff] %v5837_v37 }
 0x525   : > { %v5839_v63 = vpop.permute.xlu1 %2647 }
 0x526   : > { %7257 = vst [vmem:[#allocation36_spill] sm:$0xff] %v5839_v63 }
 0x52a   : > { %v5843_v10 = vpop.permute.xlu0 %2580 }
 0x52b   : > { %7258 = vst [vmem:[#allocation49_spill] sm:$0xff] %v5843_v10 }
 0x52d   : > { %v5845_v58 = vpop.permute.xlu1 %2665 }
 0x533   : > { %v5849_v32 = vpop.permute.xlu0 %2624 }
 0x534   : > { %7259 = vst [vmem:[#allocation21_spill] sm:$0xff] %v5849_v32 }
 0x58c   : > { %v5797_v17 = vpop.f32.mrf.mxu1 }
 0x58d   : > { %v2085_v29 = vsel %vm5701_vm10, %v5797_v17, 0.0 }
 0x58e   : > { %2087 = vadd.xlane.f32.xlu1 %v2085_v29  ;;  %v2093_v9 = vmul.f32 %v2085_v29, %v2085_v29 }
 0x594   : > { %v5802_v25 = vpop.f32.mrf.mxu1 }
 0x595   : > { %v2086_v60 = vsel %vm5701_vm10, %v5802_v25, 0.0 }
 0x596   : > { %2095 = vadd.xlane.f32.xlu1 %v2093_v9  ;;  %2089 = vadd.xlane.f32.xlu2 %v2086_v60  ;;  %v2094_v50 = vmul.f32 %v2086_v60, %v2086_v60 }
 0x598   : > { %2097 = vadd.xlane.f32.xlu0 %v2094_v50 }
 0x601   : > { %v2088_v16 = vpop.xlane.xlu1 %2087 }
 0x602   : > { %v2091_v41 = vmul.f32 0.015625, %v2088_v16 }
 0x604   : > { %v2101_v27 = vmul.f32 %v2091_v41, %v2091_v41 }
 0x609   : > { %v2096_v3 = vpop.xlane.xlu1 %2095  ;;  %v2090_v52 = vpop.xlane.xlu2 %2089 }
 0x60a   : > { %v2099_v45 = vmul.f32 0.015625, %v2096_v3  ;;  %v2092_v19 = vmul.f32 0.015625, %v2090_v52 }
 0x60b   : > { %v2098_v29 = vpop.xlane.xlu0 %2097 }
 0x60c   : > { %v2103_v9 = vsub.f32 %v2099_v45, %v2101_v27  ;;  %v2102_v60 = vmul.f32 %v2092_v19, %v2092_v19  ;;  %v2100_v50 = vmul.f32 0.015625, %v2098_v29  ;;  %v2107_v27 = vsub.f32 %v5797_v17, %v2091_v41 }
 0x60e   : > { %v2105_v39 = vmax.f32 %v2103_v9, 0.0  ;;  %v2104_v63 = vsub.f32 %v2100_v50, %v2102_v60 }
 0x610   : > { %v2109_v6 = vadd.f32 1e-05, %v2105_v39  ;;  %v2106_v10 = vmax.f32 %v2104_v63, 0.0 }
 0x612   : > { %3275 = vrsqrt.f32 %v2109_v6  ;;  %v2110_v38 = vadd.f32 1e-05, %v2106_v10  ;;  %vm2117_vm13 = vweird.f32 %v2109_v6 }
 0x614   : > { %3277 = vrsqrt.f32 %v2110_v38  ;;  %vm2127_vm6 = vweird.f32 %v2110_v38 }
 0x618   : > { %v3276_v37 = vpop.eup %3275 }
 0x619   : > { %v2112_v0 = vmul.f32 %v3276_v37, %v2109_v6  ;;  %vm2118_vm7 = vweird.f32 %v3276_v37 }
 0x61a   : > { %v3278_v20 = vpop.eup %3277  ;;  %vm2119_vm15 = vmor %vm2117_vm13, %vm2118_vm7 }
 0x61b   : > { %v2113_v32 = vmul.f32 %v3276_v37, %v2112_v0  ;;  %v2122_v52 = vmul.f32 %v3278_v20, %v2110_v38  ;;  %vm2128_vm0 = vweird.f32 %v3278_v20  ;;  %v7262_v38 = vmov 26  }
 0x61c   : > { %vm2129_vm11 = vmor %vm2127_vm6, %vm2128_vm0 }
 0x61d   : > { %v2114_v16 = vmul.f32 0.5, %v2113_v32  ;;  %v2123_v39 = vmul.f32 %v3278_v20, %v2122_v52 }
 0x61f   : > { %v2115_v15 = vsub.f32 1.5, %v2114_v16  ;;  %v2124_v9 = vmul.f32 0.5, %v2123_v39  ;;  %v2183_v39 = vsel %vm5938_vm2, 1, %v6850_v55 }
 0x621   : > { %v2116_v3 = vmul.f32 %v3276_v37, %v2115_v15  ;;  %v2125_v0 = vsub.f32 1.5, %v2124_v9  ;;  %v2108_v15 = vsub.f32 %v5802_v25, %v2092_v19  ;;  %v7260_v25 = vmov 24  }
 0x622   : > { %v2141_v19 = vadd.s32 4294967295, %v5693_v26 }
 0x623   : > { %v2120_v45 = vsel %vm2119_vm15, %v3276_v37, %v2116_v3  ;;  %v2126_v17 = vmul.f32 %v3278_v20, %v2125_v0 }
 0x624   : > { %v2131_v29 = vmul.f32 %v2120_v45, %v2107_v27  ;;  %vm2142_vm8 = vcmp.ge.s32.totalorder %v2141_v19, 0  ;;  %vm2143_vm9 = vcmp.lt.s32.totalorder %v2141_v19, 4 }
 0x625   : > { %v2130_v6 = vsel %vm2129_vm11, %v3278_v20, %v2126_v17  ;;  %v7261_v20 = vmov 25   ;;  %vm5921_vm3 = vmand %vm2142_vm8, %vm2143_vm9  ;;  %v7273_v17 = vmov 0 }
 0x626   : > { %vm2133_vm4 = vcmp.ge.f32.partialorder %v2131_v29, 0.0  ;;  %v2135_v63 = vmul.f32 0.01, %v2131_v29  ;;  %v2132_v37 = vmul.f32 %v2130_v6, %v2108_v15  ;;  %v2151_v50 = vsel %vm5921_vm3, 1, %v6850_v55 }
 0x627   : > { %v2152_v16 = vrot.slane %v2151_v50, 1  ;;  %v2159_v27 = vrot.slane %v2151_v50, 2 }
 0x628   : > { %v5852_v10 = vsel %vm2133_vm4, %v2131_v29, %v2135_v63  ;;  %v2136_v32 = vmul.f32 0.01, %v2132_v37  ;;  %vm2134_vm5 = vcmp.ge.f32.partialorder %v2132_v37, 0.0  ;;  %v2147_v29 = vadd.s32 1, %v5693_v26 }
 0x629   : > { %2179 = vrot.lane.b32.xlu1 %v5852_v10, %s3338_s21  ;;  %2155 = vrot.lane.b32.xlu2 %v5852_v10, %s3339_s22  ;;  %vm5942_vm1 = vcmp.ne.s32.totalorder %v2152_v16, 0  ;;  %vm5958_vm12 = vcmp.ne.s32.totalorder %v2159_v27, 0  ;;  %v2184_v26 = vrot.slane %v2183_v39, 2 }
 0x62a   : > { %2232 = vrot.lane.b32.xlu0 %v5852_v10, %s3340_s24  ;;  %v5872_v41 = vsel %vm2134_vm5, %v2132_v37, %v2136_v32  ;;  %vm5954_vm7 = vmand %vm5921_vm3, %vm5942_vm1  ;;  %vm2148_vm13 = vcmp.ge.s32.totalorder %v2147_v29, 0  ;;  %vm2149_vm15 = vcmp.lt.s32.totalorder %v2147_v29, 4  ;;  %v2229_v37 = vrot.slane %v2183_v39, 1 }
 0x62b   : > { %vm2161_vm4 = vmand %vm5954_vm7, %vm5958_vm12  ;;  %vm5976_vm6 = vcmp.ne.s32.totalorder %v2184_v26, 0 }
 0x62c   : > { %vm5972_vm0 = vmand %vm2148_vm13, %vm2149_vm15  ;;  %v2162_v15 = vsel %vm2161_vm4, 1, %v6850_v55  ;;  %vm5999_vm5 = vcmp.ne.s32.totalorder %v2229_v37, 0 }
 0x62d   : > { %v7274_v17 = vsel %vm5972_vm0, 4294967295, %v7273_v17  ;;  %vm2186_vm11 = vmand %vm5954_vm7, %vm5976_vm6  ;;  %v2208_v32 = vsel %vm5972_vm0, 1, %v6850_v55  ;;  %v2163_v50 = vperm.slane %v2162_v15, 0 }
 0x62e   : > { %v2187_v19 = vsel %vm2186_vm11, 1, %v6850_v55  ;;  %v2298_v16 = vrot.slane %v2208_v32, 1  ;;  %vm6007_vm8 = vmand %vm5921_vm3, %vm5999_vm5 }
 0x62f   : > { %v2188_v39 = vperm.slane %v2187_v19, 0  ;;  %vm2236_vm14 = vmand %vm6007_vm8, %vm5958_vm12  ;;  %vm6019_vm13 = vcmp.eq.s32.totalorder %v2163_v50, 1 }
 0x630   : > { %vm6023_vm15 = vcmp.ne.s32.totalorder %v2298_v16, 0  ;;  %vm2258_vm11 = vmand %vm6007_vm8, %vm5976_vm6 }
 0x631   : > { %2204 = vrot.lane.b32.xlu1 %v5852_v10, %s3341_s25  ;;  %2254 = vrot.lane.b32.xlu2 %v5852_v10, %s3342_s26  ;;  %vm6036_vm10 = vcmp.eq.s32.totalorder %v2188_v39, 1  ;;  %vm6046_vm0 = vmand %vm5921_vm3, %vm6023_vm15  ;;  %v2259_v60 = vsel %vm2258_vm11, 1, %v6850_v55 }
 0x632   : > { %2276 = vrot.lane.b32.xlu0 %v5852_v10, %s3343_s27  ;;  %v2260_v44 = vperm.slane %v2259_v60, 0 }
 0x639   : > { %2475 = vrot.lane.b32.xlu1 %v5852_v10, %s6755_s28  ;;  %2301 = vrot.lane.b32.xlu2 %v5852_v10, %s3344_s29  ;;  %s3357_s28 = smov 113  }
 0x63a   : > { %2323 = vrot.lane.b32.xlu0 %v5852_v10, %s3345_s30 }
 0x641   : > { %2345 = vrot.lane.b32.xlu2 %v5852_v10, %s3346_s11  ;;  %2157 = vrot.lane.b32.xlu1 %v5872_v41, %s3339_s22  ;;  %s3354_s22 = smov 115  }
 0x642   : > { %2368 = vrot.lane.b32.xlu0 %v5852_v10, %s3347_s12 }
 0x649   : > { %2390 = vrot.lane.b32.xlu2 %v5852_v10, %s3348_s15  ;;  %2691 = vperm.xlu1 %3262, %v5621_v57  }
 0x64a   : > { %2412 = vrot.lane.b32.xlu0 %v5852_v10, %s3349_s16 }
 0x651   : > { %2435 = vrot.lane.b32.xlu2 %v5852_v10, %s3331_s23  ;;  %3263 = vset.pattern.permute.xlu1 %v7260_v25 }
 0x652   : > { %2520 = vrot.lane.b32.xlu0 %v5852_v10, %s6753_s17  ;;  %2710 = vperm.xlu1 %3263, %v5626_v4   ;;  %s3355_s17 = smov 116  }
 0x659   : > { %2498 = vrot.lane.b32.xlu2 %v5852_v10, %s3351_s18 }
 0x65a   : > { %2565 = vrot.lane.b32.xlu0 %v5852_v10, %s6754_s19  ;;  %3266 = vset.pattern.permute.xlu1 %v7261_v20  ;;  %s3356_s19 = smov 112  }
 0x65b   : > { %2736 = vperm.xlu1 %3266, %v5621_v57  }
 0x661   : > { %2542 = vrot.lane.b32.xlu2 %v5852_v10, %s3353_s20 }
 0x662   : > { %2609 = vrot.lane.b32.xlu0 %v5852_v10, %s3354_s22 }
 0x663   : > { %2256 = vrot.lane.b32.xlu1 %v5872_v41, %s3342_s26  ;;  %s3361_s26 = smov 107  }
 0x664   : > { %3267 = vset.pattern.permute.xlu1 %v7262_v38 }
 0x669   : > { %2587 = vrot.lane.b32.xlu2 %v5852_v10, %s3355_s17 }
 0x66a   : > { %2654 = vrot.lane.b32.xlu0 %v5852_v10, %s3356_s19 }
 0x66b   : > { %2303 = vrot.lane.b32.xlu1 %v5872_v41, %s3344_s29 }
 0x671   : > { %2632 = vrot.lane.b32.xlu2 %v5852_v10, %s3357_s28 }
 0x672   : > { %2206 = vrot.lane.b32.xlu0 %v5872_v41, %s3341_s25  ;;  %s3358_s25 = smov 111  }
 0x673   : > { %2347 = vrot.lane.b32.xlu1 %v5872_v41, %s3346_s11  ;;  %s2924_s11 = sshll.u32 %s7392_s14, 3 }
 0x679   : > { %2181 = vrot.lane.b32.xlu2 %v5872_v41, %s3338_s21  ;;  %s3359_s21 = smov 109  }
 0x67a   : > { %2669 = vperm.xlu0 %3260, %v5621_v57  }
 0x67b   : > { %2392 = vrot.lane.b32.xlu1 %v5872_v41, %s3348_s15 }
 0x681   : > { %2676 = vrot.lane.b32.xlu2 %v5852_v10, %s3358_s25 }
 0x682   : > { %2699 = vrot.lane.b32.xlu0 %v5852_v10, %s3359_s21 }
 0x683   : > { %2437 = vrot.lane.b32.xlu1 %v5872_v41, %s3331_s23  ;;  %v2156_v3 = vpop.permute.xlu2 %2155  ;;  %3264 = vset.pattern.permute.xlu0 %v7260_v25  ;;  %s3360_s23 = smov 108   ;;  %v2209_v25 = vrot.slane %v2208_v32, 2 }
 0x684   : > { %v2165_v32 = vsel %vm6019_vm13, %v2156_v3, 0.0 }
 0x685   : > { %vm6011_vm9 = vcmp.ne.s32.totalorder %v2209_v25, 0  ;;  %v2237_v25 = vsel %vm2236_vm14, 1, %v6850_v55  ;;  %v2177_v61 = vmul.f32 %v5750_v35, %v2165_v32  ;;  %vm2327_vm14 = vmand %vm6046_vm0, %vm5976_vm6 }
 0x686   : > { %vm2211_vm4 = vmand %vm5954_vm7, %vm6011_vm9  ;;  %v2238_v13 = vperm.slane %v2237_v25, 0  ;;  %v7295_v25 = vmov 0  ;;  %v2328_v60 = vsel %vm2327_vm14, 1, %v6850_v55 }
 0x687   : > { %v2212_v19 = vsel %vm2211_vm4, 1, %v6850_v55  ;;  %vm2280_vm3 = vmand %vm6007_vm8, %vm6011_vm9  ;;  %v2329_v46 = vperm.slane %v2328_v60, 0 }
 0x688   : > { %vm2305_vm7 = vmand %vm6046_vm0, %vm5958_vm12  ;;  %v2213_v18 = vperm.slane %v2212_v19, 0  ;;  %vm6080_vm4 = vcmp.eq.s32.totalorder %v2238_v13, 1 }
 0x689   : > { %2687 = vperm.xlu2 %3261, %v5626_v4   ;;  %vm2349_vm8 = vmand %vm6046_vm0, %vm6011_vm9  ;;  %v2306_v35 = vsel %vm2305_vm7, 1, %v6850_v55 }
 0x68a   : > { %2714 = vperm.xlu0 %3264, %v5621_v57   ;;  %vm6086_vm11 = vcmp.eq.s32.totalorder %v2213_v18, 1  ;;  %v2307_v19 = vperm.slane %v2306_v35, 0  ;;  %v2350_v63 = vsel %vm2349_vm8, 1, %v6850_v55  ;;  %vm6108_vm0 = vmand %vm5938_vm2, %vm5942_vm1  ;;  %v7299_v35 = vmov 0 }
 0x68b   : > { %2500 = vrot.lane.b32.xlu1 %v5872_v41, %s3351_s18  ;;  %v5966_v0 = vpop.permute.xlu2 %2254  ;;  %vm2394_vm14 = vmand %vm6108_vm0, %vm5976_vm6 }
 0x68c   : > { %vm6120_vm8 = vcmp.eq.s32.totalorder %v2307_v19, 1  ;;  %v7305_v19 = vmov 0 }
 0x68d   : > { %v7302_v11 = vsel %vm6120_vm8, 4294967295, %v7301_v11 }
 0x691   : > { %2721 = vrot.lane.b32.xlu2 %v5852_v10, %s3360_s23 }
 0x692   : > { %2743 = vrot.lane.b32.xlu0 %v5852_v10, %s3361_s26  ;;  %3265 = vset.pattern.permute.xlu2 %v7261_v20  ;;  %v2281_v20 = vsel %vm2280_vm3, 1, %v6850_v55  ;;  %vm6090_vm3 = vcmp.eq.s32.totalorder %v2260_v44, 1 }
 0x693   : > { %2544 = vrot.lane.b32.xlu1 %v5872_v41, %s3353_s20  ;;  %v5996_v27 = vpop.permute.xlu2 %2301  ;;  %3268 = vset.pattern.permute.xlu0 %v7262_v38  ;;  %v2282_v32 = vperm.slane %v2281_v20, 0  ;;  %v7296_v25 = vsel %vm6090_vm3, 4294967295, %v7295_v25 }
 0x695   : > { %vm6113_vm7 = vcmp.eq.s32.totalorder %v2282_v32, 1 }
 0x696   : > { %v7300_v35 = vsel %vm6113_vm7, 4294967295, %v7299_v35 }
 0x699   : > { %2732 = vperm.xlu2 %3265, %v5626_v4  }
 0x69a   : > { %2758 = vperm.xlu0 %3268, %v5621_v57  }
 0x69b   : > { %v2180_v50 = vpop.permute.xlu1 %2179  ;;  %2589 = vrot.lane.b32.xlu1 %v5872_v41, %s3355_s17  ;;  %v6055_v16 = vpop.permute.xlu2 %2345 }
 0x69c   : > { %v2190_v3 = vsel %vm6036_vm10, %v2180_v50, 0.0  ;;  %v2233_v39 = vpop.permute.xlu0 %2232 }
 0x69d   : > { %v2200_v57 = vmul.f32 %v5777_v30, %v2190_v3  ;;  %v7291_v30 = vmov 0  ;;  %v2240_v18 = vsel %vm6080_vm4, %v2233_v39, 0.0  ;;  %v2262_v39 = vsel %vm6090_vm3, %v5966_v0, 0.0 }
 0x69e   : > { %v7292_v30 = vsel %vm6080_vm4, 4294967295, %v7291_v30  ;;  %v2250_v54 = vmul.f32 %v5781_v31, %v2240_v18  ;;  %vm2372_vm4 = vmand %vm6108_vm0, %vm5958_vm12  ;;  %v2272_v0 = vmul.f32 %v5741_v47, %v2262_v39  ;;  %v2309_v31 = vsel %vm6120_vm8, %v5996_v27, 0.0 }
 0x69f   : > { %v2202_v5 = vadd.f32 %v2200_v57, %v2177_v61  ;;  %v7293_v61 = vmov 0  ;;  %v2395_v47 = vsel %vm2394_vm14, 1, %v6850_v55  ;;  %v2373_v27 = vsel %vm2372_vm4, 1, %v6850_v55  ;;  %vm6168_vm14 = vmand %vm5938_vm2, %vm5999_vm5 }
 0x6a0   : > { %v7294_v61 = vsel %vm6086_vm11, 4294967295, %v7293_v61  ;;  %vm2439_vm4 = vmand %vm6168_vm14, %vm5958_vm12 }
 0x6a1   : > { %2234 = vrot.lane.b32.xlu2 %v5872_v41, %s3340_s24  ;;  %vm2457_vm8 = vmand %vm6168_vm14, %vm5976_vm6  ;;  %v2440_v57 = vsel %vm2439_vm4, 1, %v6850_v55  ;;  %s7339_s24 = smov 124  }
 0x6a2   : > { %vm2479_vm4 = vmand %vm6168_vm14, %vm6011_vm9 }
 0x6a3   : > { %v2205_v50 = vpop.permute.xlu1 %2204  ;;  %2634 = vrot.lane.b32.xlu1 %v5872_v41, %s3357_s28  ;;  %v6097_v13 = vpop.permute.xlu2 %2390  ;;  %s7334_s28 = smov 127  }
 0x6a4   : > { %v2215_v44 = vsel %vm6086_vm11, %v2205_v50, 0.0  ;;  %v2277_v3 = vpop.permute.xlu0 %2276  ;;  %v2351_v50 = vperm.slane %v2350_v63, 0 }
 0x6a5   : > { %v2225_v20 = vmul.f32 %v5735_v48, %v2215_v44  ;;  %v2284_v48 = vsel %vm6113_vm7, %v2277_v3, 0.0  ;;  %vm6145_vm7 = vcmp.eq.s32.totalorder %v2329_v46, 1  ;;  %v2319_v46 = vmul.f32 %v5746_v28, %v2309_v31 }
 0x6a6   : > { %vm6141_vm3 = vcmp.eq.s32.totalorder %v2351_v50, 1  ;;  %v7306_v19 = vsel %vm6145_vm7, 4294967295, %v7305_v19  ;;  %v2294_v60 = vmul.f32 %v5785_v7, %v2284_v48  ;;  %v2374_v50 = vperm.slane %v2373_v27, 0 }
 0x6a7   : > { %v2227_v59 = vadd.f32 %v2225_v20, %v2202_v5  ;;  %v7303_v5 = vmov 0  ;;  %v2353_v7 = vsel %vm6141_vm3, %v6055_v16, 0.0  ;;  %v2396_v20 = vperm.slane %v2395_v47, 0 }
 0x6a8   : > { %v7304_v5 = vsel %vm6141_vm3, 4294967295, %v7303_v5  ;;  %v2363_v16 = vmul.f32 %v5752_v40, %v2353_v7  ;;  %vm6192_vm11 = vcmp.eq.s32.totalorder %v2374_v50, 1 }
 0x6a9   : > { %v2252_v32 = vadd.f32 %v2250_v54, %v2227_v59  ;;  %2278 = vrot.lane.b32.xlu2 %v5872_v41, %s3343_s27  ;;  %vm6184_vm3 = vcmp.eq.s32.totalorder %v2396_v20, 1  ;;  %v2480_v20 = vsel %vm2479_vm4, 1, %v6850_v55  ;;  %s7344_s27 = smov 117  }
 0x6ab   : > { %v2274_v63 = vadd.f32 %v2272_v0, %v2252_v32  ;;  %v6151_v59 = vpop.permute.xlu1 %2475  ;;  %2678 = vrot.lane.b32.xlu1 %v5872_v41, %s3358_s25  ;;  %v6155_v54 = vpop.permute.xlu2 %2435  ;;  %v7309_v32 = vmov 0 }
 0x6ac   : > { %v2324_v18 = vpop.permute.xlu0 %2323  ;;  %v7310_v32 = vsel %vm6184_vm3, 4294967295, %v7309_v32 }
 0x6ad   : > { %v2296_v44 = vadd.f32 %v2294_v60, %v2274_v63  ;;  %v2331_v3 = vsel %vm6145_vm7, %v2324_v18, 0.0  ;;  %vm2416_vm7 = vmand %vm6108_vm0, %vm6011_vm9  ;;  %v2398_v18 = vsel %vm6184_vm3, %v6097_v13, 0.0 }
 0x6ae   : > { %v2341_v28 = vmul.f32 %v5789_v2, %v2331_v3  ;;  %v7311_v2 = vmov 0  ;;  %vm6205_vm0 = vmand %vm5938_vm2, %vm6023_vm15  ;;  %v2417_v47 = vsel %vm2416_vm7, 1, %v6850_v55  ;;  %v2408_v39 = vmul.f32 %v5757_v53, %v2398_v18 }
 0x6af   : > { %v2321_v48 = vadd.f32 %v2319_v46, %v2296_v44  ;;  %v7312_v2 = vsel %vm6192_vm11, 4294967295, %v7311_v2  ;;  %v2458_v46 = vsel %vm2457_vm8, 1, %v6850_v55  ;;  %v2441_v44 = vperm.slane %v2440_v57, 0  ;;  %vm2502_vm2 = vmand %vm6205_vm0, %vm5958_vm12 }
 0x6b0   : > { %v2418_v7 = vperm.slane %v2417_v47, 0  ;;  %v2459_v50 = vperm.slane %v2458_v46, 0  ;;  %vm2524_vm7 = vmand %vm6205_vm0, %vm5976_vm6  ;;  %v7319_v47 = vmov 0 }
 0x6b1   : > { %v2343_v0 = vadd.f32 %v2341_v28, %v2321_v48  ;;  %2325 = vrot.lane.b32.xlu2 %v5872_v41, %s3345_s30  ;;  %v2503_v48 = vsel %vm2502_vm2, 1, %v6850_v55  ;;  %vm6234_vm8 = vcmp.eq.s32.totalorder %v2441_v44, 1  ;;  %vm2546_vm4 = vmand %vm6205_vm0, %vm6011_vm9  ;;  %v7324_v44 = vmov 0 }
 0x6b2   : > { %vm6238_vm14 = vcmp.eq.s32.totalorder %v2418_v7, 1  ;;  %vm6250_vm2 = vcmp.eq.s32.totalorder %v2459_v50, 1 }
 0x6b3   : > { %v2365_v40 = vadd.f32 %v2363_v16, %v2343_v0  ;;  %2723 = vrot.lane.b32.xlu1 %v5872_v41, %s3360_s23  ;;  %v6199_v31 = vpop.permute.xlu1 %2157  ;;  %v2499_v60 = vpop.permute.xlu2 %2498  ;;  %v7320_v47 = vsel %vm6250_vm2, 4294967295, %v7319_v47  ;;  %v2461_v7 = vsel %vm6250_vm2, %v5852_v10, 0.0 }
 0x6b4   : > { %v2369_v27 = vpop.permute.xlu0 %2368 }
 0x6b5   : > { %v2376_v52 = vsel %vm6192_vm11, %v2369_v27, 0.0  ;;  %v2504_v27 = vperm.slane %v2503_v48, 0  ;;  %vm7321_vm11 = vnez %v7274_v17 }
 0x6b6   : > { %v2386_v3 = vmul.f32 %v5793_v49, %v2376_v52  ;;  %v2481_v49 = vperm.slane %v2480_v20, 0  ;;  %vm6258_vm3 = vmand %vm7321_vm11, %vm5942_vm1  ;;  %v2547_v52 = vsel %vm2546_vm4, 1, %v6850_v55  ;;  %v7326_v20 = vmov 0 }
 0x6b7   : > { %vm2591_vm1 = vmand %vm6258_vm3, %vm5976_vm6  ;;  %v2548_v50 = vperm.slane %v2547_v52, 0 }
 0x6b8   : > { %v2388_v13 = vadd.f32 %v2386_v3, %v2365_v40  ;;  %v2525_v40 = vsel %vm2524_vm7, 1, %v6850_v55  ;;  %vm6268_vm0 = vcmp.eq.s32.totalorder %v2481_v49, 1  ;;  %vm6281_vm7 = vcmp.eq.s32.totalorder %v2504_v27, 1  ;;  %vm2569_vm4 = vmand %vm6258_vm3, %vm5958_vm12 }
 0x6b9   : > { %2370 = vrot.lane.b32.xlu2 %v5872_v41, %s3347_s12  ;;  %v7325_v44 = vsel %vm6268_vm0, 4294967295, %v7324_v44  ;;  %v2526_v3 = vperm.slane %v2525_v40, 0  ;;  %v7327_v20 = vsel %vm6281_vm7, 4294967295, %v7326_v20  ;;  %v2506_v48 = vsel %vm6281_vm7, %v2499_v60, 0.0  ;;  %vm6314_vm7 = vmand %vm7321_vm11, %vm5999_vm5 }
 0x6ba   : > { %v2410_v53 = vadd.f32 %v2408_v39, %v2388_v13  ;;  %v2592_v49 = vsel %vm2591_vm1, 1, %v6850_v55  ;;  %v2570_v40 = vsel %vm2569_vm4, 1, %v6850_v55  ;;  %vm2636_vm1 = vmand %vm6314_vm7, %vm5958_vm12  ;;  %v7384_v13 = vld [vmem:[#allocation43_spill] sm:$0xff] }
 0x6bb   : > { %2754 = vperm.xlu1 %3267, %v5626_v4   ;;  %v2543_v0 = vpop.permute.xlu2 %2542  ;;  %v6247_v57 = vpop.permute.xlu1 %2691  ;;  %v2443_v4 = vsel %vm6234_vm8, %v6155_v54, 0.0  ;;  %vm6295_vm2 = vcmp.eq.s32.totalorder %v2526_v3, 1  ;;  %v2571_v3 = vperm.slane %v2570_v40, 0  ;;  %vm2613_vm5 = vmand %vm6258_vm3, %vm6011_vm9 }
 0x6bc   : > { %v2413_v18 = vpop.permute.xlu0 %2412  ;;  %v2453_v54 = vmul.f32 %v5761_v22, %v2443_v4  ;;  %v2471_v22 = vmul.f32 %v5825_v1, %v2461_v7  ;;  %v2614_v63 = vsel %vm2613_vm5, 1, %v6850_v55  ;;  %vm2658_vm3 = vmand %vm6314_vm7, %vm5976_vm6 }
 0x6bd   : > { %v2420_v46 = vsel %vm6238_vm14, %v2413_v18, 0.0  ;;  %v7330_v18 = vmov 0 }
 0x6be   : > { %v2430_v45 = vmul.f32 %v5804_v43, %v2420_v46  ;;  %v2483_v43 = vsel %vm6268_vm0, %v6151_v59, 0.0  ;;  %vm6304_vm0 = vcmp.eq.s32.totalorder %v2548_v50, 1 }
 0x6bf   : > { %v2493_v59 = vmul.f32 %v5811_v23, %v2483_v43  ;;  %v7331_v18 = vsel %vm6304_vm0, 4294967295, %v7330_v18  ;;  %v2516_v23 = vmul.f32 %v5829_v24, %v2506_v48  ;;  %v2550_v7 = vsel %vm6304_vm0, %v2543_v0, 0.0  ;;  %v7388_v0 = vld [vmem:[#allocation36_spill] sm:$0xff] }
 0x6c0   : > { %v2432_v39 = vadd.f32 %v2430_v45, %v2410_v53  ;;  %v2593_v45 = vperm.slane %v2592_v49, 0  ;;  %v2560_v24 = vmul.f32 %v5835_v21, %v2550_v7  ;;  %vm6339_vm0 = vcmp.eq.s32.totalorder %v2571_v3, 1 }
 0x6c1   : > { %2414 = vrot.lane.b32.xlu2 %v5872_v41, %s3349_s16  ;;  %s357_s16 = scalar_lea.vmem %s6579_s10, %s2924_s11 }
 0x6c2   : > { %v2455_v10 = vadd.f32 %v2453_v54, %v2432_v39  ;;  %vm6335_vm4 = vcmp.eq.s32.totalorder %v2593_v45, 1  ;;  %v2659_v45 = vsel %vm2658_vm3, 1, %v6850_v55  ;;  %vm6407_vm3 = vmand %vm7321_vm11, %vm6023_vm15  ;;  %vm7354_vm11 = vnez %v7296_v25  ;;  %v7358_v25 = vld [vmem:[#allocation6_spill] sm:$0xff] }
 0x6c3   : > { %v2588_v53 = vpop.permute.xlu2 %2587 }
 0x6c4   : > { %v2473_v27 = vadd.f32 %v2471_v22, %v2455_v10  ;;  %v2521_v1 = vpop.permute.xlu0 %2520  ;;  %v6308_v4 = vpop.permute.xlu1 %2710  ;;  %v2595_v48 = vsel %vm6335_vm4, %v2588_v53, 0.0  ;;  %v2166_v53 = vsel %vm6019_vm13, %v6199_v31, 0.0  ;;  %vm2680_vm13 = vmand %vm6314_vm7, %vm6011_vm9 }
 0x6c5   : > { %v2528_v46 = vsel %vm6295_vm2, %v2521_v1, 0.0  ;;  %v2605_v1 = vmul.f32 %v5841_v12, %v2595_v48 }
 0x6c6   : > { %v2495_v52 = vadd.f32 %v2493_v59, %v2473_v27  ;;  %v2538_v54 = vmul.f32 %v5815_v56, %v2528_v46  ;;  %v2637_v56 = vsel %vm2636_vm1, 1, %v6850_v55  ;;  %v2615_v27 = vperm.slane %v2614_v63, 0 }
 0x6c7   : > { %v2638_v59 = vperm.slane %v2637_v56, 0  ;;  %v2660_v56 = vperm.slane %v2659_v45, 0 }
 0x6c8   : > { %v2518_v29 = vadd.f32 %v2516_v23, %v2495_v52  ;;  %vm6366_vm5 = vcmp.eq.s32.totalorder %v2615_v27, 1 }
 0x6c9   : > { %2477 = vrot.lane.b32.xlu2 %v5872_v41, %s7334_s28  ;;  %vm6362_vm1 = vcmp.eq.s32.totalorder %v2638_v59, 1 }
 0x6ca   : > { %v2540_v39 = vadd.f32 %v2538_v54, %v2518_v29  ;;  %v2178_v29 = vmul.f32 %v5721_v36, %v2166_v53 }
 0x6cb   : > { %v2633_v43 = vpop.permute.xlu2 %2632 }
 0x6cc   : > { %v2566_v22 = vpop.permute.xlu0 %2565  ;;  %v2562_v10 = vadd.f32 %v2560_v24, %v2540_v39  ;;  %v2640_v38 = vsel %vm6362_vm1, %v2633_v43, 0.0  ;;  %v2681_v43 = vsel %vm2680_vm13, 1, %v6850_v55  ;;  %vm2703_vm13 = vmand %vm6407_vm3, %vm5958_vm12  ;;  %vm7353_vm12 = vnez %v7294_v61 }
 0x6cd   : > { %v2573_v21 = vsel %vm6339_vm0, %v2566_v22, 0.0  ;;  %v6349_v49 = vpop.permute.xlu1 %2736  ;;  %v2650_v36 = vmul.f32 %v5847_v51, %v2640_v38  ;;  %v2682_v48 = vperm.slane %v2681_v43, 0 }
 0x6ce   : > { %v2583_v40 = vmul.f32 %v5823_v14, %v2573_v21 }
 0x6cf   : > { %vm6395_vm7 = vcmp.eq.s32.totalorder %v2682_v48, 1 }
 0x6d0   : > { %v2585_v46 = vadd.f32 %v2583_v40, %v2562_v10 }
 0x6d1   : > { %2522 = vrot.lane.b32.xlu2 %v5872_v41, %s7339_s24 }
 0x6d2   : > { %v2607_v12 = vadd.f32 %v2605_v1, %v2585_v46 }
 0x6d3   : > { %v2182_v52 = vpop.permute.xlu2 %2181 }
 0x6d4   : > { %v2610_v3 = vpop.permute.xlu0 %2609  ;;  %v2191_v7 = vsel %vm6036_vm10, %v2182_v52, 0.0  ;;  %vm6388_vm10 = vcmp.eq.s32.totalorder %v2660_v56, 1 }
 0x6d5   : > { %v2617_v31 = vsel %vm6366_vm5, %v2610_v3, 0.0  ;;  %v2201_v54 = vmul.f32 %v5729_v62, %v2191_v7  ;;  %v2257_v24 = vpop.permute.xlu1 %2256  ;;  %v2704_v3 = vsel %vm2703_vm13, 1, %v6850_v55  ;;  %vm7355_vm13 = vnez %v7292_v30  ;;  %v7359_v30 = vld [vmem:[#allocation7_spill] sm:$0xff] }
 0x6d6   : > { %v2627_v39 = vmul.f32 %v5833_v42, %v2617_v31  ;;  %v2705_v17 = vperm.slane %v2704_v3, 0 }
 0x6d7   : > { %v2203_v37 = vadd.f32 %v2201_v54, %v2178_v29  ;;  %v7351_v29 = vmov 0 }
 0x6d8   : > { %v2629_v63 = vadd.f32 %v2627_v39, %v2607_v12  ;;  %vm6424_vm15 = vcmp.eq.s32.totalorder %v2705_v17, 1 }
 0x6d9   : > { %2567 = vrot.lane.b32.xlu2 %v5872_v41, %s7344_s27  ;;  %v7352_v29 = vsel %vm6424_vm15, 4294967295, %v7351_v29 }
 0x6da   : > { %v2652_v42 = vadd.f32 %v2650_v36, %v2629_v63 }
 0x6db   : > { %v2677_v22 = vpop.permute.xlu2 %2676 }
 0x6dc   : > { %v2655_v10 = vpop.permute.xlu0 %2654  ;;  %v2684_v59 = vsel %vm6395_vm7, %v2677_v22, 0.0 }
 0x6dd   : > { %v2662_v60 = vsel %vm6388_vm10, %v2655_v10, 0.0  ;;  %v2304_v21 = vpop.permute.xlu1 %2303 }
 0x6de   : > { %v2672_v51 = vmul.f32 %v5845_v58, %v2662_v60 }
 0x6e0   : > { %v2674_v1 = vadd.f32 %v2672_v51, %v2652_v42  ;;  %v2263_v42 = vsel %vm7354_vm11, %v2257_v24, 0.0  ;;  %vm7360_vm11 = vnez %v7304_v5  ;;  %v7366_v5 = vld [vmem:[#allocation9_spill] sm:$0xff] }
 0x6e1   : > { %2611 = vrot.lane.b32.xlu2 %v5872_v41, %s3354_s22 }
 0x6e3   : > { %v2688_v27 = vpop.permute.xlu2 %2687 }
 0x6e4   : > { %v2207_v46 = vpop.permute.xlu0 %2206  ;;  %v2694_v53 = vmul.f32 %v2688_v27, %v2684_v59 }
 0x6e5   : > { %v2348_v12 = vpop.permute.xlu1 %2347  ;;  %v2216_v39 = vsel %vm7353_vm12, %v2207_v46, 0.0  ;;  %vm7356_vm12 = vnez %v7302_v11  ;;  %v7362_v11 = vld [vmem:[#allocation50_spill] sm:$0xff] }
 0x6e6   : > { %v2696_v52 = vadd.f32 %v2694_v53, %v2674_v1  ;;  %v2226_v63 = vmul.f32 %v5779_v34, %v2216_v39  ;;  %v2310_v34 = vsel %vm7356_vm12, %v2304_v21, 0.0  ;;  %vm7365_vm12 = vnez %v7312_v2  ;;  %v7369_v2 = vld [vmem:[#allocation8_spill] sm:$0xff] }
 0x6e8   : > { %v2228_v10 = vadd.f32 %v2226_v63, %v2203_v37  ;;  %v2320_v37 = vmul.f32 %v7359_v30, %v2310_v34 }
 0x6e9   : > { %2656 = vrot.lane.b32.xlu2 %v5872_v41, %s3356_s19 }
 0x6eb   : > { %v6417_v45 = vpop.permute.xlu2 %2721 }
 0x6ec   : > { %v6420_v7 = vpop.permute.xlu0 %2669 }
 0x6ed   : > { %v2393_v15 = vpop.permute.xlu1 %2392 }
 0x6f1   : > { %2701 = vrot.lane.b32.xlu2 %v5872_v41, %s3359_s21 }
 0x6f3   : > { %v6428_v9 = vpop.permute.xlu2 %2732 }
 0x6f4   : > { %v2700_v38 = vpop.permute.xlu0 %2699 }
 0x6f5   : > { %v2707_v31 = vsel %vm6424_vm15, %v2700_v38, 0.0  ;;  %v2438_v54 = vpop.permute.xlu1 %2437  ;;  %vm7357_vm15 = vnez %v7300_v35  ;;  %v7363_v35 = vld [vmem:[#allocation25_spill] sm:$0xff] }
 0x6f6   : > { %v2717_v56 = vmul.f32 %v6308_v4, %v2707_v31  ;;  %v2273_v4 = vmul.f32 %v5783_v33, %v2263_v42  ;;  %v2354_v33 = vsel %vm7360_vm11, %v2348_v12, 0.0  ;;  %vm2725_vm11 = vmand %vm6407_vm3, %vm5976_vm6  ;;  %vm7372_vm6 = vnez %v7327_v20 }
 0x6f7   : > { %v2364_v17 = vmul.f32 %v7363_v35, %v2354_v33  ;;  %v2726_v16 = vsel %vm2725_vm11, 1, %v6850_v55  ;;  %v7375_v33 = vld [vmem:[#allocation57_spill] sm:$0xff] }
 0x6f8   : > { %v6435_v36 = vadd.f32 %v2717_v56, %v2696_v52 }
 0x6f9   : > { %2745 = vrot.lane.b32.xlu2 %v5872_v41, %s3361_s26 }
 0x6fb   : > { %v2235_v43 = vpop.permute.xlu2 %2234 }
 0x6fc   : > { %v2241_v22 = vsel %vm7355_vm13, %v2235_v43, 0.0  ;;  %vm7361_vm13 = vnez %v7306_v19  ;;  %v7367_v19 = vld [vmem:[#allocation23_spill] sm:$0xff] }
 0x6fd   : > { %v2251_v61 = vmul.f32 %v5755_v8, %v2241_v22  ;;  %v2501_v48 = vpop.permute.xlu1 %2500 }
 0x6ff   : > { %v2253_v60 = vadd.f32 %v2251_v61, %v2228_v10 }
 0x701   : > { %v2275_v51 = vadd.f32 %v2273_v4, %v2253_v60  ;;  %v2444_v4 = vsel %vm6234_vm8, %v2438_v54, 0.0  ;;  %vm2747_vm8 = vmand %vm6407_vm3, %vm6011_vm9 }
 0x702   : > { %v2748_v6 = vsel %vm2747_vm8, 1, %v6850_v55 }
 0x703   : > { %v2279_v59 = vpop.permute.xlu2 %2278 }
 0x704   : > { %v2285_v27 = vsel %vm7357_vm15, %v2279_v59, 0.0  ;;  %vm7364_vm15 = vnez %v7310_v32  ;;  %v7368_v32 = vld [vmem:[#allocation10_spill] sm:$0xff]  ;;  %v2454_v59 = vmul.f32 %v7369_v2, %v2444_v4 }
 0x705   : > { %v2295_v24 = vmul.f32 %v7358_v25, %v2285_v27  ;;  %v6451_v1 = vpop.permute.xlu1 %2544  ;;  %v2399_v56 = vsel %vm7364_vm15, %v2393_v15, 0.0  ;;  %v2715_v27 = vpop.permute.xlu0 %2714  ;;  %v7371_v25 = vld [vmem:[#allocation61_spill] sm:$0xff] }
 0x706   : > { %v2409_v42 = vmul.f32 %v7367_v19, %v2399_v56 }
 0x707   : > { %v2297_v46 = vadd.f32 %v2295_v24, %v2275_v51 }
 0x709   : > { %v2322_v8 = vadd.f32 %v2320_v37, %v2297_v46  ;;  %v2727_v37 = vperm.slane %v2726_v16, 0  ;;  %v2507_v46 = vsel %vm7372_vm6, %v2501_v48, 0.0  ;;  %v7387_v16 = vld [vmem:[#allocation21_spill] sm:$0xff] }
 0x70b   : > { %v2326_v53 = vpop.permute.xlu2 %2325  ;;  %vm6498_vm9 = vcmp.eq.s32.totalorder %v2727_v37, 1 }
 0x70c   : > { %v2332_v52 = vsel %vm7361_vm13, %v2326_v53, 0.0  ;;  %vm7373_vm13 = vnez %v7325_v44  ;;  %v2729_v44 = vsel %vm6498_vm9, %v6417_v45, 0.0 }
 0x70d   : > { %v2342_v21 = vmul.f32 %v7362_v11, %v2332_v52  ;;  %v6459_v3 = vpop.permute.xlu1 %2589  ;;  %v2517_v52 = vmul.f32 %v7375_v33, %v2507_v46  ;;  %v2744_v20 = vpop.permute.xlu0 %2743 }
 0x70f   : > { %v2344_v38 = vadd.f32 %v2342_v21, %v2322_v8  ;;  %v7374_v8 = vld [vmem:[#allocation48_spill] sm:$0xff] }
 0x711   : > { %v2366_v31 = vadd.f32 %v2364_v17, %v2344_v38  ;;  %v2739_v17 = vmul.f32 %v6428_v9, %v2729_v44  ;;  %v7382_v9 = vld [vmem:[#allocation12_spill] sm:$0xff] }
 0x713   : > { %v2371_v39 = vpop.permute.xlu2 %2370 }
 0x714   : > { %v2377_v63 = vsel %vm7365_vm12, %v2371_v39, 0.0  ;;  %v2741_v39 = vadd.f32 %v2739_v17, %v6435_v36  ;;  %vm7383_vm12 = vnez %v7331_v18  ;;  %v7386_v18 = vld [vmem:[#allocation13_spill] sm:$0xff] }
 0x715   : > { %v2387_v12 = vmul.f32 %v7366_v5, %v2377_v63  ;;  %v6467_v43 = vpop.permute.xlu1 %2634  ;;  %v2551_v36 = vsel %vm7383_vm12, %v6451_v1, 0.0  ;;  %v2759_v33 = vpop.permute.xlu0 %2758 }
 0x716   : > { %v2561_v4 = vmul.f32 %v7384_v13, %v2551_v36 }
 0x717   : > { %v2389_v22 = vadd.f32 %v2387_v12, %v2366_v31  ;;  %v7380_v12 = vld [vmem:[#allocation60_spill] sm:$0xff] }
 0x718   : > { %vm7381_vm15 = vnez %v7380_v12 }
 0x719   : > { %v2411_v10 = vadd.f32 %v2409_v42, %v2389_v22 }
 0x71b   : > { %v2415_v61 = vpop.permute.xlu2 %2414 }
 0x71c   : > { %v2421_v60 = vsel %vm6238_vm14, %v2415_v61, 0.0  ;;  %vm7370_vm14 = vnez %v7320_v47 }
 0x71d   : > { %v2431_v15 = vmul.f32 %v7368_v32, %v2421_v60  ;;  %v6475_v51 = vpop.permute.xlu1 %2678  ;;  %v2462_v28 = vsel %vm7370_vm14, %v5872_v41, 0.0  ;;  %v2749_v41 = vperm.slane %v2748_v6, 0  ;;  %v7385_v60 = vld [vmem:[#allocation49_spill] sm:$0xff]  ;;  %vm2821_vm14 = vcmask 130048  }
 0x71e   : > { %v2472_v24 = vmul.f32 %v7371_v25, %v2462_v28  ;;  %v2641_v25 = vsel %vm6362_vm1, %v6467_v43, 0.0  ;;  %v2685_v46 = vsel %vm6395_vm7, %v6475_v51, 0.0 }
 0x71f   : > { %v2433_v34 = vadd.f32 %v2431_v15, %v2411_v10  ;;  %vm6502_vm3 = vcmp.eq.s32.totalorder %v2749_v41, 1  ;;  %v2695_v23 = vmul.f32 %v6247_v57, %v2685_v46 }
 0x720   : > { %v2751_v38 = vsel %vm6502_vm3, %v2744_v20, 0.0 }
 0x721   : > { %v2456_v54 = vadd.f32 %v2454_v59, %v2433_v34  ;;  %v2596_v59 = vsel %vm6335_vm4, %v6459_v3, 0.0  ;;  %v2651_v3 = vmul.f32 %v7388_v0, %v2641_v25 }
 0x722   : > { %v2606_v1 = vmul.f32 %v7386_v18, %v2596_v59 }
 0x723   : > { %v2478_v30 = vpop.permute.xlu2 %2477  ;;  %v2474_v58 = vadd.f32 %v2472_v24, %v2456_v54 }
 0x724   : > { %v2484_v26 = vsel %vm7373_vm13, %v2478_v30, 0.0 }
 0x725   : > { %v2494_v53 = vmul.f32 %v7374_v8, %v2484_v26  ;;  %v2724_v47 = vpop.permute.xlu1 %2723 }
 0x727   : > { %v2496_v11 = vadd.f32 %v2494_v53, %v2474_v58  ;;  %v2730_v53 = vsel %vm6498_vm9, %v2724_v47, 0.0 }
 0x729   : > { %v2519_v21 = vadd.f32 %v2517_v52, %v2496_v11 }
 0x72b   : > { %v2523_v48 = vpop.permute.xlu2 %2522 }
 0x72c   : > { %v2529_v5 = vsel %vm6295_vm2, %v2523_v48, 0.0  ;;  %vm7389_vm2 = vnez %v7352_v29 }
 0x72d   : > { %v2755_v31 = vpop.permute.xlu1 %2754  ;;  %v2539_v22 = vmul.f32 %v7382_v9, %v2529_v5 }
 0x72e   : > { %v2761_v56 = vmul.f32 %v2755_v31, %v2751_v38 }
 0x72f   : > { %v2541_v61 = vadd.f32 %v2539_v22, %v2519_v21 }
 0x730   : > { %v6513_v63 = vadd.f32 %v2761_v56, %v2741_v39 }
 0x731   : > { %v2563_v2 = vadd.f32 %v2561_v4, %v2541_v61 }
 0x732   : > { %v2765_v19 = vsel %vm7381_vm15, %v6513_v63, 0.0 }
 0x733   : > { %2767 = vadd.xlane.f32.xlu2 %v2765_v19  ;;  %v2773_v45 = vmul.f32 %v2765_v19, %v2765_v19  ;;  %v2568_v42 = vpop.permute.xlu2 %2567 }
 0x734   : > { %v2574_v10 = vsel %vm6339_vm0, %v2568_v42, 0.0 }
 0x735   : > { %2775 = vadd.xlane.f32.xlu0 %v2773_v45  ;;  %v2584_v32 = vmul.f32 %v7385_v60, %v2574_v10 }
 0x737   : > { %v2586_v28 = vadd.f32 %v2584_v32, %v2563_v2 }
 0x739   : > { %v2608_v54 = vadd.f32 %v2606_v1, %v2586_v28 }
 0x73b   : > { %v2612_v15 = vpop.permute.xlu2 %2611 }
 0x73c   : > { %v2618_v34 = vsel %vm6366_vm5, %v2612_v15, 0.0 }
 0x73d   : > { %v2628_v50 = vmul.f32 %v7387_v16, %v2618_v34 }
 0x73f   : > { %v2630_v30 = vadd.f32 %v2628_v50, %v2608_v54 }
 0x741   : > { %v2653_v37 = vadd.f32 %v2651_v3, %v2630_v30 }
 0x743   : > { %v2657_v6 = vpop.permute.xlu2 %2656 }
 0x744   : > { %v2663_v24 = vsel %vm6388_vm10, %v2657_v6, 0.0 }
 0x745   : > { %v2673_v14 = vmul.f32 %v6420_v7, %v2663_v24  ;;  %v2740_v7 = vmul.f32 %v6349_v49, %v2730_v53 }
 0x747   : > { %v2675_v26 = vadd.f32 %v2673_v14, %v2653_v37 }
 0x749   : > { %v2697_v62 = vadd.f32 %v2695_v23, %v2675_v26 }
 0x74b   : > { %v2702_v58 = vpop.permute.xlu2 %2701 }
 0x74c   : > { %v2708_v8 = vsel %vm7389_vm2, %v2702_v58, 0.0 }
 0x74d   : > { %v2718_v43 = vmul.f32 %v2715_v27, %v2708_v8 }
 0x74f   : > { %v2720_v41 = vadd.f32 %v2718_v43, %v2697_v62 }
 0x751   : > { %v2742_v51 = vadd.f32 %v2740_v7, %v2720_v41 }
 0x753   : > { %v2746_v52 = vpop.permute.xlu2 %2745 }
 0x754   : > { %v2752_v40 = vsel %vm6502_vm3, %v2746_v52, 0.0 }
 0x755   : > { %v2762_v11 = vmul.f32 %v2759_v33, %v2752_v40 }
 0x757   : > { %v2764_v21 = vadd.f32 %v2762_v11, %v2742_v51 }
 0x759   : > { %v2766_v29 = vsel %vm7381_vm15, %v2764_v21, 0.0 }
 0x75a   : > { %2769 = vadd.xlane.f32.xlu1 %v2766_v29  ;;  %v2774_v57 = vmul.f32 %v2766_v29, %v2766_v29 }
 0x75c   : > { %2777 = vadd.xlane.f32.xlu2 %v2774_v57 }
 0x7a6   : > { %v2768_v27 = vpop.xlane.xlu2 %2767 }
 0x7a7   : > { %v2771_v55 = vmul.f32 0.015625, %v2768_v27 }
 0x7a8   : > { %v2776_v47 = vpop.xlane.xlu0 %2775 }
 0x7a9   : > { %v2781_v20 = vmul.f32 %v2771_v55, %v2771_v55  ;;  %v2779_v44 = vmul.f32 0.015625, %v2776_v47  ;;  %v2787_v2 = vsub.f32 %v6513_v63, %v2771_v55  ;;  %v2819_v63 = vld [vmem:[%s6575_s6] sm:$0xf] }
 0x7ab   : > { %v2783_v48 = vsub.f32 %v2779_v44, %v2781_v20 }
 0x7ad   : > { %v2785_v49 = vmax.f32 %v2783_v48, 0.0 }
 0x7af   : > { %v2789_v17 = vadd.f32 1e-05, %v2785_v49 }
 0x7b1   : > { %3279 = vrsqrt.f32 %v2789_v17  ;;  %vm2797_vm4 = vweird.f32 %v2789_v17 }
 0x7b7   : > { %v3280_v35 = vpop.eup %3279 }
 0x7b8   : > { %v2792_v39 = vmul.f32 %v3280_v35, %v2789_v17  ;;  %vm2798_vm0 = vweird.f32 %v3280_v35 }
 0x7b9   : > { %vm2799_vm1 = vmor %vm2797_vm4, %vm2798_vm0 }
 0x7ba   : > { %v2793_v42 = vmul.f32 %v3280_v35, %v2792_v39 }
 0x7bc   : > { %v2794_v36 = vmul.f32 0.5, %v2793_v42 }
 0x7be   : > { %v2795_v10 = vsub.f32 1.5, %v2794_v36 }
 0x7c0   : > { %v2796_v13 = vmul.f32 %v3280_v35, %v2795_v10 }
 0x7c2   : > { %v2800_v32 = vsel %vm2799_vm1, %v3280_v35, %v2796_v13 }
 0x7c3   : > { %v2811_v34 = vmul.f32 %v2800_v32, %v2787_v2 }
 0x7c5   : > { %v2815_v50 = vmul.f32 0.01, %v2811_v34  ;;  %vm2813_vm11 = vcmp.ge.f32.partialorder %v2811_v34, 0.0 }
 0x7c7   : > { %v2817_v6 = vsel %vm2813_vm11, %v2811_v34, %v2815_v50 }
 0x7cd   : > { %v2770_v38 = vpop.xlane.xlu1 %2769 }
 0x7ce   : > { %v2772_v31 = vmul.f32 0.015625, %v2770_v38 }
 0x7cf   : > { %v2778_v56 = vpop.xlane.xlu2 %2777 }
 0x7d0   : > { %v2782_v5 = vmul.f32 %v2772_v31, %v2772_v31  ;;  %v2780_v19 = vmul.f32 0.015625, %v2778_v56  ;;  %v2788_v18 = vsub.f32 %v2764_v21, %v2772_v31  ;;  %v7390_v21 = vld [vmem:[#allocation31_spill] sm:$0xff] }
 0x7d2   : > { %v2784_v45 = vsub.f32 %v2780_v19, %v2782_v5 }
 0x7d4   : > { %v2786_v9 = vmax.f32 %v2784_v45, 0.0 }
 0x7d6   : > { %v2790_v22 = vadd.f32 1e-05, %v2786_v9 }
 0x7d8   : > { %3281 = vrsqrt.f32 %v2790_v22  ;;  %vm2807_vm10 = vweird.f32 %v2790_v22 }
 0x7de   : > { %v3282_v61 = vpop.eup %3281 }
 0x7df   : > { %v2802_v4 = vmul.f32 %v3282_v61, %v2790_v22  ;;  %vm2808_vm5 = vweird.f32 %v3282_v61 }
 0x7e0   : > { %vm2809_vm7 = vmor %vm2807_vm10, %vm2808_vm5 }
 0x7e1   : > { %v2803_v60 = vmul.f32 %v3282_v61, %v2802_v4 }
 0x7e3   : > { %v2804_v15 = vmul.f32 0.5, %v2803_v60 }
 0x7e5   : > { %v2805_v59 = vsub.f32 1.5, %v2804_v15 }
 0x7e7   : > { %v2806_v28 = vmul.f32 %v3282_v61, %v2805_v59 }
 0x7e9   : > { %v2810_v1 = vsel %vm2809_vm7, %v3282_v61, %v2806_v28 }
 0x7ea   : > { %v2812_v16 = vmul.f32 %v2810_v1, %v2788_v18 }
 0x7ec   : > { %vm2814_vm8 = vcmp.ge.f32.partialorder %v2812_v16, 0.0  ;;  %v2816_v54 = vmul.f32 0.01, %v2812_v16 }
 0x7ee   : > { %v2818_v25 = vsel %vm2814_vm8, %v2812_v16, %v2816_v54 }
 0x7ef   : > { %v2820_v24 = vpack.c.bf16 %v2818_v25, %v2817_v6 }
 0x7f1   : > { %2832 = vmatpush.bf16.msra.mxu2 %v2820_v24 }
 0x7f4   : > { %3075 = vmatmul.msk.bf16.vlgmr.msra.gmra.mxu2 %vm2821_vm14, %v2819_v63 }
 0x877   : > { %v2834_v30 = vpop.f32.mrf.mxu2 }
 0x878   : > { %v2838_v0 = vsel %vm7381_vm15, %v2834_v30, 0.0 }
 0x879   : > { %2839 = vadd.xlane.f32.xlu1 %v2838_v0  ;;  %v2842_v3 = vmul.f32 %v2838_v0, %v2838_v0 }
 0x87b   : > { %2843 = vadd.xlane.f32.xlu2 %v2842_v3 }
 0x87f   : > { %v2836_v14 = vpop.f32.mrf.mxu2 }
 0x8ec   : > { %v2840_v37 = vpop.xlane.xlu1 %2839 }
 0x8ed   : > { %v2841_v46 = vmul.f32 0.015625, %v2840_v37 }
 0x8ee   : > { %v2844_v26 = vpop.xlane.xlu2 %2843 }
 0x8ef   : > { %v2846_v58 = vmul.f32 %v2841_v46, %v2841_v46  ;;  %v2845_v8 = vmul.f32 0.015625, %v2844_v26  ;;  %v2849_v40 = vsub.f32 %v2834_v30, %v2841_v46 }
 0x8f1   : > { %v2847_v23 = vsub.f32 %v2845_v8, %v2846_v58 }
 0x8f3   : > { %v2848_v43 = vmax.f32 %v2847_v23, 0.0 }
 0x8f5   : > { %v2850_v62 = vadd.f32 1e-05, %v2848_v43 }
 0x8f7   : > { %3283 = vrsqrt.f32 %v2850_v62  ;;  %vm2857_vm13 = vweird.f32 %v2850_v62 }
 0x8fd   : > { %v3284_v53 = vpop.eup %3283 }
 0x8fe   : > { %v2852_v41 = vmul.f32 %v3284_v53, %v2850_v62  ;;  %vm2858_vm6 = vweird.f32 %v3284_v53 }
 0x8ff   : > { %vm2859_vm9 = vmor %vm2857_vm13, %vm2858_vm6 }
 0x900   : > { %v2853_v33 = vmul.f32 %v3284_v53, %v2852_v41 }
 0x902   : > { %v2854_v7 = vmul.f32 0.5, %v2853_v33 }
 0x904   : > { %v2855_v12 = vsub.f32 1.5, %v2854_v7 }
 0x906   : > { %v2856_v52 = vmul.f32 %v3284_v53, %v2855_v12 }
 0x908   : > { %v2860_v51 = vsel %vm2859_vm9, %v3284_v53, %v2856_v52 }
 0x909   : > { %v2861_v11 = vmul.f32 %v2860_v51, %v2849_v40 }
 0x90b   : > { %v2862_v29 = vadd.f32 %v2861_v11, %v7390_v21 }
 0x90d   : > { %2863 = vst [vmem:[%s357_s16] sm:$0xff] %v2862_v29 }
 0x90e PF: > { %s20_s13 = sadd.s32 1, %s3292_s13  }
 0x90f   : > { %p17_p4 = scmp.ge.s32.totalorder %s20_s13, 4  }
 0x911   :  { %19 = sbr.rel (!%p17_p4) target bundleno = 1 (0x1), region = 91 }

</bundles_post_ra>
